<compile_context>
chip_gen: v6e
topology: v6e:2x2x1
jax: 0.10.0
libtpu: 0.0.40
codegen_flags: <defaults>
</compile_context>

<pallas_src>
import functools
import math

import jax
import jax.numpy as jnp
from jax.experimental import pallas as pl
from jax.experimental.pallas import tpu as pltpu


def _round_up(x, m):
    return ((x + m - 1) // m) * m


# ----------------------------------------------------------------------------
# Pallas kernels
# ----------------------------------------------------------------------------
def _mm_kernel(a_ref, w_ref, b_ref, o_ref, acc_ref, *, apply_relu):
    """Tiled matmul: acc += a @ w over the K grid axis; epilogue = +bias (+relu)."""
    @pl.when(pl.program_id(2) == 0)
    def _():
        acc_ref[...] = jnp.zeros_like(acc_ref)

    acc_ref[...] += jnp.dot(a_ref[...], w_ref[...],
                            preferred_element_type=jnp.float32)

    @pl.when(pl.program_id(2) == pl.num_programs(2) - 1)
    def _():
        y = acc_ref[...] + b_ref[...]
        if apply_relu:
            y = jnp.maximum(y, 0.0)
        o_ref[...] = y.astype(o_ref.dtype)


def fused_matmul(a, w, b, *, relu, tm=256, tn=512, tk=512):
    """a: (M, K), w: (K, N), b: (N,).  Returns f32 (M, N) = relu?(a @ w + b).

    BN/bias are pre-folded into (w, b) by the caller.  Inputs are cast to bf16
    (native MXU dtype), accumulation stays in f32.  N/K are padded to lane-dense
    multiples of 128 so stores are unmasked; K/N/M are tiled on the grid so the
    kernel is size-independent (fits 64 MiB VMEM on v7x).
    """
    M, K = a.shape
    N = w.shape[1]
    tm = min(tm, _round_up(M, 16))
    tn = min(tn, _round_up(N, 128))
    tk = min(tk, _round_up(K, 128))
    Mp, Kp, Np = _round_up(M, tm), _round_up(K, tk), _round_up(N, tn)

    a_p = jnp.pad(a.astype(jnp.bfloat16), ((0, Mp - M), (0, Kp - K)))
    w_p = jnp.pad(w.astype(jnp.bfloat16), ((0, Kp - K), (0, Np - N)))
    b_p = jnp.pad(b.astype(jnp.float32).reshape(1, N), ((0, 0), (0, Np - N)))

    out = pl.pallas_call(
        functools.partial(_mm_kernel, apply_relu=relu),
        out_shape=jax.ShapeDtypeStruct((Mp, Np), jnp.float32),
        grid=(Mp // tm, Np // tn, Kp // tk),
        in_specs=[
            pl.BlockSpec((tm, tk), lambda i, j, k: (i, k)),
            pl.BlockSpec((tk, tn), lambda i, j, k: (k, j)),
            pl.BlockSpec((1, tn), lambda i, j, k: (0, j)),
        ],
        out_specs=pl.BlockSpec((tm, tn), lambda i, j, k: (i, j)),
        scratch_shapes=[pltpu.VMEM((tm, tn), jnp.float32)],
        compiler_params=pltpu.CompilerParams(
            dimension_semantics=("parallel", "parallel", "arbitrary")),
    )(a_p, w_p, b_p)
    return out[:M, :N]


def _mlp3_kernel(x_ref, w1_ref, b1_ref, w2_ref, b2_ref, w3_ref, b3_ref, o_ref,
                 *, final_relu):
    """Fused 3-layer MLP (FullyConnected): all weights + activations in VMEM."""
    h = jnp.dot(x_ref[...], w1_ref[...], preferred_element_type=jnp.float32)
    h = jnp.maximum(h + b1_ref[...], 0.0)
    h = jnp.dot(h.astype(w2_ref.dtype), w2_ref[...],
                preferred_element_type=jnp.float32)
    h = jnp.maximum(h + b2_ref[...], 0.0)
    y = jnp.dot(h.astype(w3_ref.dtype), w3_ref[...],
                preferred_element_type=jnp.float32) + b3_ref[...]
    if final_relu:
        y = jnp.maximum(y, 0.0)
    o_ref[...] = y


def fused_mlp3(x, fc1, fc2, fc3, *, final_relu):
    """x: (M, In); fcN = {'w': (out, in), 'b': (out,)} (torch layout)."""
    M, In = x.shape
    H1, H2, Out = fc1["w"].shape[0], fc2["w"].shape[0], fc3["w"].shape[0]
    Mp = _round_up(M, 16)
    Inp, H1p = _round_up(In, 128), _round_up(H1, 128)
    H2p, Outp = _round_up(H2, 128), _round_up(Out, 128)

    xb = jnp.pad(x.astype(jnp.bfloat16), ((0, Mp - M), (0, Inp - In)))
    w1 = jnp.pad(fc1["w"].T.astype(jnp.bfloat16), ((0, Inp - In), (0, H1p - H1)))
    b1 = jnp.pad(fc1["b"].reshape(1, -1), ((0, 0), (0, H1p - H1)))
    w2 = jnp.pad(fc2["w"].T.astype(jnp.bfloat16), ((0, H1 - H1 + (H1p - H1) * 0 + 0, ), (0, 0)))  # placeholder
    # (re-pad w2/w3 correctly below; keep simple explicit pads)
    w2 = jnp.pad(fc2["w"].T.astype(jnp.bfloat16), ((0, H1p - H1), (0, H2p - H2)))
    b2 = jnp.pad(fc2["b"].reshape(1, -1), ((0, 0), (0, H2p - H2)))
    w3 = jnp.pad(fc3["w"].T.astype(jnp.bfloat16), ((0, H2p - H2), (0, Outp - Out)))
    b3 = jnp.pad(fc3["b"].reshape(1, -1), ((0, 0), (0, Outp - Out)))

    out = pl.pallas_call(
        functools.partial(_mlp3_kernel, final_relu=final_relu),
        out_shape=jax.ShapeDtypeStruct((Mp, Outp), jnp.float32),
    )(xb, w1, b1, w2, b2, w3, b3)
    return out[:M, :Out]


def _relu_maxpool_kernel(x_ref, o_ref):
    """o[0, c] = max_w relu(x[w, c]) — window on sublanes, outputs on lanes."""
    x = jnp.maximum(x_ref[...], 0.0)
    o_ref[...] = jnp.max(x, axis=0, keepdims=True)


# ----------------------------------------------------------------------------
# Layer wrappers (glue: reshapes / patch extraction; compute is in kernels)
# ----------------------------------------------------------------------------
def conv3d(x, w, b, *, scale=None, shift=None, relu=False):
    """Conv3d(padding=k//2, stride=1) + optional eval-BN + optional ReLU.

    x: (B, D, H, W, C) channels-last.  w: (Cout, Cin, k, k, k) torch layout.
    """
    B, D, H, W, C = x.shape
    Cout, Cin, k, _, _ = w.shape
    p = k // 2
    xp = jnp.pad(x, ((0, 0), (p, p), (p, p), (p, p), (0, 0)))
    # TODO(synk): patch gather (im2col) is still materialised by XLA (channels-
    # last avoids the big transpose); in-kernel per-tap accumulation not done.
    taps = []
    for kd in range(k):
        for kh in range(k):
            for kw in range(k):
                taps.append(xp[:, kd:kd + D, kh:kh + H, kw:kw + W, :])
    A = jnp.concatenate(taps, axis=-1).reshape(B * D * H * W, k * k * k * Cin)
    # weight rows ordered (kd, kh, kw, cin) to match the A column order.
    Wm = w.transpose(2, 3, 4, 1, 0).reshape(k * k * k * Cin, Cout)
    # Fold eval-mode BN + conv bias into the matmul at trace time.
    if scale is not None:
        Wm = Wm * scale[None, :]
        b = b * scale + shift
    y = fused_matmul(A, Wm, b, relu=relu)
    return y.reshape(B, D, H, W, Cout)


def relu_adaptive_maxpool(x, p, tn=512):
    """nn.ReLU + nn.AdaptiveMaxPool3d(p) (eval-mode Dropout is identity)."""
    B, D, H, W, C = x.shape
    # TODO(synk): ragged adaptive-pool windows (non-divisible D/H/W) not handled.
    assert D % p == 0 and H % p == 0 and W % p == 0
    wd, wh, ww = D // p, H // p, W // p
    win = wd * wh * ww
    xr = x.reshape(B, p, wd, p, wh, p, ww, C)
    xr = xr.transpose(2, 4, 6, 0, 1, 3, 5, 7).reshape(win, B * p * p * p * C)
    R = xr.shape[1]
    tn = min(tn, _round_up(R, 128))
    Rp = _round_up(R, tn)
    xr = jnp.pad(xr, ((0, 0), (0, Rp - R)))
    out = pl.pallas_call(
        _relu_maxpool_kernel,
        out_shape=jax.ShapeDtypeStruct((1, Rp), jnp.float32),
        grid=(Rp // tn,),
        in_specs=[pl.BlockSpec((win, tn), lambda j: (0, j))],
        out_specs=pl.BlockSpec((1, tn), lambda j: (0, j)),
        compiler_params=pltpu.CompilerParams(dimension_semantics=("parallel",)),
    )(xr)
    return out[0, :R].reshape(B, p, p, p, C)


# ----------------------------------------------------------------------------
# Module forward functions (eval-mode semantics, channels-last activations)
# ----------------------------------------------------------------------------
def dense_unit(x, prm, pool):
    x = conv3d(x, prm["conv1"]["w"], prm["conv1"]["b"], relu=True)   # conv1 + (Dropout,ReLU)
    x = conv3d(x, prm["conv2"]["w"], prm["conv2"]["b"], relu=False)  # conv2
    return relu_adaptive_maxpool(x, pool)                            # RegularizePool


def concat_conv(inputs, prm):
    x = jnp.concatenate(inputs, axis=-1)
    return conv3d(x, prm["conv"]["w"], prm["conv"]["b"],
                  scale=prm["bn_scale"], shift=prm["bn_shift"], relu=True)


def dense_block(x, prm, pool):
    x = dense_unit(x, prm["dunit1"], pool)
    x = relu_adaptive_maxpool(x, pool)
    x = concat_conv([x], prm["ccat1"])
    residual = x
    x = dense_unit(x, prm["dunit2"], pool)
    x = relu_adaptive_maxpool(x, pool)
    x = concat_conv([x, residual], prm["ccat2"])
    residual = jnp.concatenate([residual, x], axis=-1)
    x = dense_unit(x, prm["dunit3"], pool)
    x = relu_adaptive_maxpool(x, pool)
    x = concat_conv([x, residual], prm["ccat3"])
    return x


def fully_connected(x, prm, *, final_relu=False):
    return fused_mlp3(x, prm["fc1"], prm["fc2"], prm["fc3"], final_relu=final_relu)


def piece_net(piece, location, prm, emb_size=(4, 4, 4)):
    B, Cp = piece.shape[0], piece.shape[1]
    emb = jnp.zeros((B, Cp) + emb_size, jnp.float32)
    pd = min(piece.shape[2], emb_size[0])
    ph = min(piece.shape[3], emb_size[1])
    pw = min(piece.shape[4], emb_size[2])
    emb = emb.at[:, :, :pd, :ph, :pw].set(piece[:, :, :pd, :ph, :pw].astype(jnp.float32))
    x = emb.reshape(B, -1)
    loc = location.reshape(B, -1).astype(jnp.float32)
    x = jnp.concatenate([x, loc], axis=1)
    x = fully_connected(x, prm["fc1"], final_relu=True)
    x = fully_connected(x, prm["fc2"], final_relu=True)
    x = fully_connected(x, prm["fc3"], final_relu=True)
    return x


def dense_net(board, piece, location, prm, cfg):
    pool = cfg["pool"]
    pc = piece_net(piece, location, prm["piecenet"])
    x = board.transpose(0, 2, 3, 4, 1)               # NCDHW -> NDHWC
    x = conv3d(x, prm["init_conv"]["w"], prm["init_conv"]["b"])
    x = relu_adaptive_maxpool(x, pool)               # pool1
    x = dense_block(x, prm["dblock1"], pool)
    x = dense_block(x, prm["dblock2"], pool)
    x = relu_adaptive_maxpool(x, pool)               # pool2
    x = conv3d(x, prm["final_conv"]["w"], prm["final_conv"]["b"],
               scale=prm["final_bn_scale"], shift=prm["final_bn_shift"], relu=True)
    B = x.shape[0]
    # match PyTorch's NCDHW flatten order for the FC input
    x = x.transpose(0, 4, 1, 2, 3).reshape(B, -1)
    x = jnp.concatenate([x, pc], axis=1)
    return fully_connected(x, prm["fc"], final_relu=False)


# ----------------------------------------------------------------------------
# Deterministic parameter initialisation
# ----------------------------------------------------------------------------
def conv3d_params(key, cin, cout, k):
    kw, kb = jax.random.split(key)
    w = jax.random.normal(kw, (cout, cin, k, k, k), jnp.float32) / math.sqrt(cin * k ** 3)
    b = 0.01 * jax.random.normal(kb, (cout,), jnp.float32)
    return {"w": w, "b": b}


def linear_params(key, in_dim, out_dim):
    kw, kb = jax.random.split(key)
    w = jax.random.normal(kw, (out_dim, in_dim), jnp.float32) / math.sqrt(in_dim)
    b = 0.01 * jax.random.normal(kb, (out_dim,), jnp.float32)
    return {"w": w, "b": b}


def bn_params(key, c, eps=1e-5):
    k1, k2 = jax.random.split(key)
    gamma = 1.0 + 0.1 * jax.random.normal(k1, (c,), jnp.float32)
    beta = 0.1 * jax.random.normal(k2, (c,), jnp.float32)
    running_mean = jnp.zeros((c,), jnp.float32)
    running_var = jnp.ones((c,), jnp.float32)
    scale = gamma / jnp.sqrt(running_var + eps)
    shift = beta - running_mean * scale
    return scale, shift


def init_dense_unit(key, cin, cout, k):
    k1, k2 = jax.random.split(key)
    return {"conv1": conv3d_params(k1, cin, cout, k),
            "conv2": conv3d_params(k2, cout, cout, k)}


def init_concat_conv(key, cin, cout, ncopies, k):
    k1, k2 = jax.random.split(key)
    scale, shift = bn_params(k2, cout)
    return {"conv": conv3d_params(k1, ncopies * cin, cout, k),
            "bn_scale": scale, "bn_shift": shift}


def init_dense_block(key, cin, cout, ccat, k):
    ks = jax.random.split(key, 6)
    return {"dunit1": init_dense_unit(ks[0], cin, cout, k),
            "ccat1": init_concat_conv(ks[1], cout, ccat, 1, k),
            "dunit2": init_dense_unit(ks[2], ccat, cout, k),
            "ccat2": init_concat_conv(ks[3], cout, ccat, 2, k),
            "dunit3": init_dense_unit(ks[4], ccat, cout, k + 2),
            "ccat3": init_concat_conv(ks[5], cout, ccat, 3, k + 2)}


def init_fully_connected(key, in_dim, out_dim, neurons):
    ks = jax.random.split(key, 3)
    return {"fc1": linear_params(ks[0], in_dim, neurons),
            "fc2": linear_params(ks[1], neurons, neurons),
            "fc3": linear_params(ks[2], neurons, out_dim)}


def init_piece_net(key, out_dim, emb_size=(4, 4, 4)):
    flat = emb_size[0] * emb_size[1] * emb_size[2] + 3
    ks = jax.random.split(key, 3)
    return {"fc1": init_fully_connected(ks[0], flat, flat, 256),
            "fc2": init_fully_connected(ks[1], flat, flat, 256),
            "fc3": init_fully_connected(ks[2], flat, out_dim, 256)}


def init_dense_net(key, cfg):
    ks = jax.random.split(key, 7)
    in_ch, dch = cfg["in_channels"], cfg["dense_channels"]
    fc_ch, pool, pnd = cfg["fc_channels"], cfg["pool"], cfg["piece_net_dim"]
    fbn_scale, fbn_shift = bn_params(ks[5], fc_ch)
    fc_indim = fc_ch * pool ** 3 + pnd
    return {
        "init_conv": conv3d_params(ks[0], 1, in_ch, 1),
        "dblock1": init_dense_block(ks[1], in_ch, dch, in_ch, 3),
        "dblock2": init_dense_block(ks[2], in_ch, dch, dch, 5),
        "piecenet": init_piece_net(ks[3], pnd),
        "final_conv": conv3d_params(ks[4], dch, fc_ch, 3),
        "final_bn_scale": fbn_scale,
        "final_bn_shift": fbn_shift,
        "fc": init_fully_connected(ks[6], fc_indim, cfg["out_channels"], cfg["neurons"]),
    }


# ----------------------------------------------------------------------------
if __name__ == "__main__":
    # Small config (DenseBlock requires dense_channels == in_channels, like the
    # PyTorch defaults 512==512).
    cfg = dict(out_channels=8, in_channels=8, neurons=16, fc_channels=4,
               dense_channels=8, concat_channels=8, pool=2, piece_net_dim=8)

    key = jax.random.PRNGKey(0)
    k_params, k_board, k_piece, k_loc = jax.random.split(key, 4)
    params = init_dense_net(k_params, cfg)

    board = jax.random.normal(k_board, (2, 1, 4, 4, 4), jnp.float32)          # NCDHW
    piece = (jax.random.uniform(k_piece, (2, 1, 3, 3, 3)) > 0.5).astype(jnp.float32)
    location = jax.random.normal(k_loc, (2, 3), jnp.float32)

    fwd = jax.jit(lambda b, p, l, prm: dense_net(b, p, l, prm, cfg))
    out = fwd(board, piece, location, params)
    out = jax.block_until_ready(out)

    assert out.shape == (2, cfg["out_channels"]), out.shape
    assert bool(jnp.all(jnp.isfinite(out)))
    print("KERNEL_OK")
</pallas_src>

<mosaic_0001>
module attributes {stable_mosaic.version = 11 : i64} {
  func.func @_mm_kernel(%arg0: i32, %arg1: i32, %arg2: i32, %arg3: memref<128x128xbf16, #tpu.memory_space<vmem>>, %arg4: memref<128x128xbf16, #tpu.memory_space<vmem>>, %arg5: memref<1x128xf32, #tpu.memory_space<vmem>>, %arg6: memref<128x128xf32, #tpu.memory_space<vmem>>, %arg7: memref<128x128xf32, #tpu.memory_space<vmem>>) attributes {dimension_semantics = [#tpu.dimension_semantics<parallel>, #tpu.dimension_semantics<parallel>, #tpu.dimension_semantics<arbitrary>], iteration_bounds = array<i64: 1, 1, 1>, scalar_prefetch = 0 : i64, scratch_operands = 1 : i64, tpu.core_type = #tpu.core_type<tc>, window_params = [{transform_indices = @transform_0, window_bounds = array<i64: 128, 128>}, {transform_indices = @transform_1, window_bounds = array<i64: 128, 128>}, {transform_indices = @transform_2, window_bounds = array<i64: 1, 128>}, {transform_indices = @transform_3, window_bounds = array<i64: 128, 128>}]} {
    %c0_i32 = arith.constant 0 : i32
    %0 = arith.cmpi eq, %arg2, %c0_i32 : i32
    %1 = arith.extui %0 : i1 to i32
    %c0_i32_0 = arith.constant 0 : i32
    %2 = arith.cmpi ne, %1, %c0_i32_0 : i32
    scf.if %2 {
      %cst_10 = arith.constant 0.000000e+00 : f32
      %12 = vector.broadcast %cst_10 : f32 to vector<128x128xf32>
      %c0_11 = arith.constant 0 : index
      %c0_12 = arith.constant 0 : index
      %13 = vector.load %arg7[%c0_11, %c0_12] : memref<128x128xf32, #tpu.memory_space<vmem>>, vector<128x128xf32>
      tpu.vector_store %arg7[%c0_11, %c0_12], %12 {strides = array<i32>} : memref<128x128xf32, #tpu.memory_space<vmem>>, vector<128x128xf32>,
    } else {
    }
    %c0 = arith.constant 0 : index
    %c0_1 = arith.constant 0 : index
    %3 = vector.load %arg7[%c0, %c0_1] : memref<128x128xf32, #tpu.memory_space<vmem>>, vector<128x128xf32>
    %c0_2 = arith.constant 0 : index
    %c0_3 = arith.constant 0 : index
    %4 = vector.load %arg3[%c0_2, %c0_3] : memref<128x128xbf16, #tpu.memory_space<vmem>>, vector<128x128xbf16>
    %c0_4 = arith.constant 0 : index
    %c0_5 = arith.constant 0 : index
    %5 = vector.load %arg4[%c0_4, %c0_5] : memref<128x128xbf16, #tpu.memory_space<vmem>>, vector<128x128xbf16>
    %cst = arith.constant dense<0.000000e+00> : vector<128x128xf32>
    %6 = tpu.matmul %4, %5, %cst {dimension_numbers = #tpu.dot_dimension_numbers<[1], [0], [0], [1], [0, 0, 1, 1], [], []>} : vector<128x128xbf16>, vector<128x128xbf16>, vector<128x128xf32> -> vector<128x128xf32>
    %7 = arith.addf %3, %6 : vector<128x128xf32>
    %c0_6 = arith.constant 0 : index
    %c0_7 = arith.constant 0 : index
    %8 = vector.load %arg7[%c0_6, %c0_7] : memref<128x128xf32, #tpu.memory_space<vmem>>, vector<128x128xf32>
    tpu.vector_store %arg7[%c0_6, %c0_7], %7 {strides = array<i32>} : memref<128x128xf32, #tpu.memory_space<vmem>>, vector<128x128xf32>,
    %c0_i32_8 = arith.constant 0 : i32
    %9 = arith.cmpi eq, %arg2, %c0_i32_8 : i32
    %10 = arith.extui %9 : i1 to i32
    %c0_i32_9 = arith.constant 0 : i32
    %11 = arith.cmpi ne, %10, %c0_i32_9 : i32
    scf.if %11 {
      %c0_10 = arith.constant 0 : index
      %c0_11 = arith.constant 0 : index
      %12 = vector.load %arg7[%c0_10, %c0_11] : memref<128x128xf32, #tpu.memory_space<vmem>>, vector<128x128xf32>
      %c0_12 = arith.constant 0 : index
      %c0_13 = arith.constant 0 : index
      %13 = vector.load %arg5[%c0_12, %c0_13] : memref<1x128xf32, #tpu.memory_space<vmem>>, vector<1x128xf32>
      %14 = vector.broadcast %13 : vector<1x128xf32> to vector<128x128xf32>
      %15 = arith.addf %12, %14 : vector<128x128xf32>
      %c0_14 = arith.constant 0 : index
      %c0_15 = arith.constant 0 : index
      %16 = vector.load %arg6[%c0_14, %c0_15] : memref<128x128xf32, #tpu.memory_space<vmem>>, vector<128x128xf32>
      tpu.vector_store %arg6[%c0_14, %c0_15], %15 {strides = array<i32>} : memref<128x128xf32, #tpu.memory_space<vmem>>, vector<128x128xf32>,
    } else {
    }
    return
  }
  func.func @transform_0(%arg0: i32, %arg1: i32, %arg2: i32) -> (i32, i32) {
    %c0_i32 = arith.constant 0 : i32
    return %arg0, %arg2 : i32, i32
  }
  func.func @transform_1(%arg0: i32, %arg1: i32, %arg2: i32) -> (i32, i32) {
    %c0_i32 = arith.constant 0 : i32
    return %arg2, %arg1 : i32, i32
  }
  func.func @transform_2(%arg0: i32, %arg1: i32, %arg2: i32) -> (i32, i32) {
    %c0_i32 = arith.constant 0 : i32
    %c0_i32_0 = arith.constant 0 : i32
    return %c0_i32, %arg1 : i32, i32
  }
  func.func @transform_3(%arg0: i32, %arg1: i32, %arg2: i32) -> (i32, i32) {
    %c0_i32 = arith.constant 0 : i32
    return %arg0, %arg1 : i32, i32
  }
}

module attributes {stable_mosaic.version = 11 : i64} {
  func.func @_relu_maxpool_kernel(%arg0: i32, %arg1: memref<8x128xf32, #tpu.memory_space<vmem>>, %arg2: memref<1x128xf32, #tpu.memory_space<vmem>>) attributes {dimension_semantics = [#tpu.dimension_semantics<parallel>], iteration_bounds = array<i64: 1>, scalar_prefetch = 0 : i64, scratch_operands = 0 : i64, tpu.core_type = #tpu.core_type<tc>, window_params = [{transform_indices = @transform_0, window_bounds = array<i64: 8, 128>}, {transform_indices = @transform_1, window_bounds = array<i64: 1, 128>}]} {
    %c0 = arith.constant 0 : index
    %c0_0 = arith.constant 0 : index
    %0 = vector.load %arg1[%c0, %c0_0] : memref<8x128xf32, #tpu.memory_space<vmem>>, vector<8x128xf32>
    %cst = arith.constant 0.000000e+00 : f32
    %1 = vector.broadcast %cst : f32 to vector<8x128xf32>
    %2 = arith.maximumf %0, %1 : vector<8x128xf32>
    %cst_1 = arith.constant dense<0xFF800000> : vector<128xf32>
    %3 = vector.multi_reduction <maximumf>, %2, %cst_1 [0] : vector<8x128xf32> to vector<128xf32>
    %4 = vector.shape_cast %3 : vector<128xf32> to vector<1x128xf32>
    %c0_2 = arith.constant 0 : index
    %c0_3 = arith.constant 0 : index
    %5 = vector.load %arg2[%c0_2, %c0_3] : memref<1x128xf32, #tpu.memory_space<vmem>>, vector<1x128xf32>
    tpu.vector_store %arg2[%c0_2, %c0_3], %4 {strides = array<i32>} : memref<1x128xf32, #tpu.memory_space<vmem>>, vector<1x128xf32>,
    return
  }
  func.func @transform_0(%arg0: i32) -> (i32, i32) {
    %c0_i32 = arith.constant 0 : i32
    %c0_i32_0 = arith.constant 0 : i32
    return %c0_i32, %arg0 : i32, i32
  }
  func.func @transform_1(%arg0: i32) -> (i32, i32) {
    %c0_i32 = arith.constant 0 : i32
    %c0_i32_0 = arith.constant 0 : i32
    return %c0_i32, %arg0 : i32, i32
  }
}

module attributes {stable_mosaic.version = 11 : i64} {
  func.func @_mm_kernel(%arg0: i32, %arg1: i32, %arg2: i32, %arg3: memref<16x256xbf16, #tpu.memory_space<vmem>>, %arg4: memref<256x128xbf16, #tpu.memory_space<vmem>>, %arg5: memref<1x128xf32, #tpu.memory_space<vmem>>, %arg6: memref<16x128xf32, #tpu.memory_space<vmem>>, %arg7: memref<16x128xf32, #tpu.memory_space<vmem>>) attributes {dimension_semantics = [#tpu.dimension_semantics<parallel>, #tpu.dimension_semantics<parallel>, #tpu.dimension_semantics<arbitrary>], iteration_bounds = array<i64: 1, 1, 1>, scalar_prefetch = 0 : i64, scratch_operands = 1 : i64, tpu.core_type = #tpu.core_type<tc>, window_params = [{transform_indices = @transform_0, window_bounds = array<i64: 16, 256>}, {transform_indices = @transform_1, window_bounds = array<i64: 256, 128>}, {transform_indices = @transform_2, window_bounds = array<i64: 1, 128>}, {transform_indices = @transform_3, window_bounds = array<i64: 16, 128>}]} {
    %c0_i32 = arith.constant 0 : i32
    %0 = arith.cmpi eq, %arg2, %c0_i32 : i32
    %1 = arith.extui %0 : i1 to i32
    %c0_i32_0 = arith.constant 0 : i32
    %2 = arith.cmpi ne, %1, %c0_i32_0 : i32
    scf.if %2 {
      %cst_10 = arith.constant 0.000000e+00 : f32
      %12 = vector.broadcast %cst_10 : f32 to vector<16x128xf32>
      %c0_11 = arith.constant 0 : index
      %c0_12 = arith.constant 0 : index
      %13 = vector.load %arg7[%c0_11, %c0_12] : memref<16x128xf32, #tpu.memory_space<vmem>>, vector<16x128xf32>
      tpu.vector_store %arg7[%c0_11, %c0_12], %12 {strides = array<i32>} : memref<16x128xf32, #tpu.memory_space<vmem>>, vector<16x128xf32>,
    } else {
    }
    %c0 = arith.constant 0 : index
    %c0_1 = arith.constant 0 : index
    %3 = vector.load %arg7[%c0, %c0_1] : memref<16x128xf32, #tpu.memory_space<vmem>>, vector<16x128xf32>
    %c0_2 = arith.constant 0 : index
    %c0_3 = arith.constant 0 : index
    %4 = vector.load %arg3[%c0_2, %c0_3] : memref<16x256xbf16, #tpu.memory_space<vmem>>, vector<16x256xbf16>
    %c0_4 = arith.constant 0 : index
    %c0_5 = arith.constant 0 : index
    %5 = vector.load %arg4[%c0_4, %c0_5] : memref<256x128xbf16, #tpu.memory_space<vmem>>, vector<256x128xbf16>
    %cst = arith.constant dense<0.000000e+00> : vector<16x128xf32>
    %6 = tpu.matmul %4, %5, %cst {dimension_numbers = #tpu.dot_dimension_numbers<[1], [0], [0], [1], [0, 0, 1, 1], [], []>} : vector<16x256xbf16>, vector<256x128xbf16>, vector<16x128xf32> -> vector<16x128xf32>
    %7 = arith.addf %3, %6 : vector<16x128xf32>
    %c0_6 = arith.constant 0 : index
    %c0_7 = arith.constant 0 : index
    %8 = vector.load %arg7[%c0_6, %c0_7] : memref<16x128xf32, #tpu.memory_space<vmem>>, vector<16x128xf32>
    tpu.vector_store %arg7[%c0_6, %c0_7], %7 {strides = array<i32>} : memref<16x128xf32, #tpu.memory_space<vmem>>, vector<16x128xf32>,
    %c0_i32_8 = arith.constant 0 : i32
    %9 = arith.cmpi eq, %arg2, %c0_i32_8 : i32
    %10 = arith.extui %9 : i1 to i32
    %c0_i32_9 = arith.constant 0 : i32
    %11 = arith.cmpi ne, %10, %c0_i32_9 : i32
    scf.if %11 {
      %c0_10 = arith.constant 0 : index
      %c0_11 = arith.constant 0 : index
      %12 = vector.load %arg7[%c0_10, %c0_11] : memref<16x128xf32, #tpu.memory_space<vmem>>, vector<16x128xf32>
      %c0_12 = arith.constant 0 : index
      %c0_13 = arith.constant 0 : index
      %13 = vector.load %arg5[%c0_12, %c0_13] : memref<1x128xf32, #tpu.memory_space<vmem>>, vector<1x128xf32>
      %14 = vector.broadcast %13 : vector<1x128xf32> to vector<16x128xf32>
      %15 = arith.addf %12, %14 : vector<16x128xf32>
      %cst_14 = arith.constant 0.000000e+00 : f32
      %16 = vector.broadcast %cst_14 : f32 to vector<16x128xf32>
      %17 = arith.maximumf %15, %16 : vector<16x128xf32>
      %c0_15 = arith.constant 0 : index
      %c0_16 = arith.constant 0 : index
      %18 = vector.load %arg6[%c0_15, %c0_16] : memref<16x128xf32, #tpu.memory_space<vmem>>, vector<16x128xf32>
      tpu.vector_store %arg6[%c0_15, %c0_16], %17 {strides = array<i32>} : memref<16x128xf32, #tpu.memory_space<vmem>>, vector<16x128xf32>,
    } else {
    }
    return
  }
  func.func @transform_0(%arg0: i32, %arg1: i32, %arg2: i32) -> (i32, i32) {
    %c0_i32 = arith.constant 0 : i32
    return %arg0, %arg2 : i32, i32
  }
  func.func @transform_1(%arg0: i32, %arg1: i32, %arg2: i32) -> (i32, i32) {
    %c0_i32 = arith.constant 0 : i32
    return %arg2, %arg1 : i32, i32
  }
  func.func @transform_2(%arg0: i32, %arg1: i32, %arg2: i32) -> (i32, i32) {
    %c0_i32 = arith.constant 0 : i32
    %c0_i32_0 = arith.constant 0 : i32
    return %c0_i32, %arg1 : i32, i32
  }
  func.func @transform_3(%arg0: i32, %arg1: i32, %arg2: i32) -> (i32, i32) {
    %c0_i32 = arith.constant 0 : i32
    return %arg0, %arg1 : i32, i32
  }
}

module attributes {stable_mosaic.version = 11 : i64} {
  func.func @_mm_kernel(%arg0: i32, %arg1: i32, %arg2: i32, %arg3: memref<16x256xbf16, #tpu.memory_space<vmem>>, %arg4: memref<256x128xbf16, #tpu.memory_space<vmem>>, %arg5: memref<1x128xf32, #tpu.memory_space<vmem>>, %arg6: memref<16x128xf32, #tpu.memory_space<vmem>>, %arg7: memref<16x128xf32, #tpu.memory_space<vmem>>) attributes {dimension_semantics = [#tpu.dimension_semantics<parallel>, #tpu.dimension_semantics<parallel>, #tpu.dimension_semantics<arbitrary>], iteration_bounds = array<i64: 1, 1, 1>, scalar_prefetch = 0 : i64, scratch_operands = 1 : i64, tpu.core_type = #tpu.core_type<tc>, window_params = [{transform_indices = @transform_0, window_bounds = array<i64: 16, 256>}, {transform_indices = @transform_1, window_bounds = array<i64: 256, 128>}, {transform_indices = @transform_2, window_bounds = array<i64: 1, 128>}, {transform_indices = @transform_3, window_bounds = array<i64: 16, 128>}]} {
    %c0_i32 = arith.constant 0 : i32
    %0 = arith.cmpi eq, %arg2, %c0_i32 : i32
    %1 = arith.extui %0 : i1 to i32
    %c0_i32_0 = arith.constant 0 : i32
    %2 = arith.cmpi ne, %1, %c0_i32_0 : i32
    scf.if %2 {
      %cst_10 = arith.constant 0.000000e+00 : f32
      %12 = vector.broadcast %cst_10 : f32 to vector<16x128xf32>
      %c0_11 = arith.constant 0 : index
      %c0_12 = arith.constant 0 : index
      %13 = vector.load %arg7[%c0_11, %c0_12] : memref<16x128xf32, #tpu.memory_space<vmem>>, vector<16x128xf32>
      tpu.vector_store %arg7[%c0_11, %c0_12], %12 {strides = array<i32>} : memref<16x128xf32, #tpu.memory_space<vmem>>, vector<16x128xf32>,
    } else {
    }
    %c0 = arith.constant 0 : index
    %c0_1 = arith.constant 0 : index
    %3 = vector.load %arg7[%c0, %c0_1] : memref<16x128xf32, #tpu.memory_space<vmem>>, vector<16x128xf32>
    %c0_2 = arith.constant 0 : index
    %c0_3 = arith.constant 0 : index
    %4 = vector.load %arg3[%c0_2, %c0_3] : memref<16x256xbf16, #tpu.memory_space<vmem>>, vector<16x256xbf16>
    %c0_4 = arith.constant 0 : index
    %c0_5 = arith.constant 0 : index
    %5 = vector.load %arg4[%c0_4, %c0_5] : memref<256x128xbf16, #tpu.memory_space<vmem>>, vector<256x128xbf16>
    %cst = arith.constant dense<0.000000e+00> : vector<16x128xf32>
    %6 = tpu.matmul %4, %5, %cst {dimension_numbers = #tpu.dot_dimension_numbers<[1], [0], [0], [1], [0, 0, 1, 1], [], []>} : vector<16x256xbf16>, vector<256x128xbf16>, vector<16x128xf32> -> vector<16x128xf32>
    %7 = arith.addf %3, %6 : vector<16x128xf32>
    %c0_6 = arith.constant 0 : index
    %c0_7 = arith.constant 0 : index
    %8 = vector.load %arg7[%c0_6, %c0_7] : memref<16x128xf32, #tpu.memory_space<vmem>>, vector<16x128xf32>
    tpu.vector_store %arg7[%c0_6, %c0_7], %7 {strides = array<i32>} : memref<16x128xf32, #tpu.memory_space<vmem>>, vector<16x128xf32>,
    %c0_i32_8 = arith.constant 0 : i32
    %9 = arith.cmpi eq, %arg2, %c0_i32_8 : i32
    %10 = arith.extui %9 : i1 to i32
    %c0_i32_9 = arith.constant 0 : i32
    %11 = arith.cmpi ne, %10, %c0_i32_9 : i32
    scf.if %11 {
      %c0_10 = arith.constant 0 : index
      %c0_11 = arith.constant 0 : index
      %12 = vector.load %arg7[%c0_10, %c0_11] : memref<16x128xf32, #tpu.memory_space<vmem>>, vector<16x128xf32>
      %c0_12 = arith.constant 0 : index
      %c0_13 = arith.constant 0 : index
      %13 = vector.load %arg5[%c0_12, %c0_13] : memref<1x128xf32, #tpu.memory_space<vmem>>, vector<1x128xf32>
      %14 = vector.broadcast %13 : vector<1x128xf32> to vector<16x128xf32>
      %15 = arith.addf %12, %14 : vector<16x128xf32>
      %c0_14 = arith.constant 0 : index
      %c0_15 = arith.constant 0 : index
      %16 = vector.load %arg6[%c0_14, %c0_15] : memref<16x128xf32, #tpu.memory_space<vmem>>, vector<16x128xf32>
      tpu.vector_store %arg6[%c0_14, %c0_15], %15 {strides = array<i32>} : memref<16x128xf32, #tpu.memory_space<vmem>>, vector<16x128xf32>,
    } else {
    }
    return
  }
  func.func @transform_0(%arg0: i32, %arg1: i32, %arg2: i32) -> (i32, i32) {
    %c0_i32 = arith.constant 0 : i32
    return %arg0, %arg2 : i32, i32
  }
  func.func @transform_1(%arg0: i32, %arg1: i32, %arg2: i32) -> (i32, i32) {
    %c0_i32 = arith.constant 0 : i32
    return %arg2, %arg1 : i32, i32
  }
  func.func @transform_2(%arg0: i32, %arg1: i32, %arg2: i32) -> (i32, i32) {
    %c0_i32 = arith.constant 0 : i32
    %c0_i32_0 = arith.constant 0 : i32
    return %c0_i32, %arg1 : i32, i32
  }
  func.func @transform_3(%arg0: i32, %arg1: i32, %arg2: i32) -> (i32, i32) {
    %c0_i32 = arith.constant 0 : i32
    return %arg0, %arg1 : i32, i32
  }
}

module attributes {stable_mosaic.version = 11 : i64} {
  func.func @_relu_maxpool_kernel(%arg0: i32, %arg1: memref<1x128xf32, #tpu.memory_space<vmem>>, %arg2: memref<1x128xf32, #tpu.memory_space<vmem>>) attributes {dimension_semantics = [#tpu.dimension_semantics<parallel>], iteration_bounds = array<i64: 1>, scalar_prefetch = 0 : i64, scratch_operands = 0 : i64, tpu.core_type = #tpu.core_type<tc>, window_params = [{transform_indices = @transform_0, window_bounds = array<i64: 1, 128>}, {transform_indices = @transform_1, window_bounds = array<i64: 1, 128>}]} {
    %c0 = arith.constant 0 : index
    %c0_0 = arith.constant 0 : index
    %0 = vector.load %arg1[%c0, %c0_0] : memref<1x128xf32, #tpu.memory_space<vmem>>, vector<1x128xf32>
    %cst = arith.constant 0.000000e+00 : f32
    %1 = vector.broadcast %cst : f32 to vector<1x128xf32>
    %2 = arith.maximumf %0, %1 : vector<1x128xf32>
    %cst_1 = arith.constant dense<0xFF800000> : vector<128xf32>
    %3 = vector.multi_reduction <maximumf>, %2, %cst_1 [0] : vector<1x128xf32> to vector<128xf32>
    %4 = vector.shape_cast %3 : vector<128xf32> to vector<1x128xf32>
    %c0_2 = arith.constant 0 : index
    %c0_3 = arith.constant 0 : index
    %5 = vector.load %arg2[%c0_2, %c0_3] : memref<1x128xf32, #tpu.memory_space<vmem>>, vector<1x128xf32>
    tpu.vector_store %arg2[%c0_2, %c0_3], %4 {strides = array<i32>} : memref<1x128xf32, #tpu.memory_space<vmem>>, vector<1x128xf32>,
    return
  }
  func.func @transform_0(%arg0: i32) -> (i32, i32) {
    %c0_i32 = arith.constant 0 : i32
    %c0_i32_0 = arith.constant 0 : i32
    return %c0_i32, %arg0 : i32, i32
  }
  func.func @transform_1(%arg0: i32) -> (i32, i32) {
    %c0_i32 = arith.constant 0 : i32
    %c0_i32_0 = arith.constant 0 : i32
    return %c0_i32, %arg0 : i32, i32
  }
}

module attributes {stable_mosaic.version = 11 : i64} {
  func.func @_mm_kernel(%arg0: i32, %arg1: i32, %arg2: i32, %arg3: memref<16x512xbf16, #tpu.memory_space<vmem>>, %arg4: memref<512x128xbf16, #tpu.memory_space<vmem>>, %arg5: memref<1x128xf32, #tpu.memory_space<vmem>>, %arg6: memref<16x128xf32, #tpu.memory_space<vmem>>, %arg7: memref<16x128xf32, #tpu.memory_space<vmem>>) attributes {dimension_semantics = [#tpu.dimension_semantics<parallel>, #tpu.dimension_semantics<parallel>, #tpu.dimension_semantics<arbitrary>], iteration_bounds = array<i64: 1, 1, 1>, scalar_prefetch = 0 : i64, scratch_operands = 1 : i64, tpu.core_type = #tpu.core_type<tc>, window_params = [{transform_indices = @transform_0, window_bounds = array<i64: 16, 512>}, {transform_indices = @transform_1, window_bounds = array<i64: 512, 128>}, {transform_indices = @transform_2, window_bounds = array<i64: 1, 128>}, {transform_indices = @transform_3, window_bounds = array<i64: 16, 128>}]} {
    %c0_i32 = arith.constant 0 : i32
    %0 = arith.cmpi eq, %arg2, %c0_i32 : i32
    %1 = arith.extui %0 : i1 to i32
    %c0_i32_0 = arith.constant 0 : i32
    %2 = arith.cmpi ne, %1, %c0_i32_0 : i32
    scf.if %2 {
      %cst_10 = arith.constant 0.000000e+00 : f32
      %12 = vector.broadcast %cst_10 : f32 to vector<16x128xf32>
      %c0_11 = arith.constant 0 : index
      %c0_12 = arith.constant 0 : index
      %13 = vector.load %arg7[%c0_11, %c0_12] : memref<16x128xf32, #tpu.memory_space<vmem>>, vector<16x128xf32>
      tpu.vector_store %arg7[%c0_11, %c0_12], %12 {strides = array<i32>} : memref<16x128xf32, #tpu.memory_space<vmem>>, vector<16x128xf32>,
    } else {
    }
    %c0 = arith.constant 0 : index
    %c0_1 = arith.constant 0 : index
    %3 = vector.load %arg7[%c0, %c0_1] : memref<16x128xf32, #tpu.memory_space<vmem>>, vector<16x128xf32>
    %c0_2 = arith.constant 0 : index
    %c0_3 = arith.constant 0 : index
    %4 = vector.load %arg3[%c0_2, %c0_3] : memref<16x512xbf16, #tpu.memory_space<vmem>>, vector<16x512xbf16>
    %c0_4 = arith.constant 0 : index
    %c0_5 = arith.constant 0 : index
    %5 = vector.load %arg4[%c0_4, %c0_5] : memref<512x128xbf16, #tpu.memory_space<vmem>>, vector<512x128xbf16>
    %cst = arith.constant dense<0.000000e+00> : vector<16x128xf32>
    %6 = tpu.matmul %4, %5, %cst {dimension_numbers = #tpu.dot_dimension_numbers<[1], [0], [0], [1], [0, 0, 1, 1], [], []>} : vector<16x512xbf16>, vector<512x128xbf16>, vector<16x128xf32> -> vector<16x128xf32>
    %7 = arith.addf %3, %6 : vector<16x128xf32>
    %c0_6 = arith.constant 0 : index
    %c0_7 = arith.constant 0 : index
    %8 = vector.load %arg7[%c0_6, %c0_7] : memref<16x128xf32, #tpu.memory_space<vmem>>, vector<16x128xf32>
    tpu.vector_store %arg7[%c0_6, %c0_7], %7 {strides = array<i32>} : memref<16x128xf32, #tpu.memory_space<vmem>>, vector<16x128xf32>,
    %c0_i32_8 = arith.constant 0 : i32
    %9 = arith.cmpi eq, %arg2, %c0_i32_8 : i32
    %10 = arith.extui %9 : i1 to i32
    %c0_i32_9 = arith.constant 0 : i32
    %11 = arith.cmpi ne, %10, %c0_i32_9 : i32
    scf.if %11 {
      %c0_10 = arith.constant 0 : index
      %c0_11 = arith.constant 0 : index
      %12 = vector.load %arg7[%c0_10, %c0_11] : memref<16x128xf32, #tpu.memory_space<vmem>>, vector<16x128xf32>
      %c0_12 = arith.constant 0 : index
      %c0_13 = arith.constant 0 : index
      %13 = vector.load %arg5[%c0_12, %c0_13] : memref<1x128xf32, #tpu.memory_space<vmem>>, vector<1x128xf32>
      %14 = vector.broadcast %13 : vector<1x128xf32> to vector<16x128xf32>
      %15 = arith.addf %12, %14 : vector<16x128xf32>
      %cst_14 = arith.constant 0.000000e+00 : f32
      %16 = vector.broadcast %cst_14 : f32 to vector<16x128xf32>
      %17 = arith.maximumf %15, %16 : vector<16x128xf32>
      %c0_15 = arith.constant 0 : index
      %c0_16 = arith.constant 0 : index
      %18 = vector.load %arg6[%c0_15, %c0_16] : memref<16x128xf32, #tpu.memory_space<vmem>>, vector<16x128xf32>
      tpu.vector_store %arg6[%c0_15, %c0_16], %17 {strides = array<i32>} : memref<16x128xf32, #tpu.memory_space<vmem>>, vector<16x128xf32>,
    } else {
    }
    return
  }
  func.func @transform_0(%arg0: i32, %arg1: i32, %arg2: i32) -> (i32, i32) {
    %c0_i32 = arith.constant 0 : i32
    return %arg0, %arg2 : i32, i32
  }
  func.func @transform_1(%arg0: i32, %arg1: i32, %arg2: i32) -> (i32, i32) {
    %c0_i32 = arith.constant 0 : i32
    return %arg2, %arg1 : i32, i32
  }
  func.func @transform_2(%arg0: i32, %arg1: i32, %arg2: i32) -> (i32, i32) {
    %c0_i32 = arith.constant 0 : i32
    %c0_i32_0 = arith.constant 0 : i32
    return %c0_i32, %arg1 : i32, i32
  }
  func.func @transform_3(%arg0: i32, %arg1: i32, %arg2: i32) -> (i32, i32) {
    %c0_i32 = arith.constant 0 : i32
    return %arg0, %arg1 : i32, i32
  }
}

module attributes {stable_mosaic.version = 11 : i64} {
  func.func @_mm_kernel(%arg0: i32, %arg1: i32, %arg2: i32, %arg3: memref<16x512xbf16, #tpu.memory_space<vmem>>, %arg4: memref<512x128xbf16, #tpu.memory_space<vmem>>, %arg5: memref<1x128xf32, #tpu.memory_space<vmem>>, %arg6: memref<16x128xf32, #tpu.memory_space<vmem>>, %arg7: memref<16x128xf32, #tpu.memory_space<vmem>>) attributes {dimension_semantics = [#tpu.dimension_semantics<parallel>, #tpu.dimension_semantics<parallel>, #tpu.dimension_semantics<arbitrary>], iteration_bounds = array<i64: 1, 1, 2>, scalar_prefetch = 0 : i64, scratch_operands = 1 : i64, tpu.core_type = #tpu.core_type<tc>, window_params = [{transform_indices = @transform_0, window_bounds = array<i64: 16, 512>}, {transform_indices = @transform_1, window_bounds = array<i64: 512, 128>}, {transform_indices = @transform_2, window_bounds = array<i64: 1, 128>}, {transform_indices = @transform_3, window_bounds = array<i64: 16, 128>}]} {
    %c0_i32 = arith.constant 0 : i32
    %0 = arith.cmpi eq, %arg2, %c0_i32 : i32
    %1 = arith.extui %0 : i1 to i32
    %c0_i32_0 = arith.constant 0 : i32
    %2 = arith.cmpi ne, %1, %c0_i32_0 : i32
    scf.if %2 {
      %cst_9 = arith.constant 0.000000e+00 : f32
      %12 = vector.broadcast %cst_9 : f32 to vector<16x128xf32>
      %c0_10 = arith.constant 0 : index
      %c0_11 = arith.constant 0 : index
      %13 = vector.load %arg7[%c0_10, %c0_11] : memref<16x128xf32, #tpu.memory_space<vmem>>, vector<16x128xf32>
      tpu.vector_store %arg7[%c0_10, %c0_11], %12 {strides = array<i32>} : memref<16x128xf32, #tpu.memory_space<vmem>>, vector<16x128xf32>,
    } else {
    }
    %c0 = arith.constant 0 : index
    %c0_1 = arith.constant 0 : index
    %3 = vector.load %arg7[%c0, %c0_1] : memref<16x128xf32, #tpu.memory_space<vmem>>, vector<16x128xf32>
    %c0_2 = arith.constant 0 : index
    %c0_3 = arith.constant 0 : index
    %4 = vector.load %arg3[%c0_2, %c0_3] : memref<16x512xbf16, #tpu.memory_space<vmem>>, vector<16x512xbf16>
    %c0_4 = arith.constant 0 : index
    %c0_5 = arith.constant 0 : index
    %5 = vector.load %arg4[%c0_4, %c0_5] : memref<512x128xbf16, #tpu.memory_space<vmem>>, vector<512x128xbf16>
    %cst = arith.constant dense<0.000000e+00> : vector<16x128xf32>
    %6 = tpu.matmul %4, %5, %cst {dimension_numbers = #tpu.dot_dimension_numbers<[1], [0], [0], [1], [0, 0, 1, 1], [], []>} : vector<16x512xbf16>, vector<512x128xbf16>, vector<16x128xf32> -> vector<16x128xf32>
    %7 = arith.addf %3, %6 : vector<16x128xf32>
    %c0_6 = arith.constant 0 : index
    %c0_7 = arith.constant 0 : index
    %8 = vector.load %arg7[%c0_6, %c0_7] : memref<16x128xf32, #tpu.memory_space<vmem>>, vector<16x128xf32>
    tpu.vector_store %arg7[%c0_6, %c0_7], %7 {strides = array<i32>} : memref<16x128xf32, #tpu.memory_space<vmem>>, vector<16x128xf32>,
    %c1_i32 = arith.constant 1 : i32
    %9 = arith.cmpi eq, %arg2, %c1_i32 : i32
    %10 = arith.extui %9 : i1 to i32
    %c0_i32_8 = arith.constant 0 : i32
    %11 = arith.cmpi ne, %10, %c0_i32_8 : i32
    scf.if %11 {
      %c0_9 = arith.constant 0 : index
      %c0_10 = arith.constant 0 : index
      %12 = vector.load %arg7[%c0_9, %c0_10] : memref<16x128xf32, #tpu.memory_space<vmem>>, vector<16x128xf32>
      %c0_11 = arith.constant 0 : index
      %c0_12 = arith.constant 0 : index
      %13 = vector.load %arg5[%c0_11, %c0_12] : memref<1x128xf32, #tpu.memory_space<vmem>>, vector<1x128xf32>
      %14 = vector.broadcast %13 : vector<1x128xf32> to vector<16x128xf32>
      %15 = arith.addf %12, %14 : vector<16x128xf32>
      %cst_13 = arith.constant 0.000000e+00 : f32
      %16 = vector.broadcast %cst_13 : f32 to vector<16x128xf32>
      %17 = arith.maximumf %15, %16 : vector<16x128xf32>
      %c0_14 = arith.constant 0 : index
      %c0_15 = arith.constant 0 : index
      %18 = vector.load %arg6[%c0_14, %c0_15] : memref<16x128xf32, #tpu.memory_space<vmem>>, vector<16x128xf32>
      tpu.vector_store %arg6[%c0_14, %c0_15], %17 {strides = array<i32>} : memref<16x128xf32, #tpu.memory_space<vmem>>, vector<16x128xf32>,
    } else {
    }
    return
  }
  func.func @transform_0(%arg0: i32, %arg1: i32, %arg2: i32) -> (i32, i32) {
    %c0_i32 = arith.constant 0 : i32
    return %arg0, %arg2 : i32, i32
  }
  func.func @transform_1(%arg0: i32, %arg1: i32, %arg2: i32) -> (i32, i32) {
    %c0_i32 = arith.constant 0 : i32
    return %arg2, %arg1 : i32, i32
  }
  func.func @transform_2(%arg0: i32, %arg1: i32, %arg2: i32) -> (i32, i32) {
    %c0_i32 = arith.constant 0 : i32
    %c0_i32_0 = arith.constant 0 : i32
    return %c0_i32, %arg1 : i32, i32
  }
  func.func @transform_3(%arg0: i32, %arg1: i32, %arg2: i32) -> (i32, i32) {
    %c0_i32 = arith.constant 0 : i32
    return %arg0, %arg1 : i32, i32
  }
}

module attributes {stable_mosaic.version = 11 : i64} {
  func.func @_mm_kernel(%arg0: i32, %arg1: i32, %arg2: i32, %arg3: memref<16x512xbf16, #tpu.memory_space<vmem>>, %arg4: memref<512x128xbf16, #tpu.memory_space<vmem>>, %arg5: memref<1x128xf32, #tpu.memory_space<vmem>>, %arg6: memref<16x128xf32, #tpu.memory_space<vmem>>, %arg7: memref<16x128xf32, #tpu.memory_space<vmem>>) attributes {dimension_semantics = [#tpu.dimension_semantics<parallel>, #tpu.dimension_semantics<parallel>, #tpu.dimension_semantics<arbitrary>], iteration_bounds = array<i64: 1, 1, 2>, scalar_prefetch = 0 : i64, scratch_operands = 1 : i64, tpu.core_type = #tpu.core_type<tc>, window_params = [{transform_indices = @transform_0, window_bounds = array<i64: 16, 512>}, {transform_indices = @transform_1, window_bounds = array<i64: 512, 128>}, {transform_indices = @transform_2, window_bounds = array<i64: 1, 128>}, {transform_indices = @transform_3, window_bounds = array<i64: 16, 128>}]} {
    %c0_i32 = arith.constant 0 : i32
    %0 = arith.cmpi eq, %arg2, %c0_i32 : i32
    %1 = arith.extui %0 : i1 to i32
    %c0_i32_0 = arith.constant 0 : i32
    %2 = arith.cmpi ne, %1, %c0_i32_0 : i32
    scf.if %2 {
      %cst_9 = arith.constant 0.000000e+00 : f32
      %12 = vector.broadcast %cst_9 : f32 to vector<16x128xf32>
      %c0_10 = arith.constant 0 : index
      %c0_11 = arith.constant 0 : index
      %13 = vector.load %arg7[%c0_10, %c0_11] : memref<16x128xf32, #tpu.memory_space<vmem>>, vector<16x128xf32>
      tpu.vector_store %arg7[%c0_10, %c0_11], %12 {strides = array<i32>} : memref<16x128xf32, #tpu.memory_space<vmem>>, vector<16x128xf32>,
    } else {
    }
    %c0 = arith.constant 0 : index
    %c0_1 = arith.constant 0 : index
    %3 = vector.load %arg7[%c0, %c0_1] : memref<16x128xf32, #tpu.memory_space<vmem>>, vector<16x128xf32>
    %c0_2 = arith.constant 0 : index
    %c0_3 = arith.constant 0 : index
    %4 = vector.load %arg3[%c0_2, %c0_3] : memref<16x512xbf16, #tpu.memory_space<vmem>>, vector<16x512xbf16>
    %c0_4 = arith.constant 0 : index
    %c0_5 = arith.constant 0 : index
    %5 = vector.load %arg4[%c0_4, %c0_5] : memref<512x128xbf16, #tpu.memory_space<vmem>>, vector<512x128xbf16>
    %cst = arith.constant dense<0.000000e+00> : vector<16x128xf32>
    %6 = tpu.matmul %4, %5, %cst {dimension_numbers = #tpu.dot_dimension_numbers<[1], [0], [0], [1], [0, 0, 1, 1], [], []>} : vector<16x512xbf16>, vector<512x128xbf16>, vector<16x128xf32> -> vector<16x128xf32>
    %7 = arith.addf %3, %6 : vector<16x128xf32>
    %c0_6 = arith.constant 0 : index
    %c0_7 = arith.constant 0 : index
    %8 = vector.load %arg7[%c0_6, %c0_7] : memref<16x128xf32, #tpu.memory_space<vmem>>, vector<16x128xf32>
    tpu.vector_store %arg7[%c0_6, %c0_7], %7 {strides = array<i32>} : memref<16x128xf32, #tpu.memory_space<vmem>>, vector<16x128xf32>,
    %c1_i32 = arith.constant 1 : i32
    %9 = arith.cmpi eq, %arg2, %c1_i32 : i32
    %10 = arith.extui %9 : i1 to i32
    %c0_i32_8 = arith.constant 0 : i32
    %11 = arith.cmpi ne, %10, %c0_i32_8 : i32
    scf.if %11 {
      %c0_9 = arith.constant 0 : index
      %c0_10 = arith.constant 0 : index
      %12 = vector.load %arg7[%c0_9, %c0_10] : memref<16x128xf32, #tpu.memory_space<vmem>>, vector<16x128xf32>
      %c0_11 = arith.constant 0 : index
      %c0_12 = arith.constant 0 : index
      %13 = vector.load %arg5[%c0_11, %c0_12] : memref<1x128xf32, #tpu.memory_space<vmem>>, vector<1x128xf32>
      %14 = vector.broadcast %13 : vector<1x128xf32> to vector<16x128xf32>
      %15 = arith.addf %12, %14 : vector<16x128xf32>
      %c0_13 = arith.constant 0 : index
      %c0_14 = arith.constant 0 : index
      %16 = vector.load %arg6[%c0_13, %c0_14] : memref<16x128xf32, #tpu.memory_space<vmem>>, vector<16x128xf32>
      tpu.vector_store %arg6[%c0_13, %c0_14], %15 {strides = array<i32>} : memref<16x128xf32, #tpu.memory_space<vmem>>, vector<16x128xf32>,
    } else {
    }
    return
  }
  func.func @transform_0(%arg0: i32, %arg1: i32, %arg2: i32) -> (i32, i32) {
    %c0_i32 = arith.constant 0 : i32
    return %arg0, %arg2 : i32, i32
  }
  func.func @transform_1(%arg0: i32, %arg1: i32, %arg2: i32) -> (i32, i32) {
    %c0_i32 = arith.constant 0 : i32
    return %arg2, %arg1 : i32, i32
  }
  func.func @transform_2(%arg0: i32, %arg1: i32, %arg2: i32) -> (i32, i32) {
    %c0_i32 = arith.constant 0 : i32
    %c0_i32_0 = arith.constant 0 : i32
    return %c0_i32, %arg1 : i32, i32
  }
  func.func @transform_3(%arg0: i32, %arg1: i32, %arg2: i32) -> (i32, i32) {
    %c0_i32 = arith.constant 0 : i32
    return %arg0, %arg1 : i32, i32
  }
}

module attributes {stable_mosaic.version = 11 : i64} {
  func.func @_mm_kernel(%arg0: i32, %arg1: i32, %arg2: i32, %arg3: memref<16x512xbf16, #tpu.memory_space<vmem>>, %arg4: memref<512x128xbf16, #tpu.memory_space<vmem>>, %arg5: memref<1x128xf32, #tpu.memory_space<vmem>>, %arg6: memref<16x128xf32, #tpu.memory_space<vmem>>, %arg7: memref<16x128xf32, #tpu.memory_space<vmem>>) attributes {dimension_semantics = [#tpu.dimension_semantics<parallel>, #tpu.dimension_semantics<parallel>, #tpu.dimension_semantics<arbitrary>], iteration_bounds = array<i64: 1, 1, 6>, scalar_prefetch = 0 : i64, scratch_operands = 1 : i64, tpu.core_type = #tpu.core_type<tc>, window_params = [{transform_indices = @transform_0, window_bounds = array<i64: 16, 512>}, {transform_indices = @transform_1, window_bounds = array<i64: 512, 128>}, {transform_indices = @transform_2, window_bounds = array<i64: 1, 128>}, {transform_indices = @transform_3, window_bounds = array<i64: 16, 128>}]} {
    %c0_i32 = arith.constant 0 : i32
    %0 = arith.cmpi eq, %arg2, %c0_i32 : i32
    %1 = arith.extui %0 : i1 to i32
    %c0_i32_0 = arith.constant 0 : i32
    %2 = arith.cmpi ne, %1, %c0_i32_0 : i32
    scf.if %2 {
      %cst_9 = arith.constant 0.000000e+00 : f32
      %12 = vector.broadcast %cst_9 : f32 to vector<16x128xf32>
      %c0_10 = arith.constant 0 : index
      %c0_11 = arith.constant 0 : index
      %13 = vector.load %arg7[%c0_10, %c0_11] : memref<16x128xf32, #tpu.memory_space<vmem>>, vector<16x128xf32>
      tpu.vector_store %arg7[%c0_10, %c0_11], %12 {strides = array<i32>} : memref<16x128xf32, #tpu.memory_space<vmem>>, vector<16x128xf32>,
    } else {
    }
    %c0 = arith.constant 0 : index
    %c0_1 = arith.constant 0 : index
    %3 = vector.load %arg7[%c0, %c0_1] : memref<16x128xf32, #tpu.memory_space<vmem>>, vector<16x128xf32>
    %c0_2 = arith.constant 0 : index
    %c0_3 = arith.constant 0 : index
    %4 = vector.load %arg3[%c0_2, %c0_3] : memref<16x512xbf16, #tpu.memory_space<vmem>>, vector<16x512xbf16>
    %c0_4 = arith.constant 0 : index
    %c0_5 = arith.constant 0 : index
    %5 = vector.load %arg4[%c0_4, %c0_5] : memref<512x128xbf16, #tpu.memory_space<vmem>>, vector<512x128xbf16>
    %cst = arith.constant dense<0.000000e+00> : vector<16x128xf32>
    %6 = tpu.matmul %4, %5, %cst {dimension_numbers = #tpu.dot_dimension_numbers<[1], [0], [0], [1], [0, 0, 1, 1], [], []>} : vector<16x512xbf16>, vector<512x128xbf16>, vector<16x128xf32> -> vector<16x128xf32>
    %7 = arith.addf %3, %6 : vector<16x128xf32>
    %c0_6 = arith.constant 0 : index
    %c0_7 = arith.constant 0 : index
    %8 = vector.load %arg7[%c0_6, %c0_7] : memref<16x128xf32, #tpu.memory_space<vmem>>, vector<16x128xf32>
    tpu.vector_store %arg7[%c0_6, %c0_7], %7 {strides = array<i32>} : memref<16x128xf32, #tpu.memory_space<vmem>>, vector<16x128xf32>,
    %c5_i32 = arith.constant 5 : i32
    %9 = arith.cmpi eq, %arg2, %c5_i32 : i32
    %10 = arith.extui %9 : i1 to i32
    %c0_i32_8 = arith.constant 0 : i32
    %11 = arith.cmpi ne, %10, %c0_i32_8 : i32
    scf.if %11 {
      %c0_9 = arith.constant 0 : index
      %c0_10 = arith.constant 0 : index
      %12 = vector.load %arg7[%c0_9, %c0_10] : memref<16x128xf32, #tpu.memory_space<vmem>>, vector<16x128xf32>
      %c0_11 = arith.constant 0 : index
      %c0_12 = arith.constant 0 : index
      %13 = vector.load %arg5[%c0_11, %c0_12] : memref<1x128xf32, #tpu.memory_space<vmem>>, vector<1x128xf32>
      %14 = vector.broadcast %13 : vector<1x128xf32> to vector<16x128xf32>
      %15 = arith.addf %12, %14 : vector<16x128xf32>
      %cst_13 = arith.constant 0.000000e+00 : f32
      %16 = vector.broadcast %cst_13 : f32 to vector<16x128xf32>
      %17 = arith.maximumf %15, %16 : vector<16x128xf32>
      %c0_14 = arith.constant 0 : index
      %c0_15 = arith.constant 0 : index
      %18 = vector.load %arg6[%c0_14, %c0_15] : memref<16x128xf32, #tpu.memory_space<vmem>>, vector<16x128xf32>
      tpu.vector_store %arg6[%c0_14, %c0_15], %17 {strides = array<i32>} : memref<16x128xf32, #tpu.memory_space<vmem>>, vector<16x128xf32>,
    } else {
    }
    return
  }
  func.func @transform_0(%arg0: i32, %arg1: i32, %arg2: i32) -> (i32, i32) {
    %c0_i32 = arith.constant 0 : i32
    return %arg0, %arg2 : i32, i32
  }
  func.func @transform_1(%arg0: i32, %arg1: i32, %arg2: i32) -> (i32, i32) {
    %c0_i32 = arith.constant 0 : i32
    return %arg2, %arg1 : i32, i32
  }
  func.func @transform_2(%arg0: i32, %arg1: i32, %arg2: i32) -> (i32, i32) {
    %c0_i32 = arith.constant 0 : i32
    %c0_i32_0 = arith.constant 0 : i32
    return %c0_i32, %arg1 : i32, i32
  }
  func.func @transform_3(%arg0: i32, %arg1: i32, %arg2: i32) -> (i32, i32) {
    %c0_i32 = arith.constant 0 : i32
    return %arg0, %arg1 : i32, i32
  }
}

module attributes {stable_mosaic.version = 11 : i64} {
  func.func @_mm_kernel(%arg0: i32, %arg1: i32, %arg2: i32, %arg3: memref<16x512xbf16, #tpu.memory_space<vmem>>, %arg4: memref<512x128xbf16, #tpu.memory_space<vmem>>, %arg5: memref<1x128xf32, #tpu.memory_space<vmem>>, %arg6: memref<16x128xf32, #tpu.memory_space<vmem>>, %arg7: memref<16x128xf32, #tpu.memory_space<vmem>>) attributes {dimension_semantics = [#tpu.dimension_semantics<parallel>, #tpu.dimension_semantics<parallel>, #tpu.dimension_semantics<arbitrary>], iteration_bounds = array<i64: 1, 1, 4>, scalar_prefetch = 0 : i64, scratch_operands = 1 : i64, tpu.core_type = #tpu.core_type<tc>, window_params = [{transform_indices = @transform_0, window_bounds = array<i64: 16, 512>}, {transform_indices = @transform_1, window_bounds = array<i64: 512, 128>}, {transform_indices = @transform_2, window_bounds = array<i64: 1, 128>}, {transform_indices = @transform_3, window_bounds = array<i64: 16, 128>}]} {
    %c0_i32 = arith.constant 0 : i32
    %0 = arith.cmpi eq, %arg2, %c0_i32 : i32
    %1 = arith.extui %0 : i1 to i32
    %c0_i32_0 = arith.constant 0 : i32
    %2 = arith.cmpi ne, %1, %c0_i32_0 : i32
    scf.if %2 {
      %cst_9 = arith.constant 0.000000e+00 : f32
      %12 = vector.broadcast %cst_9 : f32 to vector<16x128xf32>
      %c0_10 = arith.constant 0 : index
      %c0_11 = arith.constant 0 : index
      %13 = vector.load %arg7[%c0_10, %c0_11] : memref<16x128xf32, #tpu.memory_space<vmem>>, vector<16x128xf32>
      tpu.vector_store %arg7[%c0_10, %c0_11], %12 {strides = array<i32>} : memref<16x128xf32, #tpu.memory_space<vmem>>, vector<16x128xf32>,
    } else {
    }
    %c0 = arith.constant 0 : index
    %c0_1 = arith.constant 0 : index
    %3 = vector.load %arg7[%c0, %c0_1] : memref<16x128xf32, #tpu.memory_space<vmem>>, vector<16x128xf32>
    %c0_2 = arith.constant 0 : index
    %c0_3 = arith.constant 0 : index
    %4 = vector.load %arg3[%c0_2, %c0_3] : memref<16x512xbf16, #tpu.memory_space<vmem>>, vector<16x512xbf16>
    %c0_4 = arith.constant 0 : index
    %c0_5 = arith.constant 0 : index
    %5 = vector.load %arg4[%c0_4, %c0_5] : memref<512x128xbf16, #tpu.memory_space<vmem>>, vector<512x128xbf16>
    %cst = arith.constant dense<0.000000e+00> : vector<16x128xf32>
    %6 = tpu.matmul %4, %5, %cst {dimension_numbers = #tpu.dot_dimension_numbers<[1], [0], [0], [1], [0, 0, 1, 1], [], []>} : vector<16x512xbf16>, vector<512x128xbf16>, vector<16x128xf32> -> vector<16x128xf32>
    %7 = arith.addf %3, %6 : vector<16x128xf32>
    %c0_6 = arith.constant 0 : index
    %c0_7 = arith.constant 0 : index
    %8 = vector.load %arg7[%c0_6, %c0_7] : memref<16x128xf32, #tpu.memory_space<vmem>>, vector<16x128xf32>
    tpu.vector_store %arg7[%c0_6, %c0_7], %7 {strides = array<i32>} : memref<16x128xf32, #tpu.memory_space<vmem>>, vector<16x128xf32>,
    %c3_i32 = arith.constant 3 : i32
    %9 = arith.cmpi eq, %arg2, %c3_i32 : i32
    %10 = arith.extui %9 : i1 to i32
    %c0_i32_8 = arith.constant 0 : i32
    %11 = arith.cmpi ne, %10, %c0_i32_8 : i32
    scf.if %11 {
      %c0_9 = arith.constant 0 : index
      %c0_10 = arith.constant 0 : index
      %12 = vector.load %arg7[%c0_9, %c0_10] : memref<16x128xf32, #tpu.memory_space<vmem>>, vector<16x128xf32>
      %c0_11 = arith.constant 0 : index
      %c0_12 = arith.constant 0 : index
      %13 = vector.load %arg5[%c0_11, %c0_12] : memref<1x128xf32, #tpu.memory_space<vmem>>, vector<1x128xf32>
      %14 = vector.broadcast %13 : vector<1x128xf32> to vector<16x128xf32>
      %15 = arith.addf %12, %14 : vector<16x128xf32>
      %cst_13 = arith.constant 0.000000e+00 : f32
      %16 = vector.broadcast %cst_13 : f32 to vector<16x128xf32>
      %17 = arith.maximumf %15, %16 : vector<16x128xf32>
      %c0_14 = arith.constant 0 : index
      %c0_15 = arith.constant 0 : index
      %18 = vector.load %arg6[%c0_14, %c0_15] : memref<16x128xf32, #tpu.memory_space<vmem>>, vector<16x128xf32>
      tpu.vector_store %arg6[%c0_14, %c0_15], %17 {strides = array<i32>} : memref<16x128xf32, #tpu.memory_space<vmem>>, vector<16x128xf32>,
    } else {
    }
    return
  }
  func.func @transform_0(%arg0: i32, %arg1: i32, %arg2: i32) -> (i32, i32) {
    %c0_i32 = arith.constant 0 : i32
    return %arg0, %arg2 : i32, i32
  }
  func.func @transform_1(%arg0: i32, %arg1: i32, %arg2: i32) -> (i32, i32) {
    %c0_i32 = arith.constant 0 : i32
    return %arg2, %arg1 : i32, i32
  }
  func.func @transform_2(%arg0: i32, %arg1: i32, %arg2: i32) -> (i32, i32) {
    %c0_i32 = arith.constant 0 : i32
    %c0_i32_0 = arith.constant 0 : i32
    return %c0_i32, %arg1 : i32, i32
  }
  func.func @transform_3(%arg0: i32, %arg1: i32, %arg2: i32) -> (i32, i32) {
    %c0_i32 = arith.constant 0 : i32
    return %arg0, %arg1 : i32, i32
  }
}

module attributes {stable_mosaic.version = 11 : i64} {
  func.func @_mm_kernel(%arg0: i32, %arg1: i32, %arg2: i32, %arg3: memref<16x512xbf16, #tpu.memory_space<vmem>>, %arg4: memref<512x128xbf16, #tpu.memory_space<vmem>>, %arg5: memref<1x128xf32, #tpu.memory_space<vmem>>, %arg6: memref<16x128xf32, #tpu.memory_space<vmem>>, %arg7: memref<16x128xf32, #tpu.memory_space<vmem>>) attributes {dimension_semantics = [#tpu.dimension_semantics<parallel>, #tpu.dimension_semantics<parallel>, #tpu.dimension_semantics<arbitrary>], iteration_bounds = array<i64: 1, 1, 6>, scalar_prefetch = 0 : i64, scratch_operands = 1 : i64, tpu.core_type = #tpu.core_type<tc>, window_params = [{transform_indices = @transform_0, window_bounds = array<i64: 16, 512>}, {transform_indices = @transform_1, window_bounds = array<i64: 512, 128>}, {transform_indices = @transform_2, window_bounds = array<i64: 1, 128>}, {transform_indices = @transform_3, window_bounds = array<i64: 16, 128>}]} {
    %c0_i32 = arith.constant 0 : i32
    %0 = arith.cmpi eq, %arg2, %c0_i32 : i32
    %1 = arith.extui %0 : i1 to i32
    %c0_i32_0 = arith.constant 0 : i32
    %2 = arith.cmpi ne, %1, %c0_i32_0 : i32
    scf.if %2 {
      %cst_9 = arith.constant 0.000000e+00 : f32
      %12 = vector.broadcast %cst_9 : f32 to vector<16x128xf32>
      %c0_10 = arith.constant 0 : index
      %c0_11 = arith.constant 0 : index
      %13 = vector.load %arg7[%c0_10, %c0_11] : memref<16x128xf32, #tpu.memory_space<vmem>>, vector<16x128xf32>
      tpu.vector_store %arg7[%c0_10, %c0_11], %12 {strides = array<i32>} : memref<16x128xf32, #tpu.memory_space<vmem>>, vector<16x128xf32>,
    } else {
    }
    %c0 = arith.constant 0 : index
    %c0_1 = arith.constant 0 : index
    %3 = vector.load %arg7[%c0, %c0_1] : memref<16x128xf32, #tpu.memory_space<vmem>>, vector<16x128xf32>
    %c0_2 = arith.constant 0 : index
    %c0_3 = arith.constant 0 : index
    %4 = vector.load %arg3[%c0_2, %c0_3] : memref<16x512xbf16, #tpu.memory_space<vmem>>, vector<16x512xbf16>
    %c0_4 = arith.constant 0 : index
    %c0_5 = arith.constant 0 : index
    %5 = vector.load %arg4[%c0_4, %c0_5] : memref<512x128xbf16, #tpu.memory_space<vmem>>, vector<512x128xbf16>
    %cst = arith.constant dense<0.000000e+00> : vector<16x128xf32>
    %6 = tpu.matmul %4, %5, %cst {dimension_numbers = #tpu.dot_dimension_numbers<[1], [0], [0], [1], [0, 0, 1, 1], [], []>} : vector<16x512xbf16>, vector<512x128xbf16>, vector<16x128xf32> -> vector<16x128xf32>
    %7 = arith.addf %3, %6 : vector<16x128xf32>
    %c0_6 = arith.constant 0 : index
    %c0_7 = arith.constant 0 : index
    %8 = vector.load %arg7[%c0_6, %c0_7] : memref<16x128xf32, #tpu.memory_space<vmem>>, vector<16x128xf32>
    tpu.vector_store %arg7[%c0_6, %c0_7], %7 {strides = array<i32>} : memref<16x128xf32, #tpu.memory_space<vmem>>, vector<16x128xf32>,
    %c5_i32 = arith.constant 5 : i32
    %9 = arith.cmpi eq, %arg2, %c5_i32 : i32
    %10 = arith.extui %9 : i1 to i32
    %c0_i32_8 = arith.constant 0 : i32
    %11 = arith.cmpi ne, %10, %c0_i32_8 : i32
    scf.if %11 {
      %c0_9 = arith.constant 0 : index
      %c0_10 = arith.constant 0 : index
      %12 = vector.load %arg7[%c0_9, %c0_10] : memref<16x128xf32, #tpu.memory_space<vmem>>, vector<16x128xf32>
      %c0_11 = arith.constant 0 : index
      %c0_12 = arith.constant 0 : index
      %13 = vector.load %arg5[%c0_11, %c0_12] : memref<1x128xf32, #tpu.memory_space<vmem>>, vector<1x128xf32>
      %14 = vector.broadcast %13 : vector<1x128xf32> to vector<16x128xf32>
      %15 = arith.addf %12, %14 : vector<16x128xf32>
      %c0_13 = arith.constant 0 : index
      %c0_14 = arith.constant 0 : index
      %16 = vector.load %arg6[%c0_13, %c0_14] : memref<16x128xf32, #tpu.memory_space<vmem>>, vector<16x128xf32>
      tpu.vector_store %arg6[%c0_13, %c0_14], %15 {strides = array<i32>} : memref<16x128xf32, #tpu.memory_space<vmem>>, vector<16x128xf32>,
    } else {
    }
    return
  }
  func.func @transform_0(%arg0: i32, %arg1: i32, %arg2: i32) -> (i32, i32) {
    %c0_i32 = arith.constant 0 : i32
    return %arg0, %arg2 : i32, i32
  }
  func.func @transform_1(%arg0: i32, %arg1: i32, %arg2: i32) -> (i32, i32) {
    %c0_i32 = arith.constant 0 : i32
    return %arg2, %arg1 : i32, i32
  }
  func.func @transform_2(%arg0: i32, %arg1: i32, %arg2: i32) -> (i32, i32) {
    %c0_i32 = arith.constant 0 : i32
    %c0_i32_0 = arith.constant 0 : i32
    return %c0_i32, %arg1 : i32, i32
  }
  func.func @transform_3(%arg0: i32, %arg1: i32, %arg2: i32) -> (i32, i32) {
    %c0_i32 = arith.constant 0 : i32
    return %arg0, %arg1 : i32, i32
  }
}

module attributes {stable_mosaic.version = 11 : i64} {
  func.func @_mm_kernel(%arg0: i32, %arg1: i32, %arg2: i32, %arg3: memref<16x512xbf16, #tpu.memory_space<vmem>>, %arg4: memref<512x128xbf16, #tpu.memory_space<vmem>>, %arg5: memref<1x128xf32, #tpu.memory_space<vmem>>, %arg6: memref<16x128xf32, #tpu.memory_space<vmem>>, %arg7: memref<16x128xf32, #tpu.memory_space<vmem>>) attributes {dimension_semantics = [#tpu.dimension_semantics<parallel>, #tpu.dimension_semantics<parallel>, #tpu.dimension_semantics<arbitrary>], iteration_bounds = array<i64: 1, 1, 17>, scalar_prefetch = 0 : i64, scratch_operands = 1 : i64, tpu.core_type = #tpu.core_type<tc>, window_params = [{transform_indices = @transform_0, window_bounds = array<i64: 16, 512>}, {transform_indices = @transform_1, window_bounds = array<i64: 512, 128>}, {transform_indices = @transform_2, window_bounds = array<i64: 1, 128>}, {transform_indices = @transform_3, window_bounds = array<i64: 16, 128>}]} {
    %c0_i32 = arith.constant 0 : i32
    %0 = arith.cmpi eq, %arg2, %c0_i32 : i32
    %1 = arith.extui %0 : i1 to i32
    %c0_i32_0 = arith.constant 0 : i32
    %2 = arith.cmpi ne, %1, %c0_i32_0 : i32
    scf.if %2 {
      %cst_9 = arith.constant 0.000000e+00 : f32
      %12 = vector.broadcast %cst_9 : f32 to vector<16x128xf32>
      %c0_10 = arith.constant 0 : index
      %c0_11 = arith.constant 0 : index
      %13 = vector.load %arg7[%c0_10, %c0_11] : memref<16x128xf32, #tpu.memory_space<vmem>>, vector<16x128xf32>
      tpu.vector_store %arg7[%c0_10, %c0_11], %12 {strides = array<i32>} : memref<16x128xf32, #tpu.memory_space<vmem>>, vector<16x128xf32>,
    } else {
    }
    %c0 = arith.constant 0 : index
    %c0_1 = arith.constant 0 : index
    %3 = vector.load %arg7[%c0, %c0_1] : memref<16x128xf32, #tpu.memory_space<vmem>>, vector<16x128xf32>
    %c0_2 = arith.constant 0 : index
    %c0_3 = arith.constant 0 : index
    %4 = vector.load %arg3[%c0_2, %c0_3] : memref<16x512xbf16, #tpu.memory_space<vmem>>, vector<16x512xbf16>
    %c0_4 = arith.constant 0 : index
    %c0_5 = arith.constant 0 : index
    %5 = vector.load %arg4[%c0_4, %c0_5] : memref<512x128xbf16, #tpu.memory_space<vmem>>, vector<512x128xbf16>
    %cst = arith.constant dense<0.000000e+00> : vector<16x128xf32>
    %6 = tpu.matmul %4, %5, %cst {dimension_numbers = #tpu.dot_dimension_numbers<[1], [0], [0], [1], [0, 0, 1, 1], [], []>} : vector<16x512xbf16>, vector<512x128xbf16>, vector<16x128xf32> -> vector<16x128xf32>
    %7 = arith.addf %3, %6 : vector<16x128xf32>
    %c0_6 = arith.constant 0 : index
    %c0_7 = arith.constant 0 : index
    %8 = vector.load %arg7[%c0_6, %c0_7] : memref<16x128xf32, #tpu.memory_space<vmem>>, vector<16x128xf32>
    tpu.vector_store %arg7[%c0_6, %c0_7], %7 {strides = array<i32>} : memref<16x128xf32, #tpu.memory_space<vmem>>, vector<16x128xf32>,
    %c16_i32 = arith.constant 16 : i32
    %9 = arith.cmpi eq, %arg2, %c16_i32 : i32
    %10 = arith.extui %9 : i1 to i32
    %c0_i32_8 = arith.constant 0 : i32
    %11 = arith.cmpi ne, %10, %c0_i32_8 : i32
    scf.if %11 {
      %c0_9 = arith.constant 0 : index
      %c0_10 = arith.constant 0 : index
      %12 = vector.load %arg7[%c0_9, %c0_10] : memref<16x128xf32, #tpu.memory_space<vmem>>, vector<16x128xf32>
      %c0_11 = arith.constant 0 : index
      %c0_12 = arith.constant 0 : index
      %13 = vector.load %arg5[%c0_11, %c0_12] : memref<1x128xf32, #tpu.memory_space<vmem>>, vector<1x128xf32>
      %14 = vector.broadcast %13 : vector<1x128xf32> to vector<16x128xf32>
      %15 = arith.addf %12, %14 : vector<16x128xf32>
      %cst_13 = arith.constant 0.000000e+00 : f32
      %16 = vector.broadcast %cst_13 : f32 to vector<16x128xf32>
      %17 = arith.maximumf %15, %16 : vector<16x128xf32>
      %c0_14 = arith.constant 0 : index
      %c0_15 = arith.constant 0 : index
      %18 = vector.load %arg6[%c0_14, %c0_15] : memref<16x128xf32, #tpu.memory_space<vmem>>, vector<16x128xf32>
      tpu.vector_store %arg6[%c0_14, %c0_15], %17 {strides = array<i32>} : memref<16x128xf32, #tpu.memory_space<vmem>>, vector<16x128xf32>,
    } else {
    }
    return
  }
  func.func @transform_0(%arg0: i32, %arg1: i32, %arg2: i32) -> (i32, i32) {
    %c0_i32 = arith.constant 0 : i32
    return %arg0, %arg2 : i32, i32
  }
  func.func @transform_1(%arg0: i32, %arg1: i32, %arg2: i32) -> (i32, i32) {
    %c0_i32 = arith.constant 0 : i32
    return %arg2, %arg1 : i32, i32
  }
  func.func @transform_2(%arg0: i32, %arg1: i32, %arg2: i32) -> (i32, i32) {
    %c0_i32 = arith.constant 0 : i32
    %c0_i32_0 = arith.constant 0 : i32
    return %c0_i32, %arg1 : i32, i32
  }
  func.func @transform_3(%arg0: i32, %arg1: i32, %arg2: i32) -> (i32, i32) {
    %c0_i32 = arith.constant 0 : i32
    return %arg0, %arg1 : i32, i32
  }
}

module attributes {stable_mosaic.version = 11 : i64} {
  func.func @_mlp3_kernel(%arg0: memref<16x128xbf16, #tpu.memory_space<vmem>>, %arg1: memref<128x256xbf16, #tpu.memory_space<vmem>>, %arg2: memref<1x256xf32, #tpu.memory_space<vmem>>, %arg3: memref<256x256xbf16, #tpu.memory_space<vmem>>, %arg4: memref<1x256xf32, #tpu.memory_space<vmem>>, %arg5: memref<256x128xbf16, #tpu.memory_space<vmem>>, %arg6: memref<1x128xf32, #tpu.memory_space<vmem>>, %arg7: memref<16x128xf32, #tpu.memory_space<vmem>>) attributes {dimension_semantics = [], scalar_prefetch = 0 : i64, scratch_operands = 0 : i64, tpu.core_type = #tpu.core_type<tc>} {
    %c0 = arith.constant 0 : index
    %c0_0 = arith.constant 0 : index
    %0 = vector.load %arg0[%c0, %c0_0] : memref<16x128xbf16, #tpu.memory_space<vmem>>, vector<16x128xbf16>
    %c0_1 = arith.constant 0 : index
    %c0_2 = arith.constant 0 : index
    %1 = vector.load %arg1[%c0_1, %c0_2] : memref<128x256xbf16, #tpu.memory_space<vmem>>, vector<128x256xbf16>
    %cst = arith.constant dense<0.000000e+00> : vector<16x256xf32>
    %2 = tpu.matmul %0, %1, %cst {dimension_numbers = #tpu.dot_dimension_numbers<[1], [0], [0], [1], [0, 0, 1, 1], [], []>} : vector<16x128xbf16>, vector<128x256xbf16>, vector<16x256xf32> -> vector<16x256xf32>
    %c0_3 = arith.constant 0 : index
    %c0_4 = arith.constant 0 : index
    %3 = vector.load %arg2[%c0_3, %c0_4] : memref<1x256xf32, #tpu.memory_space<vmem>>, vector<1x256xf32>
    %4 = vector.broadcast %3 : vector<1x256xf32> to vector<16x256xf32>
    %5 = arith.addf %2, %4 : vector<16x256xf32>
    %cst_5 = arith.constant 0.000000e+00 : f32
    %6 = vector.broadcast %cst_5 : f32 to vector<16x256xf32>
    %7 = arith.maximumf %5, %6 : vector<16x256xf32>
    %8 = arith.truncf %7 : vector<16x256xf32> to vector<16x256xbf16>
    %c0_6 = arith.constant 0 : index
    %c0_7 = arith.constant 0 : index
    %9 = vector.load %arg3[%c0_6, %c0_7] : memref<256x256xbf16, #tpu.memory_space<vmem>>, vector<256x256xbf16>
    %cst_8 = arith.constant dense<0.000000e+00> : vector<16x256xf32>
    %10 = tpu.matmul %8, %9, %cst_8 {dimension_numbers = #tpu.dot_dimension_numbers<[1], [0], [0], [1], [0, 0, 1, 1], [], []>} : vector<16x256xbf16>, vector<256x256xbf16>, vector<16x256xf32> -> vector<16x256xf32>
    %c0_9 = arith.constant 0 : index
    %c0_10 = arith.constant 0 : index
    %11 = vector.load %arg4[%c0_9, %c0_10] : memref<1x256xf32, #tpu.memory_space<vmem>>, vector<1x256xf32>
    %12 = vector.broadcast %11 : vector<1x256xf32> to vector<16x256xf32>
    %13 = arith.addf %10, %12 : vector<16x256xf32>
    %cst_11 = arith.constant 0.000000e+00 : f32
    %14 = vector.broadcast %cst_11 : f32 to vector<16x256xf32>
    %15 = arith.maximumf %13, %14 : vector<16x256xf32>
    %16 = arith.truncf %15 : vector<16x256xf32> to vector<16x256xbf16>
    %c0_12 = arith.constant 0 : index
    %c0_13 = arith.constant 0 : index
    %17 = vector.load %arg5[%c0_12, %c0_13] : memref<256x128xbf16, #tpu.memory_space<vmem>>, vector<256x128xbf16>
    %cst_14 = arith.constant dense<0.000000e+00> : vector<16x128xf32>
    %18 = tpu.matmul %16, %17, %cst_14 {dimension_numbers = #tpu.dot_dimension_numbers<[1], [0], [0], [1], [0, 0, 1, 1], [], []>} : vector<16x256xbf16>, vector<256x128xbf16>, vector<16x128xf32> -> vector<16x128xf32>
    %c0_15 = arith.constant 0 : index
    %c0_16 = arith.constant 0 : index
    %19 = vector.load %arg6[%c0_15, %c0_16] : memref<1x128xf32, #tpu.memory_space<vmem>>, vector<1x128xf32>
    %20 = vector.broadcast %19 : vector<1x128xf32> to vector<16x128xf32>
    %21 = arith.addf %18, %20 : vector<16x128xf32>
    %cst_17 = arith.constant 0.000000e+00 : f32
    %22 = vector.broadcast %cst_17 : f32 to vector<16x128xf32>
    %23 = arith.maximumf %21, %22 : vector<16x128xf32>
    %c0_18 = arith.constant 0 : index
    %c0_19 = arith.constant 0 : index
    %24 = vector.load %arg7[%c0_18, %c0_19] : memref<16x128xf32, #tpu.memory_space<vmem>>, vector<16x128xf32>
    tpu.vector_store %arg7[%c0_18, %c0_19], %23 {strides = array<i32>} : memref<16x128xf32, #tpu.memory_space<vmem>>, vector<16x128xf32>,
    return
  }
}

module attributes {stable_mosaic.version = 11 : i64} {
  func.func @_mlp3_kernel(%arg0: memref<16x128xbf16, #tpu.memory_space<vmem>>, %arg1: memref<128x128xbf16, #tpu.memory_space<vmem>>, %arg2: memref<1x128xf32, #tpu.memory_space<vmem>>, %arg3: memref<128x128xbf16, #tpu.memory_space<vmem>>, %arg4: memref<1x128xf32, #tpu.memory_space<vmem>>, %arg5: memref<128x128xbf16, #tpu.memory_space<vmem>>, %arg6: memref<1x128xf32, #tpu.memory_space<vmem>>, %arg7: memref<16x128xf32, #tpu.memory_space<vmem>>) attributes {dimension_semantics = [], scalar_prefetch = 0 : i64, scratch_operands = 0 : i64, tpu.core_type = #tpu.core_type<tc>} {
    %c0 = arith.constant 0 : index
    %c0_0 = arith.constant 0 : index
    %0 = vector.load %arg0[%c0, %c0_0] : memref<16x128xbf16, #tpu.memory_space<vmem>>, vector<16x128xbf16>
    %c0_1 = arith.constant 0 : index
    %c0_2 = arith.constant 0 : index
    %1 = vector.load %arg1[%c0_1, %c0_2] : memref<128x128xbf16, #tpu.memory_space<vmem>>, vector<128x128xbf16>
    %cst = arith.constant dense<0.000000e+00> : vector<16x128xf32>
    %2 = tpu.matmul %0, %1, %cst {dimension_numbers = #tpu.dot_dimension_numbers<[1], [0], [0], [1], [0, 0, 1, 1], [], []>} : vector<16x128xbf16>, vector<128x128xbf16>, vector<16x128xf32> -> vector<16x128xf32>
    %c0_3 = arith.constant 0 : index
    %c0_4 = arith.constant 0 : index
    %3 = vector.load %arg2[%c0_3, %c0_4] : memref<1x128xf32, #tpu.memory_space<vmem>>, vector<1x128xf32>
    %4 = vector.broadcast %3 : vector<1x128xf32> to vector<16x128xf32>
    %5 = arith.addf %2, %4 : vector<16x128xf32>
    %cst_5 = arith.constant 0.000000e+00 : f32
    %6 = vector.broadcast %cst_5 : f32 to vector<16x128xf32>
    %7 = arith.maximumf %5, %6 : vector<16x128xf32>
    %8 = arith.truncf %7 : vector<16x128xf32> to vector<16x128xbf16>
    %c0_6 = arith.constant 0 : index
    %c0_7 = arith.constant 0 : index
    %9 = vector.load %arg3[%c0_6, %c0_7] : memref<128x128xbf16, #tpu.memory_space<vmem>>, vector<128x128xbf16>
    %cst_8 = arith.constant dense<0.000000e+00> : vector<16x128xf32>
    %10 = tpu.matmul %8, %9, %cst_8 {dimension_numbers = #tpu.dot_dimension_numbers<[1], [0], [0], [1], [0, 0, 1, 1], [], []>} : vector<16x128xbf16>, vector<128x128xbf16>, vector<16x128xf32> -> vector<16x128xf32>
    %c0_9 = arith.constant 0 : index
    %c0_10 = arith.constant 0 : index
    %11 = vector.load %arg4[%c0_9, %c0_10] : memref<1x128xf32, #tpu.memory_space<vmem>>, vector<1x128xf32>
    %12 = vector.broadcast %11 : vector<1x128xf32> to vector<16x128xf32>
    %13 = arith.addf %10, %12 : vector<16x128xf32>
    %cst_11 = arith.constant 0.000000e+00 : f32
    %14 = vector.broadcast %cst_11 : f32 to vector<16x128xf32>
    %15 = arith.maximumf %13, %14 : vector<16x128xf32>
    %16 = arith.truncf %15 : vector<16x128xf32> to vector<16x128xbf16>
    %c0_12 = arith.constant 0 : index
    %c0_13 = arith.constant 0 : index
    %17 = vector.load %arg5[%c0_12, %c0_13] : memref<128x128xbf16, #tpu.memory_space<vmem>>, vector<128x128xbf16>
    %cst_14 = arith.constant dense<0.000000e+00> : vector<16x128xf32>
    %18 = tpu.matmul %16, %17, %cst_14 {dimension_numbers = #tpu.dot_dimension_numbers<[1], [0], [0], [1], [0, 0, 1, 1], [], []>} : vector<16x128xbf16>, vector<128x128xbf16>, vector<16x128xf32> -> vector<16x128xf32>
    %c0_15 = arith.constant 0 : index
    %c0_16 = arith.constant 0 : index
    %19 = vector.load %arg6[%c0_15, %c0_16] : memref<1x128xf32, #tpu.memory_space<vmem>>, vector<1x128xf32>
    %20 = vector.broadcast %19 : vector<1x128xf32> to vector<16x128xf32>
    %21 = arith.addf %18, %20 : vector<16x128xf32>
    %c0_17 = arith.constant 0 : index
    %c0_18 = arith.constant 0 : index
    %22 = vector.load %arg7[%c0_17, %c0_18] : memref<16x128xf32, #tpu.memory_space<vmem>>, vector<16x128xf32>
    tpu.vector_store %arg7[%c0_17, %c0_18], %21 {strides = array<i32>} : memref<16x128xf32, #tpu.memory_space<vmem>>, vector<16x128xf32>,
    return
  }
}

</mosaic_0001>

<bundles_post_ra>
// kernel: squeeze.8
= control target key start
LH: loop header
LB: loop body
LE: loop exit
PB: predicated region body
PF: predicated region fallthrough
CT: control target
= control target key end

     0   :  { %s207_s8 = smov 104   ;;  %vm20_vm0 = vcmask 64512   ;;  %s208_s9 = smov 112   ;;  %v221_v25 = vmov 0.0   ;;  %s275_s0 = inlined_call_operand.vmem [shape: bf16[128], index: 0, kind: input, shape index: {}]   ;;  %s276_s1 = inlined_call_operand.vmem [shape: bf16[2,2,2,2,8], index: 1, kind: output, shape index: {}]  }
   0x1   :  { %v15_v0 = vld [vmem:[%s275_s0] sm:$0x1]  ;;  %s206_s0 = smov 120   ;;  %s209_s10 = smov 96  }
   0x2   :  { %v16_v1 = vunpack.c.l.bf16 %v15_v0  ;;  %s210_s11 = smov 88   ;;  %s211_s12 = smov 80  }
   0x3   :  { %s212_s13 = smov 72   ;;  %s213_s14 = smov 64  }
   0x4   :  { %18 = vst [vmem:[#allocation1] sm:$0x3] %v16_v1  ;;  %s214_s15 = smov 56   ;;  %s215_s16 = smov 48  }
   0x5   :  { %s216_s17 = smov 40   ;;  %s217_s18 = smov 32  }
   0x6   :  { %s218_s19 = smov 24   ;;  %s219_s20 = smov 16  }
   0x7   :  { %s220_s21 = smov 8  }
   0xb   :  { %v22_v2 = vld [vmem:[#allocation1] sm:$0x1]  }
   0xc   :  { %v34_v3 = vld [vmem:[#allocation1] sm:$0x1]   ;;  %23 = vrot.lane.b32.xlu0 %v22_v2, %s206_s0 }
   0xd   :  { %35 = vrot.lane.b32.xlu1 %v34_v3, %s207_s8  ;;  %v28_v4 = vld [vmem:[#allocation1] sm:$0x1]  }
   0xe   :  { %v40_v5 = vld [vmem:[#allocation1] sm:$0x1]  }
   0xf   :  { %v19_v6 = vld [vmem:[#allocation1] sm:$0x1]  }
  0x10   :  { %29 = vrot.lane.b32.xlu0 %v28_v4, %s208_s9  ;;  %v46_v7 = vld [vmem:[#allocation1] sm:$0x1]   ;;  %21 = vst.msk [vmem:[#allocation0] sm:$0x1] %vm20_vm0, %v19_v6  }
  0x11   :  { %41 = vrot.lane.b32.xlu1 %v40_v5, %s209_s10  ;;  %v52_v8 = vld [vmem:[#allocation1] sm:$0x1]  }
  0x12   :  { %v58_v9 = vld [vmem:[#allocation1] sm:$0x1]  }
  0x13   :  { %v64_v10 = vld [vmem:[#allocation1] sm:$0x1]  }
  0x14   :  { %47 = vrot.lane.b32.xlu0 %v46_v7, %s210_s11  ;;  %v70_v11 = vld [vmem:[#allocation1] sm:$0x1]  }
  0x15   :  { %53 = vrot.lane.b32.xlu1 %v52_v8, %s211_s12  ;;  %v76_v12 = vld [vmem:[#allocation1] sm:$0x1]  }
  0x16   :  { %v82_v13 = vld [vmem:[#allocation1] sm:$0x1]  }
  0x17   :  { %v88_v14 = vld [vmem:[#allocation1] sm:$0x1]  }
  0x18   :  { %59 = vrot.lane.b32.xlu0 %v58_v9, %s212_s13  ;;  %v94_v15 = vld [vmem:[#allocation1] sm:$0x1]  }
  0x19   :  { %65 = vrot.lane.b32.xlu1 %v64_v10, %s213_s14  ;;  %v100_v16 = vld [vmem:[#allocation1] sm:$0x1]  }
  0x1a   :  { %v106_v17 = vld [vmem:[#allocation1] sm:$0x1]  }
  0x1c   :  { %71 = vrot.lane.b32.xlu0 %v70_v11, %s214_s15 }
  0x1d   :  { %77 = vrot.lane.b32.xlu1 %v76_v12, %s215_s16 }
  0x20   :  { %83 = vrot.lane.b32.xlu0 %v82_v13, %s216_s17 }
  0x21   :  { %89 = vrot.lane.b32.xlu1 %v88_v14, %s217_s18 }
  0x24   :  { %95 = vrot.lane.b32.xlu0 %v94_v15, %s218_s19 }
  0x25   :  { %101 = vrot.lane.b32.xlu1 %v100_v16, %s219_s20 }
  0x28   :  { %107 = vrot.lane.b32.xlu0 %v106_v17, %s220_s21 }
  0x7e   :  { %v24_v18 = vpop.permute.xlu0 %23  }
  0x7f   :  { %v36_v19 = vpop.permute.xlu1 %35   ;;  %27 = vst.msk [vmem:[#allocation0 + $0x1] sm:$0x1] %vm20_vm0, %v24_v18  }
  0x80   :  { %39 = vst.msk [vmem:[#allocation0 + $0x9] sm:$0x1] %vm20_vm0, %v36_v19  }
  0x82   :  { %v30_v20 = vpop.permute.xlu0 %29  }
  0x83   :  { %v42_v21 = vpop.permute.xlu1 %41   ;;  %33 = vst.msk [vmem:[#allocation0 + $0x8] sm:$0x1] %vm20_vm0, %v30_v20  }
  0x84   :  { %45 = vst.msk [vmem:[#allocation0 + $0x10] sm:$0x1] %vm20_vm0, %v42_v21  }
  0x86   :  { %v117_v22 = vld [vmem:[#allocation0] sm:$0x3]  ;;  %v48_v23 = vpop.permute.xlu0 %47  }
  0x87   :  { %v54_v24 = vpop.permute.xlu1 %53   ;;  %v118_v26 = vpack.c.bf16 %v221_v25, %v117_v22  ;;  %51 = vst.msk [vmem:[#allocation0 + $0x11] sm:$0x1] %vm20_vm0, %v48_v23  }
  0x88   :  { %57 = vst.msk [vmem:[#allocation0 + $0x18] sm:$0x1] %vm20_vm0, %v54_v24  }
  0x89   :  { %121 = vst [vmem:[%s276_s1] sm:$0x1] %v118_v26 }
  0x8a   :  { %v123_v27 = vld [vmem:[#allocation0 + $0x8] sm:$0x3]  ;;  %v60_v28 = vpop.permute.xlu0 %59  }
  0x8b   :  { %v66_v29 = vpop.permute.xlu1 %65   ;;  %v124_v30 = vpack.c.bf16 %v221_v25, %v123_v27  ;;  %63 = vst.msk [vmem:[#allocation0 + $0x19] sm:$0x1] %vm20_vm0, %v60_v28  }
  0x8c   :  { %69 = vst.msk [vmem:[#allocation0 + $0x20] sm:$0x1] %vm20_vm0, %v66_v29  }
  0x8d   :  { %183 = vst [vmem:[%s276_s1 + $0x1] sm:$0x1] %v124_v30 }
  0x8e   :  { %v130_v31 = vld [vmem:[#allocation0 + $0x10] sm:$0x3]  ;;  %v72_v32 = vpop.permute.xlu0 %71  }
  0x8f   :  { %v78_v33 = vpop.permute.xlu1 %77   ;;  %v131_v34 = vpack.c.bf16 %v221_v25, %v130_v31  ;;  %75 = vst.msk [vmem:[#allocation0 + $0x21] sm:$0x1] %vm20_vm0, %v72_v32  }
  0x90   :  { %81 = vst.msk [vmem:[#allocation0 + $0x28] sm:$0x1] %vm20_vm0, %v78_v33  }
  0x91   :  { %184 = vst [vmem:[%s276_s1 + $0x2] sm:$0x1] %v131_v34 }
  0x92   :  { %v138_v35 = vld [vmem:[#allocation0 + $0x18] sm:$0x3]  ;;  %v84_v36 = vpop.permute.xlu0 %83  }
  0x93   :  { %v90_v37 = vpop.permute.xlu1 %89   ;;  %v139_v38 = vpack.c.bf16 %v221_v25, %v138_v35  ;;  %87 = vst.msk [vmem:[#allocation0 + $0x29] sm:$0x1] %vm20_vm0, %v84_v36  }
  0x94   :  { %93 = vst.msk [vmem:[#allocation0 + $0x30] sm:$0x1] %vm20_vm0, %v90_v37  }
  0x95   :  { %185 = vst [vmem:[%s276_s1 + $0x3] sm:$0x1] %v139_v38 }
  0x96   :  { %v146_v39 = vld [vmem:[#allocation0 + $0x20] sm:$0x3]  ;;  %v96_v40 = vpop.permute.xlu0 %95  }
  0x97   :  { %v102_v41 = vpop.permute.xlu1 %101   ;;  %v147_v42 = vpack.c.bf16 %v221_v25, %v146_v39  ;;  %99 = vst.msk [vmem:[#allocation0 + $0x31] sm:$0x1] %vm20_vm0, %v96_v40  }
  0x98   :  { %105 = vst.msk [vmem:[#allocation0 + $0x38] sm:$0x1] %vm20_vm0, %v102_v41  }
  0x99   :  { %186 = vst [vmem:[%s276_s1 + $0x4] sm:$0x1] %v147_v42 }
  0x9a   :  { %v154_v43 = vld [vmem:[#allocation0 + $0x28] sm:$0x3]  ;;  %v108_v44 = vpop.permute.xlu0 %107  }
  0x9b   :  { %v155_v45 = vpack.c.bf16 %v221_v25, %v154_v43  ;;  %111 = vst.msk [vmem:[#allocation0 + $0x39] sm:$0x1] %vm20_vm0, %v108_v44  }
  0x9d   :  { %187 = vst [vmem:[%s276_s1 + $0x5] sm:$0x1] %v155_v45 }
  0x9e   :  { %v162_v46 = vld [vmem:[#allocation0 + $0x30] sm:$0x3] }
  0x9f   :  { %v163_v47 = vpack.c.bf16 %v221_v25, %v162_v46 }
  0xa1   :  { %188 = vst [vmem:[%s276_s1 + $0x6] sm:$0x1] %v163_v47 }
  0xa2   :  { %v170_v48 = vld [vmem:[#allocation0 + $0x38] sm:$0x3] }
  0xa3   :  { %v171_v49 = vpack.c.bf16 %v221_v25, %v170_v48 }
  0xa5   :  { %189 = vst [vmem:[%s276_s1 + $0x7] sm:$0x1] %v171_v49 }

// kernel: _lambda_.42
= control target key start
LH: loop header
LB: loop body
LE: loop exit
PB: predicated region body
PF: predicated region fallthrough
CT: control target
= control target key end

     0   :  { %s37_s0 = inlined_call_operand.vmem [shape: f32[8,128], index: 0, kind: input, shape index: {}]   ;;  %s38_s1 = inlined_call_operand.vmem [shape: f32[1,128], index: 1, kind: output, shape index: {}]  }
   0x1   :  { %v8_v0 = vld [vmem:[%s37_s0] sm:$0xff] }
   0x2   :  { %v9_v1 = vmax.f32 %v8_v0, 0.0 }
   0x4   :  { %v10_v2 = vrot.slane %v9_v1, 4 }
   0x6   :  { %v11_v3 = vmax.f32 %v9_v1, %v10_v2 }
   0x8   :  { %v12_v4 = vrot.slane %v11_v3, 2 }
   0xa   :  { %v13_v5 = vmax.f32 %v11_v3, %v12_v4 }
   0xc   :  { %v14_v6 = vrot.slane %v13_v5, 1 }
   0xe   :  { %v15_v7 = vmax.f32 %v13_v5, %v14_v6 }
  0x10   :  { %16 = vst [vmem:[%s38_s1] sm:$0x1] %v15_v7 }

// kernel: _lambda_.41
= control target key start
LH: loop header
LB: loop body
LE: loop exit
PB: predicated region body
PF: predicated region fallthrough
CT: control target
= control target key end

     0   :  { %s586_s1 = inlined_call_operand.vmem [shape: bf16[128,128], index: 1, kind: input, shape index: {}]   ;;  %s587_s0 = inlined_call_operand.vmem [shape: bf16[128,128], index: 0, kind: input, shape index: {}]   ;;  %s588_s2 = inlined_call_operand.vmem [shape: f32[1,128], index: 2, kind: input, shape index: {}]   ;;  %s589_s3 = inlined_call_operand.vmem [shape: f32[128,128], index: 3, kind: output, shape index: {}]  }
   0x1   :  { %v451_v0 = vld [vmem:[%s586_s1 + $0x38] sm:$0xff]   ;;  %v452_v1 = vld [vmem:[%s586_s1 + $0x30] sm:$0xff]   ;;  %v453_v2 = vld [vmem:[%s586_s1 + $0x28] sm:$0xff]  }
   0x2   :  { %403 = vmatprep.subr.bf16.mxu0 %v451_v0  ;;  %435 = vmatprep.subr.bf16.mxu1 %v451_v0  ;;  %v454_v3 = vld [vmem:[%s586_s1 + $0x20] sm:$0xff]   ;;  %v455_v6 = vld [vmem:[%s586_s1 + $0x18] sm:$0xff]   ;;  %v456_v7 = vld [vmem:[%s586_s1 + $0x10] sm:$0xff]  }
   0x3   :  { %404 = vmatpush3.bf16.msra.mxu0 %v451_v0  ;;  %443 = vmatpush3.bf16.msra.mxu1 %v451_v0  ;;  %v459_v4 = vld [vmem:[%s587_s0] sm:$0xff]   ;;  %v457_v8 = vld [vmem:[%s586_s1 + $0x8] sm:$0xff]   ;;  %v463_v12 = vld [vmem:[%s587_s0 + $0x10] sm:$0xff]  }
   0x4   :  { %405 = vmatprep.subr.bf16.mxu0 %v452_v1  ;;  %436 = vmatprep.subr.bf16.mxu1 %v452_v1  ;;  %v460_v5 = vld [vmem:[%s587_s0 + $0x20] sm:$0xff]   ;;  %v461_v10 = vld [vmem:[%s587_s0 + $0x8] sm:$0xff]   ;;  %v464_v13 = vld [vmem:[%s587_s0 + $0x30] sm:$0xff]  }
   0x5   :  { %419 = vmatprep.mubr.bf16.mxu0 %v459_v4  ;;  %427 = vmatprep.mubr.bf16.mxu1 %v460_v5  ;;  %v458_v9 = vld [vmem:[%s586_s1] sm:$0xff]   ;;  %v462_v11 = vld [vmem:[%s587_s0 + $0x28] sm:$0xff]   ;;  %v465_v14 = vld [vmem:[%s587_s0 + $0x18] sm:$0xff]  }
   0x6   :  { %v466_v15 = vld [vmem:[%s587_s0 + $0x38] sm:$0xff]   ;;  %v386_v16 = vld [vmem:[%s588_s2] ss:$0 sm:$0xff] }
   0x7   :  { %406 = vmatpush3.bf16.msra.mxu0 %v452_v1  ;;  %444 = vmatpush3.bf16.msra.mxu1 %v452_v1 }
   0x8   :  { %407 = vmatprep.subr.bf16.mxu0 %v453_v2  ;;  %437 = vmatprep.subr.bf16.mxu1 %v453_v2 }
   0xb   :  { %408 = vmatpush3.bf16.msra.mxu0 %v453_v2  ;;  %445 = vmatpush3.bf16.msra.mxu1 %v453_v2 }
   0xc   :  { %409 = vmatprep.subr.bf16.mxu0 %v454_v3  ;;  %438 = vmatprep.subr.bf16.mxu1 %v454_v3 }
   0xf   :  { %410 = vmatpush3.bf16.msra.mxu0 %v454_v3  ;;  %446 = vmatpush3.bf16.msra.mxu1 %v454_v3 }
  0x10   :  { %411 = vmatprep.subr.bf16.mxu0 %v455_v6  ;;  %439 = vmatprep.subr.bf16.mxu1 %v455_v6 }
  0x13   :  { %412 = vmatpush3.bf16.msra.mxu0 %v455_v6  ;;  %447 = vmatpush3.bf16.msra.mxu1 %v455_v6 }
  0x14   :  { %413 = vmatprep.subr.bf16.mxu0 %v456_v7  ;;  %440 = vmatprep.subr.bf16.mxu1 %v456_v7 }
  0x17   :  { %414 = vmatpush3.bf16.msra.mxu0 %v456_v7  ;;  %448 = vmatpush3.bf16.msra.mxu1 %v456_v7 }
  0x18   :  { %415 = vmatprep.subr.bf16.mxu0 %v457_v8  ;;  %441 = vmatprep.subr.bf16.mxu1 %v457_v8 }
  0x1b   :  { %416 = vmatpush3.bf16.msra.mxu0 %v457_v8  ;;  %449 = vmatpush3.bf16.msra.mxu1 %v457_v8 }
  0x1c   :  { %417 = vmatprep.subr.bf16.mxu0 %v458_v9  ;;  %442 = vmatprep.subr.bf16.mxu1 %v458_v9 }
  0x1f   :  { %418 = vmatpush3.bf16.msra.mxu0 %v458_v9  ;;  %450 = vmatpush3.bf16.msra.mxu1 %v458_v9 }
  0x22   :  { %420 = vmatmul.mubr.bf16.vlgmr.msra.gmra.mxu0 %v461_v10  ;;  %428 = vmatmul.mubr.bf16.vlgmr.msra.gmra.mxu1 %v462_v11 }
  0x23   :  { %423 = vmatprep.mubr.bf16.mxu0 %v463_v12  ;;  %431 = vmatprep.mubr.bf16.mxu1 %v464_v13 }
  0x2a   :  { %424 = vmatmul.mubr.bf16.gmra.mxu0 %v465_v14  ;;  %432 = vmatmul.mubr.bf16.gmra.mxu1 %v466_v15 }
  0xe2   :  { %v421_v17 = vpop.f32.mrf.mxu0  ;;  %v429_v18 = vpop.f32.mrf.mxu1 }
  0xe3   :  { %v336_v19 = vadd.f32 %v421_v17, %v386_v16  ;;  %v344_v20 = vadd.f32 %v429_v18, %v386_v16 }
  0xe4   :  { %v213_v21 = vpop.f32.mrf.mxu0  ;;  %v245_v22 = vpop.f32.mrf.mxu1 }
  0xe5   :  { %352 = vst [vmem:[%s589_s3 + $0x10] sm:$0xff] %v336_v19  ;;  %360 = vst [vmem:[%s589_s3 + $0x50] sm:$0xff] %v344_v20  ;;  %v334_v23 = vadd.f32 %v386_v16, %v213_v21  ;;  %v342_v24 = vadd.f32 %v386_v16, %v245_v22 }
  0xe6   :  { %v422_v25 = vpop.f32.mrf.mxu0  ;;  %v430_v26 = vpop.f32.mrf.mxu1 }
  0xe7   :  { %350 = vst [vmem:[%s589_s3] sm:$0xff] %v334_v23  ;;  %358 = vst [vmem:[%s589_s3 + $0x40] sm:$0xff] %v342_v24  ;;  %v337_v27 = vadd.f32 %v422_v25, %v386_v16  ;;  %v345_v28 = vadd.f32 %v430_v26, %v386_v16 }
  0xe8   :  { %v216_v29 = vpop.f32.mrf.mxu0  ;;  %v248_v30 = vpop.f32.mrf.mxu1 }
  0xe9   :  { %353 = vst [vmem:[%s589_s3 + $0x18] sm:$0xff] %v337_v27  ;;  %361 = vst [vmem:[%s589_s3 + $0x58] sm:$0xff] %v345_v28  ;;  %v335_v31 = vadd.f32 %v386_v16, %v216_v29  ;;  %v343_v32 = vadd.f32 %v386_v16, %v248_v30 }
  0xea   :  { %v425_v33 = vpop.f32.mrf.mxu0  ;;  %v433_v34 = vpop.f32.mrf.mxu1 }
  0xeb   :  { %351 = vst [vmem:[%s589_s3 + $0x8] sm:$0xff] %v335_v31  ;;  %359 = vst [vmem:[%s589_s3 + $0x48] sm:$0xff] %v343_v32  ;;  %v340_v35 = vadd.f32 %v425_v33, %v386_v16  ;;  %v348_v36 = vadd.f32 %v433_v34, %v386_v16 }
  0xec   :  { %v229_v37 = vpop.f32.mrf.mxu0  ;;  %v261_v38 = vpop.f32.mrf.mxu1 }
  0xed   :  { %356 = vst [vmem:[%s589_s3 + $0x30] sm:$0xff] %v340_v35  ;;  %364 = vst [vmem:[%s589_s3 + $0x70] sm:$0xff] %v348_v36  ;;  %v338_v39 = vadd.f32 %v386_v16, %v229_v37  ;;  %v346_v40 = vadd.f32 %v386_v16, %v261_v38 }
  0xee   :  { %v426_v41 = vpop.f32.mrf.mxu0  ;;  %v434_v42 = vpop.f32.mrf.mxu1 }
  0xef   :  { %354 = vst [vmem:[%s589_s3 + $0x20] sm:$0xff] %v338_v39  ;;  %362 = vst [vmem:[%s589_s3 + $0x60] sm:$0xff] %v346_v40  ;;  %v341_v43 = vadd.f32 %v426_v41, %v386_v16  ;;  %v349_v44 = vadd.f32 %v434_v42, %v386_v16 }
  0xf0   :  { %v232_v45 = vpop.f32.mrf.mxu0  ;;  %v264_v46 = vpop.f32.mrf.mxu1 }
  0xf1   :  { %357 = vst [vmem:[%s589_s3 + $0x38] sm:$0xff] %v341_v43  ;;  %365 = vst [vmem:[%s589_s3 + $0x78] sm:$0xff] %v349_v44  ;;  %v339_v47 = vadd.f32 %v386_v16, %v232_v45  ;;  %v347_v48 = vadd.f32 %v386_v16, %v264_v46 }
  0xf3   :  { %355 = vst [vmem:[%s589_s3 + $0x28] sm:$0xff] %v339_v47  ;;  %363 = vst [vmem:[%s589_s3 + $0x68] sm:$0xff] %v347_v48 }

// kernel: _lambda_.45
= control target key start
LH: loop header
LB: loop body
LE: loop exit
PB: predicated region body
PF: predicated region fallthrough
CT: control target
= control target key end

     0   :  { %s31_s0 = inlined_call_operand.vmem [shape: f32[1,128], index: 0, kind: input, shape index: {}]   ;;  %s32_s1 = inlined_call_operand.vmem [shape: f32[1,128], index: 1, kind: output, shape index: {}]  }
   0x1   :  { %v8_v0 = vld [vmem:[%s31_s0] sm:$0x1] }
   0x2   :  { %v9_v1 = vmax.f32 %v8_v0, 0.0 }
   0x4   :  { %10 = vst [vmem:[%s32_s1] sm:$0x1] %v9_v1 }

// kernel: _lambda_.44
= control target key start
LH: loop header
LB: loop body
LE: loop exit
PB: predicated region body
PF: predicated region fallthrough
CT: control target
= control target key end

     0   :  { %s371_s1 = inlined_call_operand.vmem [shape: bf16[256,128], index: 1, kind: input, shape index: {}]   ;;  %s372_s0 = inlined_call_operand.vmem [shape: bf16[16,256], index: 0, kind: input, shape index: {}]   ;;  %s373_s2 = inlined_call_operand.vmem [shape: f32[1,128], index: 2, kind: input, shape index: {}]   ;;  %s374_s3 = inlined_call_operand.vmem [shape: f32[16,128], index: 3, kind: output, shape index: {}]  }
   0x1   :  { %v269_v0 = vld [vmem:[%s371_s1 + $0x78] sm:$0xff]   ;;  %v271_v2 = vld [vmem:[%s371_s1 + $0x70] sm:$0xff]   ;;  %v273_v4 = vld [vmem:[%s371_s1 + $0x68] sm:$0xff]  }
   0x2   :  { %v270_v1 = vld [vmem:[%s371_s1 + $0x38] sm:$0xff]   ;;  %247 = vmatprep.subr.bf16.mxu0 %v269_v0  ;;  %v272_v3 = vld [vmem:[%s371_s1 + $0x30] sm:$0xff]   ;;  %v274_v5 = vld [vmem:[%s371_s1 + $0x28] sm:$0xff]  }
   0x3   :  { %248 = vmatpush3.bf16.msra.mxu0 %v270_v1  ;;  %v275_v6 = vld [vmem:[%s371_s1 + $0x60] sm:$0xff]   ;;  %v277_v8 = vld [vmem:[%s371_s1 + $0x58] sm:$0xff]   ;;  %v279_v10 = vld [vmem:[%s371_s1 + $0x50] sm:$0xff]  }
   0x4   :  { %249 = vmatprep.subr.bf16.mxu0 %v271_v2  ;;  %v276_v7 = vld [vmem:[%s371_s1 + $0x20] sm:$0xff]   ;;  %v278_v9 = vld [vmem:[%s371_s1 + $0x18] sm:$0xff]   ;;  %v280_v12 = vld [vmem:[%s371_s1 + $0x10] sm:$0xff]  }
   0x5   :  { %v287_v11 = vld [vmem:[%s372_s0 + $0x4] ss:$8 sps:$4 sm:$0xff]   ;;  %v285_v17 = vld [vmem:[%s372_s0] ss:$8 sps:$4 sm:$0xff]  }
   0x6   :  { %195 = vmatprep.mubr.bf16.mxu0 %v287_v11  ;;  %v281_v13 = vld [vmem:[%s371_s1 + $0x48] sm:$0xff]   ;;  %v283_v15 = vld [vmem:[%s371_s1 + $0x40] sm:$0xff]  }
   0x7   :  { %250 = vmatpush3.bf16.msra.mxu0 %v272_v3  ;;  %v282_v14 = vld [vmem:[%s371_s1 + $0x8] sm:$0xff]   ;;  %v284_v16 = vld [vmem:[%s371_s1] sm:$0xff]  }
   0x8   :  { %251 = vmatprep.subr.bf16.mxu0 %v273_v4  ;;  %v246_v20 = vld [vmem:[%s373_s2] ss:$0 sm:$0xff] }
   0xb   :  { %252 = vmatpush3.bf16.msra.mxu0 %v274_v5 }
   0xc   :  { %253 = vmatprep.subr.bf16.mxu0 %v275_v6 }
   0xf   :  { %254 = vmatpush3.bf16.msra.mxu0 %v276_v7 }
  0x10   :  { %255 = vmatprep.subr.bf16.mxu0 %v277_v8 }
  0x13   :  { %256 = vmatpush3.bf16.msra.mxu0 %v278_v9 }
  0x14   :  { %257 = vmatprep.subr.bf16.mxu0 %v279_v10 }
  0x17   :  { %258 = vmatpush3.bf16.msra.mxu0 %v280_v12 }
  0x18   :  { %259 = vmatprep.subr.bf16.mxu0 %v281_v13 }
  0x1b   :  { %260 = vmatpush3.bf16.msra.mxu0 %v282_v14 }
  0x1c   :  { %261 = vmatprep.subr.bf16.mxu0 %v283_v15 }
  0x1f   :  { %262 = vmatpush3.bf16.msra.mxu0 %v284_v16 }
  0x22   :  { %196 = vmatmul.mubr.bf16.vlgmr.msra.gmra.mxu0 %v285_v17 }
  0xe2   :  { %v263_v18 = vpop.f32.mrf.mxu0 }
  0xe4   :  { %v264_v19 = vpop.f32.mrf.mxu0 }
  0xe5   :  { %v265_v21 = vadd.f32 %v264_v19, %v263_v18 }
  0xe6   :  { %v266_v22 = vpop.f32.mrf.mxu0 }
  0xe7   :  { %v220_v23 = vadd.f32 %v265_v21, %v246_v20 }
  0xe8   :  { %v267_v24 = vpop.f32.mrf.mxu0 }
  0xe9   :  { %222 = vst [vmem:[%s374_s3] sm:$0xff] %v220_v23  ;;  %v268_v25 = vadd.f32 %v267_v24, %v266_v22 }
  0xeb   :  { %v221_v26 = vadd.f32 %v268_v25, %v246_v20 }
  0xed   :  { %223 = vst [vmem:[%s374_s3 + $0x8] sm:$0xff] %v221_v26 }

// kernel: _lambda_.43
= control target key start
LH: loop header
LB: loop body
LE: loop exit
PB: predicated region body
PF: predicated region fallthrough
CT: control target
= control target key end

     0   :  { %s373_s1 = inlined_call_operand.vmem [shape: bf16[256,128], index: 1, kind: input, shape index: {}]   ;;  %s374_s0 = inlined_call_operand.vmem [shape: bf16[16,256], index: 0, kind: input, shape index: {}]   ;;  %s375_s2 = inlined_call_operand.vmem [shape: f32[1,128], index: 2, kind: input, shape index: {}]   ;;  %s376_s3 = inlined_call_operand.vmem [shape: f32[16,128], index: 3, kind: output, shape index: {}]  }
   0x1   :  { %v271_v0 = vld [vmem:[%s373_s1 + $0x78] sm:$0xff]   ;;  %v273_v2 = vld [vmem:[%s373_s1 + $0x70] sm:$0xff]   ;;  %v275_v4 = vld [vmem:[%s373_s1 + $0x68] sm:$0xff]  }
   0x2   :  { %v272_v1 = vld [vmem:[%s373_s1 + $0x38] sm:$0xff]   ;;  %249 = vmatprep.subr.bf16.mxu0 %v271_v0  ;;  %v274_v3 = vld [vmem:[%s373_s1 + $0x30] sm:$0xff]   ;;  %v276_v5 = vld [vmem:[%s373_s1 + $0x28] sm:$0xff]  }
   0x3   :  { %250 = vmatpush3.bf16.msra.mxu0 %v272_v1  ;;  %v277_v6 = vld [vmem:[%s373_s1 + $0x60] sm:$0xff]   ;;  %v279_v8 = vld [vmem:[%s373_s1 + $0x58] sm:$0xff]   ;;  %v281_v10 = vld [vmem:[%s373_s1 + $0x50] sm:$0xff]  }
   0x4   :  { %251 = vmatprep.subr.bf16.mxu0 %v273_v2  ;;  %v278_v7 = vld [vmem:[%s373_s1 + $0x20] sm:$0xff]   ;;  %v280_v9 = vld [vmem:[%s373_s1 + $0x18] sm:$0xff]   ;;  %v282_v12 = vld [vmem:[%s373_s1 + $0x10] sm:$0xff]  }
   0x5   :  { %v289_v11 = vld [vmem:[%s374_s0 + $0x4] ss:$8 sps:$4 sm:$0xff]   ;;  %v287_v17 = vld [vmem:[%s374_s0] ss:$8 sps:$4 sm:$0xff]  }
   0x6   :  { %195 = vmatprep.mubr.bf16.mxu0 %v289_v11  ;;  %v283_v13 = vld [vmem:[%s373_s1 + $0x48] sm:$0xff]   ;;  %v285_v15 = vld [vmem:[%s373_s1 + $0x40] sm:$0xff]  }
   0x7   :  { %252 = vmatpush3.bf16.msra.mxu0 %v274_v3  ;;  %v284_v14 = vld [vmem:[%s373_s1 + $0x8] sm:$0xff]   ;;  %v286_v16 = vld [vmem:[%s373_s1] sm:$0xff]  }
   0x8   :  { %253 = vmatprep.subr.bf16.mxu0 %v275_v4  ;;  %v248_v20 = vld [vmem:[%s375_s2] ss:$0 sm:$0xff] }
   0xb   :  { %254 = vmatpush3.bf16.msra.mxu0 %v276_v5 }
   0xc   :  { %255 = vmatprep.subr.bf16.mxu0 %v277_v6 }
   0xf   :  { %256 = vmatpush3.bf16.msra.mxu0 %v278_v7 }
  0x10   :  { %257 = vmatprep.subr.bf16.mxu0 %v279_v8 }
  0x13   :  { %258 = vmatpush3.bf16.msra.mxu0 %v280_v9 }
  0x14   :  { %259 = vmatprep.subr.bf16.mxu0 %v281_v10 }
  0x17   :  { %260 = vmatpush3.bf16.msra.mxu0 %v282_v12 }
  0x18   :  { %261 = vmatprep.subr.bf16.mxu0 %v283_v13 }
  0x1b   :  { %262 = vmatpush3.bf16.msra.mxu0 %v284_v14 }
  0x1c   :  { %263 = vmatprep.subr.bf16.mxu0 %v285_v15 }
  0x1f   :  { %264 = vmatpush3.bf16.msra.mxu0 %v286_v16 }
  0x22   :  { %196 = vmatmul.mubr.bf16.vlgmr.msra.gmra.mxu0 %v287_v17 }
  0xe2   :  { %v265_v18 = vpop.f32.mrf.mxu0 }
  0xe4   :  { %v266_v19 = vpop.f32.mrf.mxu0 }
  0xe5   :  { %v267_v21 = vadd.f32 %v266_v19, %v265_v18 }
  0xe6   :  { %v268_v22 = vpop.f32.mrf.mxu0 }
  0xe7   :  { %v220_v23 = vadd.f32 %v267_v21, %v248_v20 }
  0xe8   :  { %v269_v24 = vpop.f32.mrf.mxu0 }
  0xe9   :  { %v222_v25 = vmax.f32 %v220_v23, 0.0  ;;  %v270_v26 = vadd.f32 %v269_v24, %v268_v22 }
  0xeb   :  { %224 = vst [vmem:[%s376_s3] sm:$0xff] %v222_v25  ;;  %v221_v27 = vadd.f32 %v270_v26, %v248_v20 }
  0xed   :  { %v223_v28 = vmax.f32 %v221_v27, 0.0 }
  0xef   :  { %225 = vst [vmem:[%s376_s3 + $0x8] sm:$0xff] %v223_v28 }

// kernel: _lambda_.52
= control target key start
LH: loop header
LB: loop body
LE: loop exit
PB: predicated region body
PF: predicated region fallthrough
CT: control target
= control target key end

     0   :  { %s667_s1 = inlined_call_operand.vmem [shape: bf16[512,128], index: 1, kind: input, shape index: {}]   ;;  %s668_s0 = inlined_call_operand.vmem [shape: bf16[16,512], index: 0, kind: input, shape index: {}]   ;;  %s669_s2 = inlined_call_operand.vmem [shape: f32[1,128], index: 2, kind: input, shape index: {}]   ;;  %s670_s3 = inlined_call_operand.vmem [shape: f32[16,128], index: 3, kind: output, shape index: {}]  }
   0x1   :  { %v492_v0 = vld [vmem:[%s667_s1 + $0x78] sm:$0xff]   ;;  %v496_v4 = vld [vmem:[%s667_s1 + $0x70] sm:$0xff]   ;;  %v500_v8 = vld [vmem:[%s667_s1 + $0x68] sm:$0xff]  }
   0x2   :  { %v493_v1 = vld [vmem:[%s667_s1 + $0xf8] sm:$0xff]   ;;  %448 = vmatprep.subr.bf16.mxu0 %v492_v0  ;;  %v497_v5 = vld [vmem:[%s667_s1 + $0xf0] sm:$0xff]   ;;  %v501_v9 = vld [vmem:[%s667_s1 + $0xe8] sm:$0xff]  }
   0x3   :  { %v494_v2 = vld [vmem:[%s667_s1 + $0x38] sm:$0xff]   ;;  %470 = vmatprep.subr.bf16.mxu1 %v493_v1  ;;  %v498_v6 = vld [vmem:[%s667_s1 + $0x30] sm:$0xff]   ;;  %v502_v10 = vld [vmem:[%s667_s1 + $0x28] sm:$0xff]  }
   0x4   :  { %v495_v3 = vld [vmem:[%s667_s1 + $0xb8] sm:$0xff]   ;;  %449 = vmatpush3.bf16.msra.mxu0 %v494_v2  ;;  %v499_v7 = vld [vmem:[%s667_s1 + $0xb0] sm:$0xff]   ;;  %v503_v11 = vld [vmem:[%s667_s1 + $0xa8] sm:$0xff]  }
   0x5   :  { %471 = vmatpush3.bf16.msra.mxu1 %v495_v3  ;;  %450 = vmatprep.subr.bf16.mxu0 %v496_v4  ;;  %v504_v12 = vld [vmem:[%s667_s1 + $0x60] sm:$0xff]   ;;  %v508_v16 = vld [vmem:[%s667_s1 + $0x58] sm:$0xff]   ;;  %v512_v20 = vld [vmem:[%s667_s1 + $0x50] sm:$0xff]  }
   0x6   :  { %472 = vmatprep.subr.bf16.mxu1 %v497_v5  ;;  %v505_v13 = vld [vmem:[%s667_s1 + $0xe0] sm:$0xff]   ;;  %v509_v17 = vld [vmem:[%s667_s1 + $0xd8] sm:$0xff]   ;;  %v513_v21 = vld [vmem:[%s667_s1 + $0xd0] sm:$0xff]  }
   0x7   :  { %v506_v14 = vld [vmem:[%s667_s1 + $0x20] sm:$0xff]   ;;  %v510_v18 = vld [vmem:[%s667_s1 + $0x18] sm:$0xff]   ;;  %v514_v22 = vld [vmem:[%s667_s1 + $0x10] sm:$0xff]  }
   0x8   :  { %451 = vmatpush3.bf16.msra.mxu0 %v498_v6  ;;  %v507_v15 = vld [vmem:[%s667_s1 + $0xa0] sm:$0xff]   ;;  %v511_v19 = vld [vmem:[%s667_s1 + $0x98] sm:$0xff]   ;;  %v515_v23 = vld [vmem:[%s667_s1 + $0x90] sm:$0xff]  }
   0x9   :  { %473 = vmatpush3.bf16.msra.mxu1 %v499_v7  ;;  %452 = vmatprep.subr.bf16.mxu0 %v500_v8  ;;  %v516_v24 = vld [vmem:[%s667_s1 + $0x48] sm:$0xff]   ;;  %v520_v28 = vld [vmem:[%s667_s1 + $0x40] sm:$0xff]  }
   0xa   :  { %474 = vmatprep.subr.bf16.mxu1 %v501_v9  ;;  %v517_v25 = vld [vmem:[%s667_s1 + $0xc8] sm:$0xff]   ;;  %v521_v29 = vld [vmem:[%s667_s1 + $0xc0] sm:$0xff]  }
   0xb   :  { %v518_v26 = vld [vmem:[%s667_s1 + $0x8] sm:$0xff]   ;;  %v522_v30 = vld [vmem:[%s667_s1] sm:$0xff]  }
   0xc   :  { %453 = vmatpush3.bf16.msra.mxu0 %v502_v10  ;;  %v519_v27 = vld [vmem:[%s667_s1 + $0x88] sm:$0xff]   ;;  %v523_v31 = vld [vmem:[%s667_s1 + $0x80] sm:$0xff]  }
   0xd   :  { %475 = vmatpush3.bf16.msra.mxu1 %v503_v11  ;;  %454 = vmatprep.subr.bf16.mxu0 %v504_v12  ;;  %v524_v32 = vld [vmem:[%s668_s0] ss:$16 sps:$4 sm:$0xff]   ;;  %v526_v33 = vld [vmem:[%s668_s0 + $0x4] ss:$16 sps:$4 sm:$0xff]   ;;  %v527_v34 = vld [vmem:[%s668_s0 + $0x8] ss:$16 sps:$4 sm:$0xff]  }
   0xe   :  { %476 = vmatprep.subr.bf16.mxu1 %v505_v13  ;;  %v529_v35 = vld [vmem:[%s668_s0 + $0xc] ss:$16 sps:$4 sm:$0xff]   ;;  %335 = vmatprep.mubr.bf16.mxu0 %v526_v33  ;;  %v447_v43 = vld [vmem:[%s669_s2] ss:$0 sm:$0xff] }
   0xf   :  { %376 = vmatprep.mubr.bf16.mxu1 %v529_v35 }
  0x10   :  { %455 = vmatpush3.bf16.msra.mxu0 %v506_v14 }
  0x11   :  { %477 = vmatpush3.bf16.msra.mxu1 %v507_v15  ;;  %456 = vmatprep.subr.bf16.mxu0 %v508_v16 }
  0x12   :  { %478 = vmatprep.subr.bf16.mxu1 %v509_v17 }
  0x14   :  { %457 = vmatpush3.bf16.msra.mxu0 %v510_v18 }
  0x15   :  { %479 = vmatpush3.bf16.msra.mxu1 %v511_v19  ;;  %458 = vmatprep.subr.bf16.mxu0 %v512_v20 }
  0x16   :  { %480 = vmatprep.subr.bf16.mxu1 %v513_v21 }
  0x18   :  { %459 = vmatpush3.bf16.msra.mxu0 %v514_v22 }
  0x19   :  { %481 = vmatpush3.bf16.msra.mxu1 %v515_v23  ;;  %460 = vmatprep.subr.bf16.mxu0 %v516_v24 }
  0x1a   :  { %482 = vmatprep.subr.bf16.mxu1 %v517_v25 }
  0x1c   :  { %461 = vmatpush3.bf16.msra.mxu0 %v518_v26 }
  0x1d   :  { %483 = vmatpush3.bf16.msra.mxu1 %v519_v27  ;;  %462 = vmatprep.subr.bf16.mxu0 %v520_v28 }
  0x1e   :  { %484 = vmatprep.subr.bf16.mxu1 %v521_v29 }
  0x20   :  { %463 = vmatpush3.bf16.msra.mxu0 %v522_v30 }
  0x21   :  { %485 = vmatpush3.bf16.msra.mxu1 %v523_v31 }
  0x23   :  { %336 = vmatmul.mubr.bf16.vlgmr.msra.gmra.mxu0 %v524_v32 }
  0x24   :  { %377 = vmatmul.mubr.bf16.vlgmr.msra.gmra.mxu1 %v527_v34 }
  0xe3   :  { %v464_v36 = vpop.f32.mrf.mxu0 }
  0xe4   :  { %v486_v37 = vpop.f32.mrf.mxu1 }
  0xe5   :  { %v465_v38 = vpop.f32.mrf.mxu0 }
  0xe6   :  { %v466_v39 = vadd.f32 %v465_v38, %v464_v36  ;;  %v487_v40 = vpop.f32.mrf.mxu1 }
  0xe7   :  { %v488_v41 = vadd.f32 %v487_v40, %v486_v37  ;;  %v467_v42 = vpop.f32.mrf.mxu0 }
  0xe8   :  { %v489_v44 = vpop.f32.mrf.mxu1 }
  0xe9   :  { %v379_v45 = vadd.f32 %v488_v41, %v466_v39  ;;  %v468_v46 = vpop.f32.mrf.mxu0 }
  0xea   :  { %v469_v47 = vadd.f32 %v468_v46, %v467_v42  ;;  %v490_v48 = vpop.f32.mrf.mxu1 }
  0xeb   :  { %v401_v49 = vadd.f32 %v447_v43, %v379_v45  ;;  %v491_v50 = vadd.f32 %v490_v48, %v489_v44 }
  0xed   :  { %v403_v51 = vmax.f32 %v401_v49, 0.0  ;;  %v382_v52 = vadd.f32 %v491_v50, %v469_v47 }
  0xef   :  { %405 = vst [vmem:[%s670_s3] sm:$0xff] %v403_v51  ;;  %v402_v53 = vadd.f32 %v447_v43, %v382_v52 }
  0xf1   :  { %v404_v54 = vmax.f32 %v402_v53, 0.0 }
  0xf3   :  { %406 = vst [vmem:[%s670_s3 + $0x8] sm:$0xff] %v404_v54 }

// kernel: _lambda_.54
= control target key start
LH: loop header
LB: loop body
LE: loop exit
PB: predicated region body
PF: predicated region fallthrough
CT: control target
= control target key end

     0   :  { %s1021_s12 = smov 0   ;;  %s1023_s13 = smov 0   ;;  %s1137_s0 = inlined_call_operand.vmem [shape: bf16[16,1024], index: 0, kind: input, shape index: {}]   ;;  %s1138_s1 = inlined_call_operand.vmem [shape: bf16[1024,128], index: 1, kind: input, shape index: {}]   ;;  %s1139_s2 = inlined_call_operand.vmem [shape: f32[1,128], index: 2, kind: input, shape index: {}]   ;;  %s1140_s3 = inlined_call_operand.vmem [shape: f32[16,128], index: 3, kind: output, shape index: {}]  }
   0x1   :  { %s1025_s14 = smov 0   ;;  %s1027_s15 = smov 0  }
   0x2   :  { %s1029_s16 = smov 0  }
   0x3 LB: > { %s25_s17 = sadd.s32 1, %s994_s15  ;;  %p48_p1 = scmp.ne.s32.totalorder %s986_s13, %s982_s12  ;;  %s998_s16 = sphi %s1029_s16, %s13_s16   ;;  %s994_s15 = sphi %s1027_s15, %s1144_s15   ;;  %s990_s14 = sphi %s1025_s14, %s1143_s14   ;;  %s986_s13 = sphi %s1023_s13, %s1142_s13   ;;  %s982_s12 = sphi %s1021_s12, %s1141_s12  }
   0x4   : > { %p26_p0 = scmp.ge.s32.totalorder %s25_s17, 2  ;;  %p49_p2 = scmp.eq.s32.totalorder %s998_s16, 0 }
   0x5   : > { %s41_s19 = sadd.s32 1, %s986_s13  ;;  %p785_p5 = scmp.ge.s32.totalorder %s998_s16, 2 }
   0x6   : > { %s1146_s17 = smov (%p26_p0, %s25_s17), 0  ;;  %p50_p3 = por %p49_p2, %p48_p1 }
   0x7   : > { %s37_s18 = ssub.s32 %s994_s15, %s1146_s17  ;;  %162 = sbr.rel (%p785_p5) target bundleno = 18 (0x12), region = 20 }
   0x8   : > { %p39_p4 = scmp.eq.s32.totalorder %s37_s18, 0 }
   0xa   : > { %s1056_s20 = scalar_select %p39_p4, %s986_s13, %s41_s19  }
   0xc   : > { %165 = sbr.rel (!%p50_p3) target bundleno = 18 (0x12), region = 24  ;;  %s167_s21 = sand.u32 (%p50_p3), 1, %s986_s13  }
   0xd   : > { %s836_s22 = sshll.u32 (%p50_p3), %s994_s15, 4  ;;  %s786_s23 = sshll.u32 (%p50_p3), %s167_s21, 5 }
   0xe   : > { %s175_s26 = scalar_lea.vmem (%p50_p3), %s1137_s0, %s836_s22  ;;  %s169_s27 = scalar_lea.vmem (%p50_p3), [#allocation3], %s786_s23 }
   0xf   : > { %v188_v0 = vld [vmem:[%s175_s26] sm:$0xff] (%p50_p3)  ;;  %v190_v1 = vld [vmem:[%s175_s26 + $0x8] sm:$0xff] (%p50_p3) }
  0x10   : > { %v192_v2 = vld [vmem:[%s175_s26 + $0x20] sm:$0xff] (%p50_p3)  ;;  %189 = vst [vmem:[%s169_s27] sm:$0xff] (%p50_p3), %v188_v0  ;;  %191 = vst [vmem:[%s169_s27 + $0x8] sm:$0xff] (%p50_p3), %v190_v1  ;;  %v194_v3 = vld [vmem:[%s175_s26 + $0x28] sm:$0xff] (%p50_p3) }
  0x11   : > { %193 = vst [vmem:[%s169_s27 + $0x10] sm:$0xff] %v192_v2  ;;  %195 = vst [vmem:[%s169_s27 + $0x18] sm:$0xff] %v194_v3 }
  0x12 PF: > { %p789_p6 = scmp.ge.s32.totalorder %s998_s16, 1  ;;  %p212_p7 = scmp.lt.s32.totalorder %s998_s16, 3 }
  0x14   : > { %p213_p8 = pnand %p789_p6, %p212_p7 }
  0x15   : > { %s219_s28 = sand.u32 (!%p213_p8), 1, %s982_s12   ;;  %s791_s29 = sshll.u32 (!%p213_p8), %s990_s14, 6 }
  0x16   : > { %216 = sbr.rel (%p213_p8) target bundleno = 285 (0x11d), region = 51  ;;  %s790_s30 = sshll.u32 (!%p213_p8), %s219_s28, 5 }
  0x17   : > { %p259_p9 = scmp.lt.s32.totalorder (!%p213_p8), %s791_s29, 127  ;;  %s1073_s8 = scalar_lea.vmem (!%p213_p8), [#allocation3], %s790_s30 }
  0x18   : > { %p793_p10 = scmp.ne.s32.totalorder (!%p213_p8), %s990_s14, 0 }
  0x1b   : > { %s1148_s29 = smov (!%p259_p9, %s791_s29), 127  ;;  %283 = sbr.rel (%p793_p10) target bundleno = 34 (0x22), region = 59 }
  0x1c   : > { %s792_s4 = sshll.u32 %s1148_s29, 2 }
  0x1d   : > { %s1071_s7 = scalar_lea.vmem %s1138_s1, %s792_s4 }
  0x20   : > { %v1000_v4 = vmov 0.0  }
  0x21   : > { %284 = vst [vmem:[#allocation2] sm:$0xff] %v1000_v4  ;;  %285 = vst [vmem:[#allocation2 + $0x8] sm:$0xff] %v1000_v4 }
  0x22 PF: > { %v922_v5 = vld [vmem:[%s1071_s7 + $0x78] sm:$0xff]   ;;  %v926_v9 = vld [vmem:[%s1071_s7 + $0x70] sm:$0xff]   ;;  %v930_v13 = vld [vmem:[%s1071_s7 + $0x68] sm:$0xff]   ;;  %p830_p11 = scmp.ne.s32.totalorder %s990_s14, 1 }
  0x23   : > { %v923_v6 = vld [vmem:[%s1071_s7 + $0xf8] sm:$0xff]   ;;  %837 = vmatprep.subr.bf16.mxu0 %v922_v5  ;;  %v927_v10 = vld [vmem:[%s1071_s7 + $0xf0] sm:$0xff]   ;;  %v931_v14 = vld [vmem:[%s1071_s7 + $0xe8] sm:$0xff]  }
  0x24   : > { %v924_v7 = vld [vmem:[%s1071_s7 + $0x38] sm:$0xff]   ;;  %859 = vmatprep.subr.bf16.mxu1 %v923_v6  ;;  %v928_v11 = vld [vmem:[%s1071_s7 + $0x30] sm:$0xff]   ;;  %v932_v15 = vld [vmem:[%s1071_s7 + $0x28] sm:$0xff]  }
  0x25   : > { %v925_v8 = vld [vmem:[%s1071_s7 + $0xb8] sm:$0xff]   ;;  %838 = vmatpush3.bf16.msra.mxu0 %v924_v7  ;;  %v929_v12 = vld [vmem:[%s1071_s7 + $0xb0] sm:$0xff]   ;;  %v933_v16 = vld [vmem:[%s1071_s7 + $0xa8] sm:$0xff]  }
  0x26   : > { %860 = vmatpush3.bf16.msra.mxu1 %v925_v8  ;;  %839 = vmatprep.subr.bf16.mxu0 %v926_v9  ;;  %v934_v17 = vld [vmem:[%s1071_s7 + $0x60] sm:$0xff]   ;;  %v938_v21 = vld [vmem:[%s1071_s7 + $0x58] sm:$0xff]   ;;  %v942_v25 = vld [vmem:[%s1071_s7 + $0x50] sm:$0xff]  }
  0x27   : > { %861 = vmatprep.subr.bf16.mxu1 %v927_v10  ;;  %v935_v18 = vld [vmem:[%s1071_s7 + $0xe0] sm:$0xff]   ;;  %v939_v22 = vld [vmem:[%s1071_s7 + $0xd8] sm:$0xff]   ;;  %v943_v26 = vld [vmem:[%s1071_s7 + $0xd0] sm:$0xff]  }
  0x28   : > { %v936_v19 = vld [vmem:[%s1071_s7 + $0x20] sm:$0xff]   ;;  %v940_v23 = vld [vmem:[%s1071_s7 + $0x18] sm:$0xff]   ;;  %v944_v27 = vld [vmem:[%s1071_s7 + $0x10] sm:$0xff]  }
  0x29   : > { %840 = vmatpush3.bf16.msra.mxu0 %v928_v11  ;;  %v937_v20 = vld [vmem:[%s1071_s7 + $0xa0] sm:$0xff]   ;;  %v941_v24 = vld [vmem:[%s1071_s7 + $0x98] sm:$0xff]   ;;  %v945_v28 = vld [vmem:[%s1071_s7 + $0x90] sm:$0xff]  }
  0x2a   : > { %862 = vmatpush3.bf16.msra.mxu1 %v929_v12  ;;  %841 = vmatprep.subr.bf16.mxu0 %v930_v13  ;;  %v946_v29 = vld [vmem:[%s1071_s7 + $0x48] sm:$0xff]   ;;  %v950_v33 = vld [vmem:[%s1071_s7 + $0x40] sm:$0xff]  }
  0x2b   : > { %863 = vmatprep.subr.bf16.mxu1 %v931_v14  ;;  %v947_v30 = vld [vmem:[%s1071_s7 + $0xc8] sm:$0xff]   ;;  %v951_v34 = vld [vmem:[%s1071_s7 + $0xc0] sm:$0xff]  }
  0x2c   : > { %v948_v31 = vld [vmem:[%s1071_s7 + $0x8] sm:$0xff]   ;;  %v952_v35 = vld [vmem:[%s1071_s7] sm:$0xff]  }
  0x2d   : > { %842 = vmatpush3.bf16.msra.mxu0 %v932_v15  ;;  %v949_v32 = vld [vmem:[%s1071_s7 + $0x88] sm:$0xff]   ;;  %v953_v36 = vld [vmem:[%s1071_s7 + $0x80] sm:$0xff]  }
  0x2e   : > { %864 = vmatpush3.bf16.msra.mxu1 %v933_v16  ;;  %843 = vmatprep.subr.bf16.mxu0 %v934_v17  ;;  %v954_v37 = vld [vmem:[%s1073_s8] ss:$16 sps:$4 sm:$0xff]   ;;  %v956_v38 = vld [vmem:[%s1073_s8 + $0x4] ss:$16 sps:$4 sm:$0xff]   ;;  %v957_v39 = vld [vmem:[%s1073_s8 + $0x8] ss:$16 sps:$4 sm:$0xff]  }
  0x2f   : > { %865 = vmatprep.subr.bf16.mxu1 %v935_v18  ;;  %v959_v40 = vld [vmem:[%s1073_s8 + $0xc] ss:$16 sps:$4 sm:$0xff]   ;;  %600 = vmatprep.mubr.bf16.mxu0 %v956_v38  ;;  %v286_v48 = vld [vmem:[#allocation2] sm:$0xff] }
  0x30   : > { %641 = vmatprep.mubr.bf16.mxu1 %v959_v40  ;;  %v287_v56 = vld [vmem:[#allocation2 + $0x8] sm:$0xff] }
  0x31   : > { %844 = vmatpush3.bf16.msra.mxu0 %v936_v19 }
  0x32   : > { %866 = vmatpush3.bf16.msra.mxu1 %v937_v20  ;;  %845 = vmatprep.subr.bf16.mxu0 %v938_v21 }
  0x33   : > { %867 = vmatprep.subr.bf16.mxu1 %v939_v22 }
  0x35   : > { %846 = vmatpush3.bf16.msra.mxu0 %v940_v23 }
  0x36   : > { %868 = vmatpush3.bf16.msra.mxu1 %v941_v24  ;;  %847 = vmatprep.subr.bf16.mxu0 %v942_v25 }
  0x37   : > { %869 = vmatprep.subr.bf16.mxu1 %v943_v26 }
  0x39   : > { %848 = vmatpush3.bf16.msra.mxu0 %v944_v27 }
  0x3a   : > { %870 = vmatpush3.bf16.msra.mxu1 %v945_v28  ;;  %849 = vmatprep.subr.bf16.mxu0 %v946_v29 }
  0x3b   : > { %871 = vmatprep.subr.bf16.mxu1 %v947_v30 }
  0x3d   : > { %850 = vmatpush3.bf16.msra.mxu0 %v948_v31 }
  0x3e   : > { %872 = vmatpush3.bf16.msra.mxu1 %v949_v32  ;;  %851 = vmatprep.subr.bf16.mxu0 %v950_v33 }
  0x3f   : > { %873 = vmatprep.subr.bf16.mxu1 %v951_v34 }
  0x41   : > { %852 = vmatpush3.bf16.msra.mxu0 %v952_v35 }
  0x42   : > { %874 = vmatpush3.bf16.msra.mxu1 %v953_v36 }
  0x44   : > { %601 = vmatmul.mubr.bf16.vlgmr.msra.gmra.mxu0 %v954_v37 }
  0x45   : > { %642 = vmatmul.mubr.bf16.vlgmr.msra.gmra.mxu1 %v957_v39 }
 0x104   : > { %v853_v41 = vpop.f32.mrf.mxu0 }
 0x105   : > { %v875_v42 = vpop.f32.mrf.mxu1 }
 0x106   : > { %v854_v43 = vpop.f32.mrf.mxu0 }
 0x107   : > { %v855_v44 = vadd.f32 %v854_v43, %v853_v41  ;;  %v876_v45 = vpop.f32.mrf.mxu1 }
 0x108   : > { %v877_v46 = vadd.f32 %v876_v45, %v875_v42  ;;  %v856_v47 = vpop.f32.mrf.mxu0 }
 0x109   : > { %v878_v49 = vpop.f32.mrf.mxu1 }
 0x10a   : > { %v644_v50 = vadd.f32 %v877_v46, %v855_v44  ;;  %v857_v51 = vpop.f32.mrf.mxu0 }
 0x10b   : > { %v858_v52 = vadd.f32 %v857_v51, %v856_v47  ;;  %v879_v53 = vpop.f32.mrf.mxu1 }
 0x10c   : > { %v650_v54 = vadd.f32 %v644_v50, %v286_v48  ;;  %v880_v55 = vadd.f32 %v879_v53, %v878_v49 }
 0x10e   : > { %652 = vst [vmem:[#allocation2] sm:$0xff] %v650_v54  ;;  %v647_v57 = vadd.f32 %v880_v55, %v858_v52  ;;  %657 = sbr.rel (%p830_p11) target bundleno = 285 (0x11d), region = 63 }
 0x110   : > { %v651_v58 = vadd.f32 %v647_v57, %v287_v56 }
 0x112   : > { %653 = vst [vmem:[#allocation2 + $0x8] sm:$0xff] %v651_v58 }
 0x113   : > { %v831_v60 = vld [vmem:[%s1139_s2] ss:$0 sm:$0xff] }
 0x115   : > { %v658_v59 = vld [vmem:[#allocation2] sm:$0xff] }
 0x116   : > { %v667_v62 = vadd.f32 %v831_v60, %v658_v59 }
 0x118   : > { %669 = vst [vmem:[%s1140_s3] sm:$0xff] %v667_v62 }
 0x119   : > { %v659_v61 = vld [vmem:[#allocation2 + $0x8] sm:$0xff] }
 0x11a   : > { %v668_v63 = vadd.f32 %v831_v60, %v659_v61 }
 0x11c   : > { %670 = vst [vmem:[%s1140_s3 + $0x8] sm:$0xff] %v668_v63 }
 0x11d PF: > { %s13_s16 = sadd.s32 1, %s998_s16   ;;  %s1141_s12 = smov %s986_s13 }
 0x11e   : > { %p10_p12 = scmp.ge.s32.totalorder %s13_s16, 4   ;;  %s1142_s13 = smov %s1056_s20 }
 0x11f   : > { %s1143_s14 = smov %s994_s15  ;;  %s1144_s15 = smov %s1146_s17 }
 0x120   :  { %12 = sbr.rel (!%p10_p12) target bundleno = 3 (0x3), region = 104 }

// kernel: _lambda_.53
= control target key start
LH: loop header
LB: loop body
LE: loop exit
PB: predicated region body
PF: predicated region fallthrough
CT: control target
= control target key end

     0   :  { %s1023_s12 = smov 0   ;;  %s1025_s13 = smov 0   ;;  %s1139_s0 = inlined_call_operand.vmem [shape: bf16[16,1024], index: 0, kind: input, shape index: {}]   ;;  %s1140_s1 = inlined_call_operand.vmem [shape: bf16[1024,128], index: 1, kind: input, shape index: {}]   ;;  %s1141_s2 = inlined_call_operand.vmem [shape: f32[1,128], index: 2, kind: input, shape index: {}]   ;;  %s1142_s3 = inlined_call_operand.vmem [shape: f32[16,128], index: 3, kind: output, shape index: {}]  }
   0x1   :  { %s1027_s14 = smov 0   ;;  %s1029_s15 = smov 0  }
   0x2   :  { %s1031_s16 = smov 0  }
   0x3 LB: > { %s25_s17 = sadd.s32 1, %s996_s15  ;;  %p48_p1 = scmp.ne.s32.totalorder %s988_s13, %s984_s12  ;;  %s1000_s16 = sphi %s1031_s16, %s13_s16   ;;  %s996_s15 = sphi %s1029_s15, %s1146_s15   ;;  %s992_s14 = sphi %s1027_s14, %s1145_s14   ;;  %s988_s13 = sphi %s1025_s13, %s1144_s13   ;;  %s984_s12 = sphi %s1023_s12, %s1143_s12  }
   0x4   : > { %p26_p0 = scmp.ge.s32.totalorder %s25_s17, 2  ;;  %p49_p2 = scmp.eq.s32.totalorder %s1000_s16, 0 }
   0x5   : > { %s41_s19 = sadd.s32 1, %s988_s13  ;;  %p787_p5 = scmp.ge.s32.totalorder %s1000_s16, 2 }
   0x6   : > { %s1148_s17 = smov (%p26_p0, %s25_s17), 0  ;;  %p50_p3 = por %p49_p2, %p48_p1 }
   0x7   : > { %s37_s18 = ssub.s32 %s996_s15, %s1148_s17  ;;  %162 = sbr.rel (%p787_p5) target bundleno = 18 (0x12), region = 20 }
   0x8   : > { %p39_p4 = scmp.eq.s32.totalorder %s37_s18, 0 }
   0xa   : > { %s1058_s20 = scalar_select %p39_p4, %s988_s13, %s41_s19  }
   0xc   : > { %165 = sbr.rel (!%p50_p3) target bundleno = 18 (0x12), region = 24  ;;  %s167_s21 = sand.u32 (%p50_p3), 1, %s988_s13  }
   0xd   : > { %s838_s22 = sshll.u32 (%p50_p3), %s996_s15, 4  ;;  %s788_s23 = sshll.u32 (%p50_p3), %s167_s21, 5 }
   0xe   : > { %s175_s26 = scalar_lea.vmem (%p50_p3), %s1139_s0, %s838_s22  ;;  %s169_s27 = scalar_lea.vmem (%p50_p3), [#allocation3], %s788_s23 }
   0xf   : > { %v188_v0 = vld [vmem:[%s175_s26] sm:$0xff] (%p50_p3)  ;;  %v190_v1 = vld [vmem:[%s175_s26 + $0x8] sm:$0xff] (%p50_p3) }
  0x10   : > { %v192_v2 = vld [vmem:[%s175_s26 + $0x20] sm:$0xff] (%p50_p3)  ;;  %189 = vst [vmem:[%s169_s27] sm:$0xff] (%p50_p3), %v188_v0  ;;  %191 = vst [vmem:[%s169_s27 + $0x8] sm:$0xff] (%p50_p3), %v190_v1  ;;  %v194_v3 = vld [vmem:[%s175_s26 + $0x28] sm:$0xff] (%p50_p3) }
  0x11   : > { %193 = vst [vmem:[%s169_s27 + $0x10] sm:$0xff] %v192_v2  ;;  %195 = vst [vmem:[%s169_s27 + $0x18] sm:$0xff] %v194_v3 }
  0x12 PF: > { %p791_p6 = scmp.ge.s32.totalorder %s1000_s16, 1  ;;  %p212_p7 = scmp.lt.s32.totalorder %s1000_s16, 3 }
  0x14   : > { %p213_p8 = pnand %p791_p6, %p212_p7 }
  0x15   : > { %s219_s28 = sand.u32 (!%p213_p8), 1, %s984_s12   ;;  %s793_s29 = sshll.u32 (!%p213_p8), %s992_s14, 6 }
  0x16   : > { %216 = sbr.rel (%p213_p8) target bundleno = 287 (0x11f), region = 51  ;;  %s792_s30 = sshll.u32 (!%p213_p8), %s219_s28, 5 }
  0x17   : > { %p259_p9 = scmp.lt.s32.totalorder (!%p213_p8), %s793_s29, 127  ;;  %s1075_s8 = scalar_lea.vmem (!%p213_p8), [#allocation3], %s792_s30 }
  0x18   : > { %p795_p10 = scmp.ne.s32.totalorder (!%p213_p8), %s992_s14, 0 }
  0x1b   : > { %s1150_s29 = smov (!%p259_p9, %s793_s29), 127  ;;  %283 = sbr.rel (%p795_p10) target bundleno = 34 (0x22), region = 59 }
  0x1c   : > { %s794_s4 = sshll.u32 %s1150_s29, 2 }
  0x1d   : > { %s1073_s7 = scalar_lea.vmem %s1140_s1, %s794_s4 }
  0x20   : > { %v1002_v4 = vmov 0.0  }
  0x21   : > { %284 = vst [vmem:[#allocation2] sm:$0xff] %v1002_v4  ;;  %285 = vst [vmem:[#allocation2 + $0x8] sm:$0xff] %v1002_v4 }
  0x22 PF: > { %v924_v5 = vld [vmem:[%s1073_s7 + $0x78] sm:$0xff]   ;;  %v928_v9 = vld [vmem:[%s1073_s7 + $0x70] sm:$0xff]   ;;  %v932_v13 = vld [vmem:[%s1073_s7 + $0x68] sm:$0xff]   ;;  %p832_p11 = scmp.ne.s32.totalorder %s992_s14, 1 }
  0x23   : > { %v925_v6 = vld [vmem:[%s1073_s7 + $0xf8] sm:$0xff]   ;;  %839 = vmatprep.subr.bf16.mxu0 %v924_v5  ;;  %v929_v10 = vld [vmem:[%s1073_s7 + $0xf0] sm:$0xff]   ;;  %v933_v14 = vld [vmem:[%s1073_s7 + $0xe8] sm:$0xff]  }
  0x24   : > { %v926_v7 = vld [vmem:[%s1073_s7 + $0x38] sm:$0xff]   ;;  %861 = vmatprep.subr.bf16.mxu1 %v925_v6  ;;  %v930_v11 = vld [vmem:[%s1073_s7 + $0x30] sm:$0xff]   ;;  %v934_v15 = vld [vmem:[%s1073_s7 + $0x28] sm:$0xff]  }
  0x25   : > { %v927_v8 = vld [vmem:[%s1073_s7 + $0xb8] sm:$0xff]   ;;  %840 = vmatpush3.bf16.msra.mxu0 %v926_v7  ;;  %v931_v12 = vld [vmem:[%s1073_s7 + $0xb0] sm:$0xff]   ;;  %v935_v16 = vld [vmem:[%s1073_s7 + $0xa8] sm:$0xff]  }
  0x26   : > { %862 = vmatpush3.bf16.msra.mxu1 %v927_v8  ;;  %841 = vmatprep.subr.bf16.mxu0 %v928_v9  ;;  %v936_v17 = vld [vmem:[%s1073_s7 + $0x60] sm:$0xff]   ;;  %v940_v21 = vld [vmem:[%s1073_s7 + $0x58] sm:$0xff]   ;;  %v944_v25 = vld [vmem:[%s1073_s7 + $0x50] sm:$0xff]  }
  0x27   : > { %863 = vmatprep.subr.bf16.mxu1 %v929_v10  ;;  %v937_v18 = vld [vmem:[%s1073_s7 + $0xe0] sm:$0xff]   ;;  %v941_v22 = vld [vmem:[%s1073_s7 + $0xd8] sm:$0xff]   ;;  %v945_v26 = vld [vmem:[%s1073_s7 + $0xd0] sm:$0xff]  }
  0x28   : > { %v938_v19 = vld [vmem:[%s1073_s7 + $0x20] sm:$0xff]   ;;  %v942_v23 = vld [vmem:[%s1073_s7 + $0x18] sm:$0xff]   ;;  %v946_v27 = vld [vmem:[%s1073_s7 + $0x10] sm:$0xff]  }
  0x29   : > { %842 = vmatpush3.bf16.msra.mxu0 %v930_v11  ;;  %v939_v20 = vld [vmem:[%s1073_s7 + $0xa0] sm:$0xff]   ;;  %v943_v24 = vld [vmem:[%s1073_s7 + $0x98] sm:$0xff]   ;;  %v947_v28 = vld [vmem:[%s1073_s7 + $0x90] sm:$0xff]  }
  0x2a   : > { %864 = vmatpush3.bf16.msra.mxu1 %v931_v12  ;;  %843 = vmatprep.subr.bf16.mxu0 %v932_v13  ;;  %v948_v29 = vld [vmem:[%s1073_s7 + $0x48] sm:$0xff]   ;;  %v952_v33 = vld [vmem:[%s1073_s7 + $0x40] sm:$0xff]  }
  0x2b   : > { %865 = vmatprep.subr.bf16.mxu1 %v933_v14  ;;  %v949_v30 = vld [vmem:[%s1073_s7 + $0xc8] sm:$0xff]   ;;  %v953_v34 = vld [vmem:[%s1073_s7 + $0xc0] sm:$0xff]  }
  0x2c   : > { %v950_v31 = vld [vmem:[%s1073_s7 + $0x8] sm:$0xff]   ;;  %v954_v35 = vld [vmem:[%s1073_s7] sm:$0xff]  }
  0x2d   : > { %844 = vmatpush3.bf16.msra.mxu0 %v934_v15  ;;  %v951_v32 = vld [vmem:[%s1073_s7 + $0x88] sm:$0xff]   ;;  %v955_v36 = vld [vmem:[%s1073_s7 + $0x80] sm:$0xff]  }
  0x2e   : > { %866 = vmatpush3.bf16.msra.mxu1 %v935_v16  ;;  %845 = vmatprep.subr.bf16.mxu0 %v936_v17  ;;  %v956_v37 = vld [vmem:[%s1075_s8] ss:$16 sps:$4 sm:$0xff]   ;;  %v958_v38 = vld [vmem:[%s1075_s8 + $0x4] ss:$16 sps:$4 sm:$0xff]   ;;  %v959_v39 = vld [vmem:[%s1075_s8 + $0x8] ss:$16 sps:$4 sm:$0xff]  }
  0x2f   : > { %867 = vmatprep.subr.bf16.mxu1 %v937_v18  ;;  %v961_v40 = vld [vmem:[%s1075_s8 + $0xc] ss:$16 sps:$4 sm:$0xff]   ;;  %600 = vmatprep.mubr.bf16.mxu0 %v958_v38  ;;  %v286_v48 = vld [vmem:[#allocation2] sm:$0xff] }
  0x30   : > { %641 = vmatprep.mubr.bf16.mxu1 %v961_v40  ;;  %v287_v56 = vld [vmem:[#allocation2 + $0x8] sm:$0xff] }
  0x31   : > { %846 = vmatpush3.bf16.msra.mxu0 %v938_v19 }
  0x32   : > { %868 = vmatpush3.bf16.msra.mxu1 %v939_v20  ;;  %847 = vmatprep.subr.bf16.mxu0 %v940_v21 }
  0x33   : > { %869 = vmatprep.subr.bf16.mxu1 %v941_v22 }
  0x35   : > { %848 = vmatpush3.bf16.msra.mxu0 %v942_v23 }
  0x36   : > { %870 = vmatpush3.bf16.msra.mxu1 %v943_v24  ;;  %849 = vmatprep.subr.bf16.mxu0 %v944_v25 }
  0x37   : > { %871 = vmatprep.subr.bf16.mxu1 %v945_v26 }
  0x39   : > { %850 = vmatpush3.bf16.msra.mxu0 %v946_v27 }
  0x3a   : > { %872 = vmatpush3.bf16.msra.mxu1 %v947_v28  ;;  %851 = vmatprep.subr.bf16.mxu0 %v948_v29 }
  0x3b   : > { %873 = vmatprep.subr.bf16.mxu1 %v949_v30 }
  0x3d   : > { %852 = vmatpush3.bf16.msra.mxu0 %v950_v31 }
  0x3e   : > { %874 = vmatpush3.bf16.msra.mxu1 %v951_v32  ;;  %853 = vmatprep.subr.bf16.mxu0 %v952_v33 }
  0x3f   : > { %875 = vmatprep.subr.bf16.mxu1 %v953_v34 }
  0x41   : > { %854 = vmatpush3.bf16.msra.mxu0 %v954_v35 }
  0x42   : > { %876 = vmatpush3.bf16.msra.mxu1 %v955_v36 }
  0x44   : > { %601 = vmatmul.mubr.bf16.vlgmr.msra.gmra.mxu0 %v956_v37 }
  0x45   : > { %642 = vmatmul.mubr.bf16.vlgmr.msra.gmra.mxu1 %v959_v39 }
 0x104   : > { %v855_v41 = vpop.f32.mrf.mxu0 }
 0x105   : > { %v877_v42 = vpop.f32.mrf.mxu1 }
 0x106   : > { %v856_v43 = vpop.f32.mrf.mxu0 }
 0x107   : > { %v857_v44 = vadd.f32 %v856_v43, %v855_v41  ;;  %v878_v45 = vpop.f32.mrf.mxu1 }
 0x108   : > { %v879_v46 = vadd.f32 %v878_v45, %v877_v42  ;;  %v858_v47 = vpop.f32.mrf.mxu0 }
 0x109   : > { %v880_v49 = vpop.f32.mrf.mxu1 }
 0x10a   : > { %v644_v50 = vadd.f32 %v879_v46, %v857_v44  ;;  %v859_v51 = vpop.f32.mrf.mxu0 }
 0x10b   : > { %v860_v52 = vadd.f32 %v859_v51, %v858_v47  ;;  %v881_v53 = vpop.f32.mrf.mxu1 }
 0x10c   : > { %v650_v54 = vadd.f32 %v644_v50, %v286_v48  ;;  %v882_v55 = vadd.f32 %v881_v53, %v880_v49 }
 0x10e   : > { %652 = vst [vmem:[#allocation2] sm:$0xff] %v650_v54  ;;  %v647_v57 = vadd.f32 %v882_v55, %v860_v52  ;;  %657 = sbr.rel (%p832_p11) target bundleno = 287 (0x11f), region = 63 }
 0x110   : > { %v651_v58 = vadd.f32 %v647_v57, %v287_v56 }
 0x112   : > { %653 = vst [vmem:[#allocation2 + $0x8] sm:$0xff] %v651_v58 }
 0x113   : > { %v833_v60 = vld [vmem:[%s1141_s2] ss:$0 sm:$0xff] }
 0x115   : > { %v658_v59 = vld [vmem:[#allocation2] sm:$0xff] }
 0x116   : > { %v667_v62 = vadd.f32 %v833_v60, %v658_v59 }
 0x118   : > { %v669_v0 = vmax.f32 %v667_v62, 0.0 }
 0x119   : > { %v659_v61 = vld [vmem:[#allocation2 + $0x8] sm:$0xff] }
 0x11a   : > { %v668_v63 = vadd.f32 %v833_v60, %v659_v61  ;;  %671 = vst [vmem:[%s1142_s3] sm:$0xff] %v669_v0 }
 0x11c   : > { %v670_v1 = vmax.f32 %v668_v63, 0.0 }
 0x11e   : > { %672 = vst [vmem:[%s1142_s3 + $0x8] sm:$0xff] %v670_v1 }
 0x11f PF: > { %s13_s16 = sadd.s32 1, %s1000_s16   ;;  %s1143_s12 = smov %s988_s13 }
 0x120   : > { %p10_p12 = scmp.ge.s32.totalorder %s13_s16, 4   ;;  %s1144_s13 = smov %s1058_s20 }
 0x121   : > { %s1145_s14 = smov %s996_s15  ;;  %s1146_s15 = smov %s1148_s17 }
 0x122   :  { %12 = sbr.rel (!%p10_p12) target bundleno = 3 (0x3), region = 104 }

// kernel: _lambda_.57
= control target key start
LH: loop header
LB: loop body
LE: loop exit
PB: predicated region body
PF: predicated region fallthrough
CT: control target
= control target key end

     0   :  { %s1023_s12 = smov 0   ;;  %s1025_s13 = smov 0   ;;  %s1139_s0 = inlined_call_operand.vmem [shape: bf16[16,3072], index: 0, kind: input, shape index: {}]   ;;  %s1140_s1 = inlined_call_operand.vmem [shape: bf16[3072,128], index: 1, kind: input, shape index: {}]   ;;  %s1141_s2 = inlined_call_operand.vmem [shape: f32[1,128], index: 2, kind: input, shape index: {}]   ;;  %s1142_s3 = inlined_call_operand.vmem [shape: f32[16,128], index: 3, kind: output, shape index: {}]  }
   0x1   :  { %s1027_s14 = smov 0   ;;  %s1029_s15 = smov 0  }
   0x2   :  { %s1031_s16 = smov 0  }
   0x3 LB: > { %s25_s17 = sadd.s32 1, %s996_s15  ;;  %p48_p1 = scmp.ne.s32.totalorder %s988_s13, %s984_s12  ;;  %s1000_s16 = sphi %s1031_s16, %s13_s16   ;;  %s996_s15 = sphi %s1029_s15, %s1146_s15   ;;  %s992_s14 = sphi %s1027_s14, %s1145_s14   ;;  %s988_s13 = sphi %s1025_s13, %s1144_s13   ;;  %s984_s12 = sphi %s1023_s12, %s1143_s12  }
   0x4   : > { %p26_p0 = scmp.ge.s32.totalorder %s25_s17, 6  ;;  %p49_p2 = scmp.eq.s32.totalorder %s1000_s16, 0 }
   0x5   : > { %s41_s19 = sadd.s32 1, %s988_s13  ;;  %p787_p5 = scmp.ge.s32.totalorder %s1000_s16, 6 }
   0x6   : > { %s1148_s17 = smov (%p26_p0, %s25_s17), 0  ;;  %p50_p3 = por %p49_p2, %p48_p1 }
   0x7   : > { %s37_s18 = ssub.s32 %s996_s15, %s1148_s17  ;;  %162 = sbr.rel (%p787_p5) target bundleno = 18 (0x12), region = 20 }
   0x8   : > { %p39_p4 = scmp.eq.s32.totalorder %s37_s18, 0 }
   0xa   : > { %s1058_s20 = scalar_select %p39_p4, %s988_s13, %s41_s19  }
   0xc   : > { %165 = sbr.rel (!%p50_p3) target bundleno = 18 (0x12), region = 24  ;;  %s167_s21 = sand.u32 (%p50_p3), 1, %s988_s13  }
   0xd   : > { %s838_s22 = sshll.u32 (%p50_p3), %s996_s15, 4  ;;  %s788_s23 = sshll.u32 (%p50_p3), %s167_s21, 5 }
   0xe   : > { %s175_s26 = scalar_lea.vmem (%p50_p3), %s1139_s0, %s838_s22  ;;  %s169_s27 = scalar_lea.vmem (%p50_p3), [#allocation3], %s788_s23 }
   0xf   : > { %v188_v0 = vld [vmem:[%s175_s26] sm:$0xff] (%p50_p3)  ;;  %v190_v1 = vld [vmem:[%s175_s26 + $0x8] sm:$0xff] (%p50_p3) }
  0x10   : > { %v192_v2 = vld [vmem:[%s175_s26 + $0x60] sm:$0xff] (%p50_p3)  ;;  %189 = vst [vmem:[%s169_s27] sm:$0xff] (%p50_p3), %v188_v0  ;;  %191 = vst [vmem:[%s169_s27 + $0x8] sm:$0xff] (%p50_p3), %v190_v1  ;;  %v194_v3 = vld [vmem:[%s175_s26 + $0x68] sm:$0xff] (%p50_p3) }
  0x11   : > { %193 = vst [vmem:[%s169_s27 + $0x10] sm:$0xff] %v192_v2  ;;  %195 = vst [vmem:[%s169_s27 + $0x18] sm:$0xff] %v194_v3 }
  0x12 PF: > { %p791_p6 = scmp.ge.s32.totalorder %s1000_s16, 1  ;;  %p212_p7 = scmp.lt.s32.totalorder %s1000_s16, 7 }
  0x14   : > { %p213_p8 = pnand %p791_p6, %p212_p7 }
  0x15   : > { %s219_s28 = sand.u32 (!%p213_p8), 1, %s984_s12   ;;  %s793_s29 = sshll.u32 (!%p213_p8), %s992_s14, 6 }
  0x16   : > { %216 = sbr.rel (%p213_p8) target bundleno = 287 (0x11f), region = 51  ;;  %s792_s30 = sshll.u32 (!%p213_p8), %s219_s28, 5 }
  0x17   : > { %p259_p9 = scmp.lt.s32.totalorder (!%p213_p8), %s793_s29, 383  ;;  %s1075_s8 = scalar_lea.vmem (!%p213_p8), [#allocation3], %s792_s30 }
  0x18   : > { %p795_p10 = scmp.ne.s32.totalorder (!%p213_p8), %s992_s14, 0 }
  0x1b   : > { %s1150_s29 = smov (!%p259_p9, %s793_s29), 383  ;;  %283 = sbr.rel (%p795_p10) target bundleno = 34 (0x22), region = 59 }
  0x1c   : > { %s794_s4 = sshll.u32 %s1150_s29, 2 }
  0x1d   : > { %s1073_s7 = scalar_lea.vmem %s1140_s1, %s794_s4 }
  0x20   : > { %v1002_v4 = vmov 0.0  }
  0x21   : > { %284 = vst [vmem:[#allocation2] sm:$0xff] %v1002_v4  ;;  %285 = vst [vmem:[#allocation2 + $0x8] sm:$0xff] %v1002_v4 }
  0x22 PF: > { %v924_v5 = vld [vmem:[%s1073_s7 + $0x78] sm:$0xff]   ;;  %v928_v9 = vld [vmem:[%s1073_s7 + $0x70] sm:$0xff]   ;;  %v932_v13 = vld [vmem:[%s1073_s7 + $0x68] sm:$0xff]   ;;  %p832_p11 = scmp.ne.s32.totalorder %s992_s14, 5 }
  0x23   : > { %v925_v6 = vld [vmem:[%s1073_s7 + $0xf8] sm:$0xff]   ;;  %839 = vmatprep.subr.bf16.mxu0 %v924_v5  ;;  %v929_v10 = vld [vmem:[%s1073_s7 + $0xf0] sm:$0xff]   ;;  %v933_v14 = vld [vmem:[%s1073_s7 + $0xe8] sm:$0xff]  }
  0x24   : > { %v926_v7 = vld [vmem:[%s1073_s7 + $0x38] sm:$0xff]   ;;  %861 = vmatprep.subr.bf16.mxu1 %v925_v6  ;;  %v930_v11 = vld [vmem:[%s1073_s7 + $0x30] sm:$0xff]   ;;  %v934_v15 = vld [vmem:[%s1073_s7 + $0x28] sm:$0xff]  }
  0x25   : > { %v927_v8 = vld [vmem:[%s1073_s7 + $0xb8] sm:$0xff]   ;;  %840 = vmatpush3.bf16.msra.mxu0 %v926_v7  ;;  %v931_v12 = vld [vmem:[%s1073_s7 + $0xb0] sm:$0xff]   ;;  %v935_v16 = vld [vmem:[%s1073_s7 + $0xa8] sm:$0xff]  }
  0x26   : > { %862 = vmatpush3.bf16.msra.mxu1 %v927_v8  ;;  %841 = vmatprep.subr.bf16.mxu0 %v928_v9  ;;  %v936_v17 = vld [vmem:[%s1073_s7 + $0x60] sm:$0xff]   ;;  %v940_v21 = vld [vmem:[%s1073_s7 + $0x58] sm:$0xff]   ;;  %v944_v25 = vld [vmem:[%s1073_s7 + $0x50] sm:$0xff]  }
  0x27   : > { %863 = vmatprep.subr.bf16.mxu1 %v929_v10  ;;  %v937_v18 = vld [vmem:[%s1073_s7 + $0xe0] sm:$0xff]   ;;  %v941_v22 = vld [vmem:[%s1073_s7 + $0xd8] sm:$0xff]   ;;  %v945_v26 = vld [vmem:[%s1073_s7 + $0xd0] sm:$0xff]  }
  0x28   : > { %v938_v19 = vld [vmem:[%s1073_s7 + $0x20] sm:$0xff]   ;;  %v942_v23 = vld [vmem:[%s1073_s7 + $0x18] sm:$0xff]   ;;  %v946_v27 = vld [vmem:[%s1073_s7 + $0x10] sm:$0xff]  }
  0x29   : > { %842 = vmatpush3.bf16.msra.mxu0 %v930_v11  ;;  %v939_v20 = vld [vmem:[%s1073_s7 + $0xa0] sm:$0xff]   ;;  %v943_v24 = vld [vmem:[%s1073_s7 + $0x98] sm:$0xff]   ;;  %v947_v28 = vld [vmem:[%s1073_s7 + $0x90] sm:$0xff]  }
  0x2a   : > { %864 = vmatpush3.bf16.msra.mxu1 %v931_v12  ;;  %843 = vmatprep.subr.bf16.mxu0 %v932_v13  ;;  %v948_v29 = vld [vmem:[%s1073_s7 + $0x48] sm:$0xff]   ;;  %v952_v33 = vld [vmem:[%s1073_s7 + $0x40] sm:$0xff]  }
  0x2b   : > { %865 = vmatprep.subr.bf16.mxu1 %v933_v14  ;;  %v949_v30 = vld [vmem:[%s1073_s7 + $0xc8] sm:$0xff]   ;;  %v953_v34 = vld [vmem:[%s1073_s7 + $0xc0] sm:$0xff]  }
  0x2c   : > { %v950_v31 = vld [vmem:[%s1073_s7 + $0x8] sm:$0xff]   ;;  %v954_v35 = vld [vmem:[%s1073_s7] sm:$0xff]  }
  0x2d   : > { %844 = vmatpush3.bf16.msra.mxu0 %v934_v15  ;;  %v951_v32 = vld [vmem:[%s1073_s7 + $0x88] sm:$0xff]   ;;  %v955_v36 = vld [vmem:[%s1073_s7 + $0x80] sm:$0xff]  }
  0x2e   : > { %866 = vmatpush3.bf16.msra.mxu1 %v935_v16  ;;  %845 = vmatprep.subr.bf16.mxu0 %v936_v17  ;;  %v956_v37 = vld [vmem:[%s1075_s8] ss:$16 sps:$4 sm:$0xff]   ;;  %v958_v38 = vld [vmem:[%s1075_s8 + $0x4] ss:$16 sps:$4 sm:$0xff]   ;;  %v959_v39 = vld [vmem:[%s1075_s8 + $0x8] ss:$16 sps:$4 sm:$0xff]  }
  0x2f   : > { %867 = vmatprep.subr.bf16.mxu1 %v937_v18  ;;  %v961_v40 = vld [vmem:[%s1075_s8 + $0xc] ss:$16 sps:$4 sm:$0xff]   ;;  %600 = vmatprep.mubr.bf16.mxu0 %v958_v38  ;;  %v286_v48 = vld [vmem:[#allocation2] sm:$0xff] }
  0x30   : > { %641 = vmatprep.mubr.bf16.mxu1 %v961_v40  ;;  %v287_v56 = vld [vmem:[#allocation2 + $0x8] sm:$0xff] }
  0x31   : > { %846 = vmatpush3.bf16.msra.mxu0 %v938_v19 }
  0x32   : > { %868 = vmatpush3.bf16.msra.mxu1 %v939_v20  ;;  %847 = vmatprep.subr.bf16.mxu0 %v940_v21 }
  0x33   : > { %869 = vmatprep.subr.bf16.mxu1 %v941_v22 }
  0x35   : > { %848 = vmatpush3.bf16.msra.mxu0 %v942_v23 }
  0x36   : > { %870 = vmatpush3.bf16.msra.mxu1 %v943_v24  ;;  %849 = vmatprep.subr.bf16.mxu0 %v944_v25 }
  0x37   : > { %871 = vmatprep.subr.bf16.mxu1 %v945_v26 }
  0x39   : > { %850 = vmatpush3.bf16.msra.mxu0 %v946_v27 }
  0x3a   : > { %872 = vmatpush3.bf16.msra.mxu1 %v947_v28  ;;  %851 = vmatprep.subr.bf16.mxu0 %v948_v29 }
  0x3b   : > { %873 = vmatprep.subr.bf16.mxu1 %v949_v30 }
  0x3d   : > { %852 = vmatpush3.bf16.msra.mxu0 %v950_v31 }
  0x3e   : > { %874 = vmatpush3.bf16.msra.mxu1 %v951_v32  ;;  %853 = vmatprep.subr.bf16.mxu0 %v952_v33 }
  0x3f   : > { %875 = vmatprep.subr.bf16.mxu1 %v953_v34 }
  0x41   : > { %854 = vmatpush3.bf16.msra.mxu0 %v954_v35 }
  0x42   : > { %876 = vmatpush3.bf16.msra.mxu1 %v955_v36 }
  0x44   : > { %601 = vmatmul.mubr.bf16.vlgmr.msra.gmra.mxu0 %v956_v37 }
  0x45   : > { %642 = vmatmul.mubr.bf16.vlgmr.msra.gmra.mxu1 %v959_v39 }
 0x104   : > { %v855_v41 = vpop.f32.mrf.mxu0 }
 0x105   : > { %v877_v42 = vpop.f32.mrf.mxu1 }
 0x106   : > { %v856_v43 = vpop.f32.mrf.mxu0 }
 0x107   : > { %v857_v44 = vadd.f32 %v856_v43, %v855_v41  ;;  %v878_v45 = vpop.f32.mrf.mxu1 }
 0x108   : > { %v879_v46 = vadd.f32 %v878_v45, %v877_v42  ;;  %v858_v47 = vpop.f32.mrf.mxu0 }
 0x109   : > { %v880_v49 = vpop.f32.mrf.mxu1 }
 0x10a   : > { %v644_v50 = vadd.f32 %v879_v46, %v857_v44  ;;  %v859_v51 = vpop.f32.mrf.mxu0 }
 0x10b   : > { %v860_v52 = vadd.f32 %v859_v51, %v858_v47  ;;  %v881_v53 = vpop.f32.mrf.mxu1 }
 0x10c   : > { %v650_v54 = vadd.f32 %v644_v50, %v286_v48  ;;  %v882_v55 = vadd.f32 %v881_v53, %v880_v49 }
 0x10e   : > { %652 = vst [vmem:[#allocation2] sm:$0xff] %v650_v54  ;;  %v647_v57 = vadd.f32 %v882_v55, %v860_v52  ;;  %657 = sbr.rel (%p832_p11) target bundleno = 287 (0x11f), region = 63 }
 0x110   : > { %v651_v58 = vadd.f32 %v647_v57, %v287_v56 }
 0x112   : > { %653 = vst [vmem:[#allocation2 + $0x8] sm:$0xff] %v651_v58 }
 0x113   : > { %v833_v60 = vld [vmem:[%s1141_s2] ss:$0 sm:$0xff] }
 0x115   : > { %v658_v59 = vld [vmem:[#allocation2] sm:$0xff] }
 0x116   : > { %v667_v62 = vadd.f32 %v833_v60, %v658_v59 }
 0x118   : > { %v669_v0 = vmax.f32 %v667_v62, 0.0 }
 0x119   : > { %v659_v61 = vld [vmem:[#allocation2 + $0x8] sm:$0xff] }
 0x11a   : > { %v668_v63 = vadd.f32 %v833_v60, %v659_v61  ;;  %671 = vst [vmem:[%s1142_s3] sm:$0xff] %v669_v0 }
 0x11c   : > { %v670_v1 = vmax.f32 %v668_v63, 0.0 }
 0x11e   : > { %672 = vst [vmem:[%s1142_s3 + $0x8] sm:$0xff] %v670_v1 }
 0x11f PF: > { %s13_s16 = sadd.s32 1, %s1000_s16   ;;  %s1143_s12 = smov %s988_s13 }
 0x120   : > { %p10_p12 = scmp.ge.s32.totalorder %s13_s16, 8   ;;  %s1144_s13 = smov %s1058_s20 }
 0x121   : > { %s1145_s14 = smov %s996_s15  ;;  %s1146_s15 = smov %s1148_s17 }
 0x122   :  { %12 = sbr.rel (!%p10_p12) target bundleno = 3 (0x3), region = 104 }

// kernel: _lambda_.67
= control target key start
LH: loop header
LB: loop body
LE: loop exit
PB: predicated region body
PF: predicated region fallthrough
CT: control target
= control target key end

     0   :  { %s1023_s12 = smov 0   ;;  %s1025_s13 = smov 0   ;;  %s1139_s0 = inlined_call_operand.vmem [shape: bf16[16,2048], index: 0, kind: input, shape index: {}]   ;;  %s1140_s1 = inlined_call_operand.vmem [shape: bf16[2048,128], index: 1, kind: input, shape index: {}]   ;;  %s1141_s2 = inlined_call_operand.vmem [shape: f32[1,128], index: 2, kind: input, shape index: {}]   ;;  %s1142_s3 = inlined_call_operand.vmem [shape: f32[16,128], index: 3, kind: output, shape index: {}]  }
   0x1   :  { %s1027_s14 = smov 0   ;;  %s1029_s15 = smov 0  }
   0x2   :  { %s1031_s16 = smov 0  }
   0x3 LB: > { %s25_s17 = sadd.s32 1, %s996_s15  ;;  %p48_p1 = scmp.ne.s32.totalorder %s988_s13, %s984_s12  ;;  %s1000_s16 = sphi %s1031_s16, %s13_s16   ;;  %s996_s15 = sphi %s1029_s15, %s1146_s15   ;;  %s992_s14 = sphi %s1027_s14, %s1145_s14   ;;  %s988_s13 = sphi %s1025_s13, %s1144_s13   ;;  %s984_s12 = sphi %s1023_s12, %s1143_s12  }
   0x4   : > { %p26_p0 = scmp.ge.s32.totalorder %s25_s17, 4  ;;  %p49_p2 = scmp.eq.s32.totalorder %s1000_s16, 0 }
   0x5   : > { %s41_s19 = sadd.s32 1, %s988_s13  ;;  %p787_p5 = scmp.ge.s32.totalorder %s1000_s16, 4 }
   0x6   : > { %s1148_s17 = smov (%p26_p0, %s25_s17), 0  ;;  %p50_p3 = por %p49_p2, %p48_p1 }
   0x7   : > { %s37_s18 = ssub.s32 %s996_s15, %s1148_s17  ;;  %162 = sbr.rel (%p787_p5) target bundleno = 18 (0x12), region = 20 }
   0x8   : > { %p39_p4 = scmp.eq.s32.totalorder %s37_s18, 0 }
   0xa   : > { %s1058_s20 = scalar_select %p39_p4, %s988_s13, %s41_s19  }
   0xc   : > { %165 = sbr.rel (!%p50_p3) target bundleno = 18 (0x12), region = 24  ;;  %s167_s21 = sand.u32 (%p50_p3), 1, %s988_s13  }
   0xd   : > { %s838_s22 = sshll.u32 (%p50_p3), %s996_s15, 4  ;;  %s788_s23 = sshll.u32 (%p50_p3), %s167_s21, 5 }
   0xe   : > { %s175_s26 = scalar_lea.vmem (%p50_p3), %s1139_s0, %s838_s22  ;;  %s169_s27 = scalar_lea.vmem (%p50_p3), [#allocation3], %s788_s23 }
   0xf   : > { %v188_v0 = vld [vmem:[%s175_s26] sm:$0xff] (%p50_p3)  ;;  %v190_v1 = vld [vmem:[%s175_s26 + $0x8] sm:$0xff] (%p50_p3) }
  0x10   : > { %v192_v2 = vld [vmem:[%s175_s26 + $0x40] sm:$0xff] (%p50_p3)  ;;  %189 = vst [vmem:[%s169_s27] sm:$0xff] (%p50_p3), %v188_v0  ;;  %191 = vst [vmem:[%s169_s27 + $0x8] sm:$0xff] (%p50_p3), %v190_v1  ;;  %v194_v3 = vld [vmem:[%s175_s26 + $0x48] sm:$0xff] (%p50_p3) }
  0x11   : > { %193 = vst [vmem:[%s169_s27 + $0x10] sm:$0xff] %v192_v2  ;;  %195 = vst [vmem:[%s169_s27 + $0x18] sm:$0xff] %v194_v3 }
  0x12 PF: > { %p791_p6 = scmp.ge.s32.totalorder %s1000_s16, 1  ;;  %p212_p7 = scmp.lt.s32.totalorder %s1000_s16, 5 }
  0x14   : > { %p213_p8 = pnand %p791_p6, %p212_p7 }
  0x15   : > { %s219_s28 = sand.u32 (!%p213_p8), 1, %s984_s12   ;;  %s793_s29 = sshll.u32 (!%p213_p8), %s992_s14, 6 }
  0x16   : > { %216 = sbr.rel (%p213_p8) target bundleno = 287 (0x11f), region = 51  ;;  %s792_s30 = sshll.u32 (!%p213_p8), %s219_s28, 5 }
  0x17   : > { %p259_p9 = scmp.lt.s32.totalorder (!%p213_p8), %s793_s29, 255  ;;  %s1075_s8 = scalar_lea.vmem (!%p213_p8), [#allocation3], %s792_s30 }
  0x18   : > { %p795_p10 = scmp.ne.s32.totalorder (!%p213_p8), %s992_s14, 0 }
  0x1b   : > { %s1150_s29 = smov (!%p259_p9, %s793_s29), 255  ;;  %283 = sbr.rel (%p795_p10) target bundleno = 34 (0x22), region = 59 }
  0x1c   : > { %s794_s4 = sshll.u32 %s1150_s29, 2 }
  0x1d   : > { %s1073_s7 = scalar_lea.vmem %s1140_s1, %s794_s4 }
  0x20   : > { %v1002_v4 = vmov 0.0  }
  0x21   : > { %284 = vst [vmem:[#allocation2] sm:$0xff] %v1002_v4  ;;  %285 = vst [vmem:[#allocation2 + $0x8] sm:$0xff] %v1002_v4 }
  0x22 PF: > { %v924_v5 = vld [vmem:[%s1073_s7 + $0x78] sm:$0xff]   ;;  %v928_v9 = vld [vmem:[%s1073_s7 + $0x70] sm:$0xff]   ;;  %v932_v13 = vld [vmem:[%s1073_s7 + $0x68] sm:$0xff]   ;;  %p832_p11 = scmp.ne.s32.totalorder %s992_s14, 3 }
  0x23   : > { %v925_v6 = vld [vmem:[%s1073_s7 + $0xf8] sm:$0xff]   ;;  %839 = vmatprep.subr.bf16.mxu0 %v924_v5  ;;  %v929_v10 = vld [vmem:[%s1073_s7 + $0xf0] sm:$0xff]   ;;  %v933_v14 = vld [vmem:[%s1073_s7 + $0xe8] sm:$0xff]  }
  0x24   : > { %v926_v7 = vld [vmem:[%s1073_s7 + $0x38] sm:$0xff]   ;;  %861 = vmatprep.subr.bf16.mxu1 %v925_v6  ;;  %v930_v11 = vld [vmem:[%s1073_s7 + $0x30] sm:$0xff]   ;;  %v934_v15 = vld [vmem:[%s1073_s7 + $0x28] sm:$0xff]  }
  0x25   : > { %v927_v8 = vld [vmem:[%s1073_s7 + $0xb8] sm:$0xff]   ;;  %840 = vmatpush3.bf16.msra.mxu0 %v926_v7  ;;  %v931_v12 = vld [vmem:[%s1073_s7 + $0xb0] sm:$0xff]   ;;  %v935_v16 = vld [vmem:[%s1073_s7 + $0xa8] sm:$0xff]  }
  0x26   : > { %862 = vmatpush3.bf16.msra.mxu1 %v927_v8  ;;  %841 = vmatprep.subr.bf16.mxu0 %v928_v9  ;;  %v936_v17 = vld [vmem:[%s1073_s7 + $0x60] sm:$0xff]   ;;  %v940_v21 = vld [vmem:[%s1073_s7 + $0x58] sm:$0xff]   ;;  %v944_v25 = vld [vmem:[%s1073_s7 + $0x50] sm:$0xff]  }
  0x27   : > { %863 = vmatprep.subr.bf16.mxu1 %v929_v10  ;;  %v937_v18 = vld [vmem:[%s1073_s7 + $0xe0] sm:$0xff]   ;;  %v941_v22 = vld [vmem:[%s1073_s7 + $0xd8] sm:$0xff]   ;;  %v945_v26 = vld [vmem:[%s1073_s7 + $0xd0] sm:$0xff]  }
  0x28   : > { %v938_v19 = vld [vmem:[%s1073_s7 + $0x20] sm:$0xff]   ;;  %v942_v23 = vld [vmem:[%s1073_s7 + $0x18] sm:$0xff]   ;;  %v946_v27 = vld [vmem:[%s1073_s7 + $0x10] sm:$0xff]  }
  0x29   : > { %842 = vmatpush3.bf16.msra.mxu0 %v930_v11  ;;  %v939_v20 = vld [vmem:[%s1073_s7 + $0xa0] sm:$0xff]   ;;  %v943_v24 = vld [vmem:[%s1073_s7 + $0x98] sm:$0xff]   ;;  %v947_v28 = vld [vmem:[%s1073_s7 + $0x90] sm:$0xff]  }
  0x2a   : > { %864 = vmatpush3.bf16.msra.mxu1 %v931_v12  ;;  %843 = vmatprep.subr.bf16.mxu0 %v932_v13  ;;  %v948_v29 = vld [vmem:[%s1073_s7 + $0x48] sm:$0xff]   ;;  %v952_v33 = vld [vmem:[%s1073_s7 + $0x40] sm:$0xff]  }
  0x2b   : > { %865 = vmatprep.subr.bf16.mxu1 %v933_v14  ;;  %v949_v30 = vld [vmem:[%s1073_s7 + $0xc8] sm:$0xff]   ;;  %v953_v34 = vld [vmem:[%s1073_s7 + $0xc0] sm:$0xff]  }
  0x2c   : > { %v950_v31 = vld [vmem:[%s1073_s7 + $0x8] sm:$0xff]   ;;  %v954_v35 = vld [vmem:[%s1073_s7] sm:$0xff]  }
  0x2d   : > { %844 = vmatpush3.bf16.msra.mxu0 %v934_v15  ;;  %v951_v32 = vld [vmem:[%s1073_s7 + $0x88] sm:$0xff]   ;;  %v955_v36 = vld [vmem:[%s1073_s7 + $0x80] sm:$0xff]  }
  0x2e   : > { %866 = vmatpush3.bf16.msra.mxu1 %v935_v16  ;;  %845 = vmatprep.subr.bf16.mxu0 %v936_v17  ;;  %v956_v37 = vld [vmem:[%s1075_s8] ss:$16 sps:$4 sm:$0xff]   ;;  %v958_v38 = vld [vmem:[%s1075_s8 + $0x4] ss:$16 sps:$4 sm:$0xff]   ;;  %v959_v39 = vld [vmem:[%s1075_s8 + $0x8] ss:$16 sps:$4 sm:$0xff]  }
  0x2f   : > { %867 = vmatprep.subr.bf16.mxu1 %v937_v18  ;;  %v961_v40 = vld [vmem:[%s1075_s8 + $0xc] ss:$16 sps:$4 sm:$0xff]   ;;  %600 = vmatprep.mubr.bf16.mxu0 %v958_v38  ;;  %v286_v48 = vld [vmem:[#allocation2] sm:$0xff] }
  0x30   : > { %641 = vmatprep.mubr.bf16.mxu1 %v961_v40  ;;  %v287_v56 = vld [vmem:[#allocation2 + $0x8] sm:$0xff] }
  0x31   : > { %846 = vmatpush3.bf16.msra.mxu0 %v938_v19 }
  0x32   : > { %868 = vmatpush3.bf16.msra.mxu1 %v939_v20  ;;  %847 = vmatprep.subr.bf16.mxu0 %v940_v21 }
  0x33   : > { %869 = vmatprep.subr.bf16.mxu1 %v941_v22 }
  0x35   : > { %848 = vmatpush3.bf16.msra.mxu0 %v942_v23 }
  0x36   : > { %870 = vmatpush3.bf16.msra.mxu1 %v943_v24  ;;  %849 = vmatprep.subr.bf16.mxu0 %v944_v25 }
  0x37   : > { %871 = vmatprep.subr.bf16.mxu1 %v945_v26 }
  0x39   : > { %850 = vmatpush3.bf16.msra.mxu0 %v946_v27 }
  0x3a   : > { %872 = vmatpush3.bf16.msra.mxu1 %v947_v28  ;;  %851 = vmatprep.subr.bf16.mxu0 %v948_v29 }
  0x3b   : > { %873 = vmatprep.subr.bf16.mxu1 %v949_v30 }
  0x3d   : > { %852 = vmatpush3.bf16.msra.mxu0 %v950_v31 }
  0x3e   : > { %874 = vmatpush3.bf16.msra.mxu1 %v951_v32  ;;  %853 = vmatprep.subr.bf16.mxu0 %v952_v33 }
  0x3f   : > { %875 = vmatprep.subr.bf16.mxu1 %v953_v34 }
  0x41   : > { %854 = vmatpush3.bf16.msra.mxu0 %v954_v35 }
  0x42   : > { %876 = vmatpush3.bf16.msra.mxu1 %v955_v36 }
  0x44   : > { %601 = vmatmul.mubr.bf16.vlgmr.msra.gmra.mxu0 %v956_v37 }
  0x45   : > { %642 = vmatmul.mubr.bf16.vlgmr.msra.gmra.mxu1 %v959_v39 }
 0x104   : > { %v855_v41 = vpop.f32.mrf.mxu0 }
 0x105   : > { %v877_v42 = vpop.f32.mrf.mxu1 }
 0x106   : > { %v856_v43 = vpop.f32.mrf.mxu0 }
 0x107   : > { %v857_v44 = vadd.f32 %v856_v43, %v855_v41  ;;  %v878_v45 = vpop.f32.mrf.mxu1 }
 0x108   : > { %v879_v46 = vadd.f32 %v878_v45, %v877_v42  ;;  %v858_v47 = vpop.f32.mrf.mxu0 }
 0x109   : > { %v880_v49 = vpop.f32.mrf.mxu1 }
 0x10a   : > { %v644_v50 = vadd.f32 %v879_v46, %v857_v44  ;;  %v859_v51 = vpop.f32.mrf.mxu0 }
 0x10b   : > { %v860_v52 = vadd.f32 %v859_v51, %v858_v47  ;;  %v881_v53 = vpop.f32.mrf.mxu1 }
 0x10c   : > { %v650_v54 = vadd.f32 %v644_v50, %v286_v48  ;;  %v882_v55 = vadd.f32 %v881_v53, %v880_v49 }
 0x10e   : > { %652 = vst [vmem:[#allocation2] sm:$0xff] %v650_v54  ;;  %v647_v57 = vadd.f32 %v882_v55, %v860_v52  ;;  %657 = sbr.rel (%p832_p11) target bundleno = 287 (0x11f), region = 63 }
 0x110   : > { %v651_v58 = vadd.f32 %v647_v57, %v287_v56 }
 0x112   : > { %653 = vst [vmem:[#allocation2 + $0x8] sm:$0xff] %v651_v58 }
 0x113   : > { %v833_v60 = vld [vmem:[%s1141_s2] ss:$0 sm:$0xff] }
 0x115   : > { %v658_v59 = vld [vmem:[#allocation2] sm:$0xff] }
 0x116   : > { %v667_v62 = vadd.f32 %v833_v60, %v658_v59 }
 0x118   : > { %v669_v0 = vmax.f32 %v667_v62, 0.0 }
 0x119   : > { %v659_v61 = vld [vmem:[#allocation2 + $0x8] sm:$0xff] }
 0x11a   : > { %v668_v63 = vadd.f32 %v833_v60, %v659_v61  ;;  %671 = vst [vmem:[%s1142_s3] sm:$0xff] %v669_v0 }
 0x11c   : > { %v670_v1 = vmax.f32 %v668_v63, 0.0 }
 0x11e   : > { %672 = vst [vmem:[%s1142_s3 + $0x8] sm:$0xff] %v670_v1 }
 0x11f PF: > { %s13_s16 = sadd.s32 1, %s1000_s16   ;;  %s1143_s12 = smov %s988_s13 }
 0x120   : > { %p10_p12 = scmp.ge.s32.totalorder %s13_s16, 6   ;;  %s1144_s13 = smov %s1058_s20 }
 0x121   : > { %s1145_s14 = smov %s996_s15  ;;  %s1146_s15 = smov %s1148_s17 }
 0x122   :  { %12 = sbr.rel (!%p10_p12) target bundleno = 3 (0x3), region = 104 }

// kernel: _lambda_.69
= control target key start
LH: loop header
LB: loop body
LE: loop exit
PB: predicated region body
PF: predicated region fallthrough
CT: control target
= control target key end

     0   :  { %s1021_s12 = smov 0   ;;  %s1023_s13 = smov 0   ;;  %s1137_s0 = inlined_call_operand.vmem [shape: bf16[16,3072], index: 0, kind: input, shape index: {}]   ;;  %s1138_s1 = inlined_call_operand.vmem [shape: bf16[3072,128], index: 1, kind: input, shape index: {}]   ;;  %s1139_s2 = inlined_call_operand.vmem [shape: f32[1,128], index: 2, kind: input, shape index: {}]   ;;  %s1140_s3 = inlined_call_operand.vmem [shape: f32[16,128], index: 3, kind: output, shape index: {}]  }
   0x1   :  { %s1025_s14 = smov 0   ;;  %s1027_s15 = smov 0  }
   0x2   :  { %s1029_s16 = smov 0  }
   0x3 LB: > { %s25_s17 = sadd.s32 1, %s994_s15  ;;  %p48_p1 = scmp.ne.s32.totalorder %s986_s13, %s982_s12  ;;  %s998_s16 = sphi %s1029_s16, %s13_s16   ;;  %s994_s15 = sphi %s1027_s15, %s1144_s15   ;;  %s990_s14 = sphi %s1025_s14, %s1143_s14   ;;  %s986_s13 = sphi %s1023_s13, %s1142_s13   ;;  %s982_s12 = sphi %s1021_s12, %s1141_s12  }
   0x4   : > { %p26_p0 = scmp.ge.s32.totalorder %s25_s17, 6  ;;  %p49_p2 = scmp.eq.s32.totalorder %s998_s16, 0 }
   0x5   : > { %s41_s19 = sadd.s32 1, %s986_s13  ;;  %p785_p5 = scmp.ge.s32.totalorder %s998_s16, 6 }
   0x6   : > { %s1146_s17 = smov (%p26_p0, %s25_s17), 0  ;;  %p50_p3 = por %p49_p2, %p48_p1 }
   0x7   : > { %s37_s18 = ssub.s32 %s994_s15, %s1146_s17  ;;  %162 = sbr.rel (%p785_p5) target bundleno = 18 (0x12), region = 20 }
   0x8   : > { %p39_p4 = scmp.eq.s32.totalorder %s37_s18, 0 }
   0xa   : > { %s1056_s20 = scalar_select %p39_p4, %s986_s13, %s41_s19  }
   0xc   : > { %165 = sbr.rel (!%p50_p3) target bundleno = 18 (0x12), region = 24  ;;  %s167_s21 = sand.u32 (%p50_p3), 1, %s986_s13  }
   0xd   : > { %s836_s22 = sshll.u32 (%p50_p3), %s994_s15, 4  ;;  %s786_s23 = sshll.u32 (%p50_p3), %s167_s21, 5 }
   0xe   : > { %s175_s26 = scalar_lea.vmem (%p50_p3), %s1137_s0, %s836_s22  ;;  %s169_s27 = scalar_lea.vmem (%p50_p3), [#allocation3], %s786_s23 }
   0xf   : > { %v188_v0 = vld [vmem:[%s175_s26] sm:$0xff] (%p50_p3)  ;;  %v190_v1 = vld [vmem:[%s175_s26 + $0x8] sm:$0xff] (%p50_p3) }
  0x10   : > { %v192_v2 = vld [vmem:[%s175_s26 + $0x60] sm:$0xff] (%p50_p3)  ;;  %189 = vst [vmem:[%s169_s27] sm:$0xff] (%p50_p3), %v188_v0  ;;  %191 = vst [vmem:[%s169_s27 + $0x8] sm:$0xff] (%p50_p3), %v190_v1  ;;  %v194_v3 = vld [vmem:[%s175_s26 + $0x68] sm:$0xff] (%p50_p3) }
  0x11   : > { %193 = vst [vmem:[%s169_s27 + $0x10] sm:$0xff] %v192_v2  ;;  %195 = vst [vmem:[%s169_s27 + $0x18] sm:$0xff] %v194_v3 }
  0x12 PF: > { %p789_p6 = scmp.ge.s32.totalorder %s998_s16, 1  ;;  %p212_p7 = scmp.lt.s32.totalorder %s998_s16, 7 }
  0x14   : > { %p213_p8 = pnand %p789_p6, %p212_p7 }
  0x15   : > { %s219_s28 = sand.u32 (!%p213_p8), 1, %s982_s12   ;;  %s791_s29 = sshll.u32 (!%p213_p8), %s990_s14, 6 }
  0x16   : > { %216 = sbr.rel (%p213_p8) target bundleno = 285 (0x11d), region = 51  ;;  %s790_s30 = sshll.u32 (!%p213_p8), %s219_s28, 5 }
  0x17   : > { %p259_p9 = scmp.lt.s32.totalorder (!%p213_p8), %s791_s29, 383  ;;  %s1073_s8 = scalar_lea.vmem (!%p213_p8), [#allocation3], %s790_s30 }
  0x18   : > { %p793_p10 = scmp.ne.s32.totalorder (!%p213_p8), %s990_s14, 0 }
  0x1b   : > { %s1148_s29 = smov (!%p259_p9, %s791_s29), 383  ;;  %283 = sbr.rel (%p793_p10) target bundleno = 34 (0x22), region = 59 }
  0x1c   : > { %s792_s4 = sshll.u32 %s1148_s29, 2 }
  0x1d   : > { %s1071_s7 = scalar_lea.vmem %s1138_s1, %s792_s4 }
  0x20   : > { %v1000_v4 = vmov 0.0  }
  0x21   : > { %284 = vst [vmem:[#allocation2] sm:$0xff] %v1000_v4  ;;  %285 = vst [vmem:[#allocation2 + $0x8] sm:$0xff] %v1000_v4 }
  0x22 PF: > { %v922_v5 = vld [vmem:[%s1071_s7 + $0x78] sm:$0xff]   ;;  %v926_v9 = vld [vmem:[%s1071_s7 + $0x70] sm:$0xff]   ;;  %v930_v13 = vld [vmem:[%s1071_s7 + $0x68] sm:$0xff]   ;;  %p830_p11 = scmp.ne.s32.totalorder %s990_s14, 5 }
  0x23   : > { %v923_v6 = vld [vmem:[%s1071_s7 + $0xf8] sm:$0xff]   ;;  %837 = vmatprep.subr.bf16.mxu0 %v922_v5  ;;  %v927_v10 = vld [vmem:[%s1071_s7 + $0xf0] sm:$0xff]   ;;  %v931_v14 = vld [vmem:[%s1071_s7 + $0xe8] sm:$0xff]  }
  0x24   : > { %v924_v7 = vld [vmem:[%s1071_s7 + $0x38] sm:$0xff]   ;;  %859 = vmatprep.subr.bf16.mxu1 %v923_v6  ;;  %v928_v11 = vld [vmem:[%s1071_s7 + $0x30] sm:$0xff]   ;;  %v932_v15 = vld [vmem:[%s1071_s7 + $0x28] sm:$0xff]  }
  0x25   : > { %v925_v8 = vld [vmem:[%s1071_s7 + $0xb8] sm:$0xff]   ;;  %838 = vmatpush3.bf16.msra.mxu0 %v924_v7  ;;  %v929_v12 = vld [vmem:[%s1071_s7 + $0xb0] sm:$0xff]   ;;  %v933_v16 = vld [vmem:[%s1071_s7 + $0xa8] sm:$0xff]  }
  0x26   : > { %860 = vmatpush3.bf16.msra.mxu1 %v925_v8  ;;  %839 = vmatprep.subr.bf16.mxu0 %v926_v9  ;;  %v934_v17 = vld [vmem:[%s1071_s7 + $0x60] sm:$0xff]   ;;  %v938_v21 = vld [vmem:[%s1071_s7 + $0x58] sm:$0xff]   ;;  %v942_v25 = vld [vmem:[%s1071_s7 + $0x50] sm:$0xff]  }
  0x27   : > { %861 = vmatprep.subr.bf16.mxu1 %v927_v10  ;;  %v935_v18 = vld [vmem:[%s1071_s7 + $0xe0] sm:$0xff]   ;;  %v939_v22 = vld [vmem:[%s1071_s7 + $0xd8] sm:$0xff]   ;;  %v943_v26 = vld [vmem:[%s1071_s7 + $0xd0] sm:$0xff]  }
  0x28   : > { %v936_v19 = vld [vmem:[%s1071_s7 + $0x20] sm:$0xff]   ;;  %v940_v23 = vld [vmem:[%s1071_s7 + $0x18] sm:$0xff]   ;;  %v944_v27 = vld [vmem:[%s1071_s7 + $0x10] sm:$0xff]  }
  0x29   : > { %840 = vmatpush3.bf16.msra.mxu0 %v928_v11  ;;  %v937_v20 = vld [vmem:[%s1071_s7 + $0xa0] sm:$0xff]   ;;  %v941_v24 = vld [vmem:[%s1071_s7 + $0x98] sm:$0xff]   ;;  %v945_v28 = vld [vmem:[%s1071_s7 + $0x90] sm:$0xff]  }
  0x2a   : > { %862 = vmatpush3.bf16.msra.mxu1 %v929_v12  ;;  %841 = vmatprep.subr.bf16.mxu0 %v930_v13  ;;  %v946_v29 = vld [vmem:[%s1071_s7 + $0x48] sm:$0xff]   ;;  %v950_v33 = vld [vmem:[%s1071_s7 + $0x40] sm:$0xff]  }
  0x2b   : > { %863 = vmatprep.subr.bf16.mxu1 %v931_v14  ;;  %v947_v30 = vld [vmem:[%s1071_s7 + $0xc8] sm:$0xff]   ;;  %v951_v34 = vld [vmem:[%s1071_s7 + $0xc0] sm:$0xff]  }
  0x2c   : > { %v948_v31 = vld [vmem:[%s1071_s7 + $0x8] sm:$0xff]   ;;  %v952_v35 = vld [vmem:[%s1071_s7] sm:$0xff]  }
  0x2d   : > { %842 = vmatpush3.bf16.msra.mxu0 %v932_v15  ;;  %v949_v32 = vld [vmem:[%s1071_s7 + $0x88] sm:$0xff]   ;;  %v953_v36 = vld [vmem:[%s1071_s7 + $0x80] sm:$0xff]  }
  0x2e   : > { %864 = vmatpush3.bf16.msra.mxu1 %v933_v16  ;;  %843 = vmatprep.subr.bf16.mxu0 %v934_v17  ;;  %v954_v37 = vld [vmem:[%s1073_s8] ss:$16 sps:$4 sm:$0xff]   ;;  %v956_v38 = vld [vmem:[%s1073_s8 + $0x4] ss:$16 sps:$4 sm:$0xff]   ;;  %v957_v39 = vld [vmem:[%s1073_s8 + $0x8] ss:$16 sps:$4 sm:$0xff]  }
  0x2f   : > { %865 = vmatprep.subr.bf16.mxu1 %v935_v18  ;;  %v959_v40 = vld [vmem:[%s1073_s8 + $0xc] ss:$16 sps:$4 sm:$0xff]   ;;  %600 = vmatprep.mubr.bf16.mxu0 %v956_v38  ;;  %v286_v48 = vld [vmem:[#allocation2] sm:$0xff] }
  0x30   : > { %641 = vmatprep.mubr.bf16.mxu1 %v959_v40  ;;  %v287_v56 = vld [vmem:[#allocation2 + $0x8] sm:$0xff] }
  0x31   : > { %844 = vmatpush3.bf16.msra.mxu0 %v936_v19 }
  0x32   : > { %866 = vmatpush3.bf16.msra.mxu1 %v937_v20  ;;  %845 = vmatprep.subr.bf16.mxu0 %v938_v21 }
  0x33   : > { %867 = vmatprep.subr.bf16.mxu1 %v939_v22 }
  0x35   : > { %846 = vmatpush3.bf16.msra.mxu0 %v940_v23 }
  0x36   : > { %868 = vmatpush3.bf16.msra.mxu1 %v941_v24  ;;  %847 = vmatprep.subr.bf16.mxu0 %v942_v25 }
  0x37   : > { %869 = vmatprep.subr.bf16.mxu1 %v943_v26 }
  0x39   : > { %848 = vmatpush3.bf16.msra.mxu0 %v944_v27 }
  0x3a   : > { %870 = vmatpush3.bf16.msra.mxu1 %v945_v28  ;;  %849 = vmatprep.subr.bf16.mxu0 %v946_v29 }
  0x3b   : > { %871 = vmatprep.subr.bf16.mxu1 %v947_v30 }
  0x3d   : > { %850 = vmatpush3.bf16.msra.mxu0 %v948_v31 }
  0x3e   : > { %872 = vmatpush3.bf16.msra.mxu1 %v949_v32  ;;  %851 = vmatprep.subr.bf16.mxu0 %v950_v33 }
  0x3f   : > { %873 = vmatprep.subr.bf16.mxu1 %v951_v34 }
  0x41   : > { %852 = vmatpush3.bf16.msra.mxu0 %v952_v35 }
  0x42   : > { %874 = vmatpush3.bf16.msra.mxu1 %v953_v36 }
  0x44   : > { %601 = vmatmul.mubr.bf16.vlgmr.msra.gmra.mxu0 %v954_v37 }
  0x45   : > { %642 = vmatmul.mubr.bf16.vlgmr.msra.gmra.mxu1 %v957_v39 }
 0x104   : > { %v853_v41 = vpop.f32.mrf.mxu0 }
 0x105   : > { %v875_v42 = vpop.f32.mrf.mxu1 }
 0x106   : > { %v854_v43 = vpop.f32.mrf.mxu0 }
 0x107   : > { %v855_v44 = vadd.f32 %v854_v43, %v853_v41  ;;  %v876_v45 = vpop.f32.mrf.mxu1 }
 0x108   : > { %v877_v46 = vadd.f32 %v876_v45, %v875_v42  ;;  %v856_v47 = vpop.f32.mrf.mxu0 }
 0x109   : > { %v878_v49 = vpop.f32.mrf.mxu1 }
 0x10a   : > { %v644_v50 = vadd.f32 %v877_v46, %v855_v44  ;;  %v857_v51 = vpop.f32.mrf.mxu0 }
 0x10b   : > { %v858_v52 = vadd.f32 %v857_v51, %v856_v47  ;;  %v879_v53 = vpop.f32.mrf.mxu1 }
 0x10c   : > { %v650_v54 = vadd.f32 %v644_v50, %v286_v48  ;;  %v880_v55 = vadd.f32 %v879_v53, %v878_v49 }
 0x10e   : > { %652 = vst [vmem:[#allocation2] sm:$0xff] %v650_v54  ;;  %v647_v57 = vadd.f32 %v880_v55, %v858_v52  ;;  %657 = sbr.rel (%p830_p11) target bundleno = 285 (0x11d), region = 63 }
 0x110   : > { %v651_v58 = vadd.f32 %v647_v57, %v287_v56 }
 0x112   : > { %653 = vst [vmem:[#allocation2 + $0x8] sm:$0xff] %v651_v58 }
 0x113   : > { %v831_v60 = vld [vmem:[%s1139_s2] ss:$0 sm:$0xff] }
 0x115   : > { %v658_v59 = vld [vmem:[#allocation2] sm:$0xff] }
 0x116   : > { %v667_v62 = vadd.f32 %v831_v60, %v658_v59 }
 0x118   : > { %669 = vst [vmem:[%s1140_s3] sm:$0xff] %v667_v62 }
 0x119   : > { %v659_v61 = vld [vmem:[#allocation2 + $0x8] sm:$0xff] }
 0x11a   : > { %v668_v63 = vadd.f32 %v831_v60, %v659_v61 }
 0x11c   : > { %670 = vst [vmem:[%s1140_s3 + $0x8] sm:$0xff] %v668_v63 }
 0x11d PF: > { %s13_s16 = sadd.s32 1, %s998_s16   ;;  %s1141_s12 = smov %s986_s13 }
 0x11e   : > { %p10_p12 = scmp.ge.s32.totalorder %s13_s16, 8   ;;  %s1142_s13 = smov %s1056_s20 }
 0x11f   : > { %s1143_s14 = smov %s994_s15  ;;  %s1144_s15 = smov %s1146_s17 }
 0x120   :  { %12 = sbr.rel (!%p10_p12) target bundleno = 3 (0x3), region = 104 }

// kernel: _lambda_.72
= control target key start
LH: loop header
LB: loop body
LE: loop exit
PB: predicated region body
PF: predicated region fallthrough
CT: control target
= control target key end

     0   :  { %s1023_s12 = smov 0   ;;  %s1025_s13 = smov 0   ;;  %s1139_s0 = inlined_call_operand.vmem [shape: bf16[16,8704], index: 0, kind: input, shape index: {}]   ;;  %s1140_s1 = inlined_call_operand.vmem [shape: bf16[8704,128], index: 1, kind: input, shape index: {}]   ;;  %s1141_s2 = inlined_call_operand.vmem [shape: f32[1,128], index: 2, kind: input, shape index: {}]   ;;  %s1142_s3 = inlined_call_operand.vmem [shape: f32[16,128], index: 3, kind: output, shape index: {}]  }
   0x1   :  { %s1027_s14 = smov 0   ;;  %s1029_s15 = smov 0  }
   0x2   :  { %s1031_s16 = smov 0  }
   0x3 LB: > { %s25_s17 = sadd.s32 1, %s996_s15  ;;  %p48_p1 = scmp.ne.s32.totalorder %s988_s13, %s984_s12  ;;  %s1000_s16 = sphi %s1031_s16, %s13_s16   ;;  %s996_s15 = sphi %s1029_s15, %s1146_s15   ;;  %s992_s14 = sphi %s1027_s14, %s1145_s14   ;;  %s988_s13 = sphi %s1025_s13, %s1144_s13   ;;  %s984_s12 = sphi %s1023_s12, %s1143_s12  }
   0x4   : > { %p26_p0 = scmp.ge.s32.totalorder %s25_s17, 17  ;;  %p49_p2 = scmp.eq.s32.totalorder %s1000_s16, 0 }
   0x5   : > { %s41_s19 = sadd.s32 1, %s988_s13  ;;  %p787_p5 = scmp.ge.s32.totalorder %s1000_s16, 17 }
   0x6   : > { %s1148_s17 = smov (%p26_p0, %s25_s17), 0  ;;  %p50_p3 = por %p49_p2, %p48_p1 }
   0x7   : > { %s37_s18 = ssub.s32 %s996_s15, %s1148_s17  ;;  %162 = sbr.rel (%p787_p5) target bundleno = 18 (0x12), region = 20 }
   0x8   : > { %p39_p4 = scmp.eq.s32.totalorder %s37_s18, 0 }
   0xa   : > { %s1058_s20 = scalar_select %p39_p4, %s988_s13, %s41_s19  }
   0xc   : > { %165 = sbr.rel (!%p50_p3) target bundleno = 18 (0x12), region = 24  ;;  %s167_s21 = sand.u32 (%p50_p3), 1, %s988_s13  }
   0xd   : > { %s838_s22 = sshll.u32 (%p50_p3), %s996_s15, 4  ;;  %s788_s23 = sshll.u32 (%p50_p3), %s167_s21, 5 }
   0xe   : > { %s175_s26 = scalar_lea.vmem (%p50_p3), %s1139_s0, %s838_s22  ;;  %s169_s27 = scalar_lea.vmem (%p50_p3), [#allocation3], %s788_s23 }
   0xf   : > { %v188_v0 = vld [vmem:[%s175_s26] sm:$0xff] (%p50_p3)  ;;  %v190_v1 = vld [vmem:[%s175_s26 + $0x8] sm:$0xff] (%p50_p3)  ;;  %v192_v2 = vld [vmem:[%s175_s26 + $0x110] sm:$0xff] (%p50_p3) }
  0x10   : > { %189 = vst [vmem:[%s169_s27] sm:$0xff] (%p50_p3), %v188_v0  ;;  %191 = vst [vmem:[%s169_s27 + $0x8] sm:$0xff] (%p50_p3), %v190_v1  ;;  %v194_v3 = vld [vmem:[%s175_s26 + $0x118] sm:$0xff] (%p50_p3) }
  0x11   : > { %193 = vst [vmem:[%s169_s27 + $0x10] sm:$0xff] %v192_v2  ;;  %195 = vst [vmem:[%s169_s27 + $0x18] sm:$0xff] %v194_v3 }
  0x12 PF: > { %p791_p6 = scmp.ge.s32.totalorder %s1000_s16, 1  ;;  %p212_p7 = scmp.lt.s32.totalorder %s1000_s16, 18 }
  0x14   : > { %p213_p8 = pnand %p791_p6, %p212_p7 }
  0x15   : > { %s219_s28 = sand.u32 (!%p213_p8), 1, %s984_s12   ;;  %s793_s29 = sshll.u32 (!%p213_p8), %s992_s14, 6 }
  0x16   : > { %216 = sbr.rel (%p213_p8) target bundleno = 287 (0x11f), region = 51  ;;  %s792_s30 = sshll.u32 (!%p213_p8), %s219_s28, 5 }
  0x17   : > { %p259_p9 = scmp.lt.s32.totalorder (!%p213_p8), %s793_s29, 1087  ;;  %s1075_s8 = scalar_lea.vmem (!%p213_p8), [#allocation3], %s792_s30 }
  0x18   : > { %p795_p10 = scmp.ne.s32.totalorder (!%p213_p8), %s992_s14, 0 }
  0x1b   : > { %s1150_s29 = smov (!%p259_p9, %s793_s29), 1087  ;;  %283 = sbr.rel (%p795_p10) target bundleno = 34 (0x22), region = 59 }
  0x1c   : > { %s794_s4 = sshll.u32 %s1150_s29, 2 }
  0x1d   : > { %s1073_s7 = scalar_lea.vmem %s1140_s1, %s794_s4 }
  0x20   : > { %v1002_v4 = vmov 0.0  }
  0x21   : > { %284 = vst [vmem:[#allocation2] sm:$0xff] %v1002_v4  ;;  %285 = vst [vmem:[#allocation2 + $0x8] sm:$0xff] %v1002_v4 }
  0x22 PF: > { %v924_v5 = vld [vmem:[%s1073_s7 + $0x78] sm:$0xff]   ;;  %v928_v9 = vld [vmem:[%s1073_s7 + $0x70] sm:$0xff]   ;;  %v932_v13 = vld [vmem:[%s1073_s7 + $0x68] sm:$0xff]   ;;  %p832_p11 = scmp.ne.s32.totalorder %s992_s14, 16 }
  0x23   : > { %v925_v6 = vld [vmem:[%s1073_s7 + $0xf8] sm:$0xff]   ;;  %839 = vmatprep.subr.bf16.mxu0 %v924_v5  ;;  %v929_v10 = vld [vmem:[%s1073_s7 + $0xf0] sm:$0xff]   ;;  %v933_v14 = vld [vmem:[%s1073_s7 + $0xe8] sm:$0xff]  }
  0x24   : > { %v926_v7 = vld [vmem:[%s1073_s7 + $0x38] sm:$0xff]   ;;  %861 = vmatprep.subr.bf16.mxu1 %v925_v6  ;;  %v930_v11 = vld [vmem:[%s1073_s7 + $0x30] sm:$0xff]   ;;  %v934_v15 = vld [vmem:[%s1073_s7 + $0x28] sm:$0xff]  }
  0x25   : > { %v927_v8 = vld [vmem:[%s1073_s7 + $0xb8] sm:$0xff]   ;;  %840 = vmatpush3.bf16.msra.mxu0 %v926_v7  ;;  %v931_v12 = vld [vmem:[%s1073_s7 + $0xb0] sm:$0xff]   ;;  %v935_v16 = vld [vmem:[%s1073_s7 + $0xa8] sm:$0xff]  }
  0x26   : > { %862 = vmatpush3.bf16.msra.mxu1 %v927_v8  ;;  %841 = vmatprep.subr.bf16.mxu0 %v928_v9  ;;  %v936_v17 = vld [vmem:[%s1073_s7 + $0x60] sm:$0xff]   ;;  %v940_v21 = vld [vmem:[%s1073_s7 + $0x58] sm:$0xff]   ;;  %v944_v25 = vld [vmem:[%s1073_s7 + $0x50] sm:$0xff]  }
  0x27   : > { %863 = vmatprep.subr.bf16.mxu1 %v929_v10  ;;  %v937_v18 = vld [vmem:[%s1073_s7 + $0xe0] sm:$0xff]   ;;  %v941_v22 = vld [vmem:[%s1073_s7 + $0xd8] sm:$0xff]   ;;  %v945_v26 = vld [vmem:[%s1073_s7 + $0xd0] sm:$0xff]  }
  0x28   : > { %v938_v19 = vld [vmem:[%s1073_s7 + $0x20] sm:$0xff]   ;;  %v942_v23 = vld [vmem:[%s1073_s7 + $0x18] sm:$0xff]   ;;  %v946_v27 = vld [vmem:[%s1073_s7 + $0x10] sm:$0xff]  }
  0x29   : > { %842 = vmatpush3.bf16.msra.mxu0 %v930_v11  ;;  %v939_v20 = vld [vmem:[%s1073_s7 + $0xa0] sm:$0xff]   ;;  %v943_v24 = vld [vmem:[%s1073_s7 + $0x98] sm:$0xff]   ;;  %v947_v28 = vld [vmem:[%s1073_s7 + $0x90] sm:$0xff]  }
  0x2a   : > { %864 = vmatpush3.bf16.msra.mxu1 %v931_v12  ;;  %843 = vmatprep.subr.bf16.mxu0 %v932_v13  ;;  %v948_v29 = vld [vmem:[%s1073_s7 + $0x48] sm:$0xff]   ;;  %v952_v33 = vld [vmem:[%s1073_s7 + $0x40] sm:$0xff]  }
  0x2b   : > { %865 = vmatprep.subr.bf16.mxu1 %v933_v14  ;;  %v949_v30 = vld [vmem:[%s1073_s7 + $0xc8] sm:$0xff]   ;;  %v953_v34 = vld [vmem:[%s1073_s7 + $0xc0] sm:$0xff]  }
  0x2c   : > { %v950_v31 = vld [vmem:[%s1073_s7 + $0x8] sm:$0xff]   ;;  %v954_v35 = vld [vmem:[%s1073_s7] sm:$0xff]  }
  0x2d   : > { %844 = vmatpush3.bf16.msra.mxu0 %v934_v15  ;;  %v951_v32 = vld [vmem:[%s1073_s7 + $0x88] sm:$0xff]   ;;  %v955_v36 = vld [vmem:[%s1073_s7 + $0x80] sm:$0xff]  }
  0x2e   : > { %866 = vmatpush3.bf16.msra.mxu1 %v935_v16  ;;  %845 = vmatprep.subr.bf16.mxu0 %v936_v17  ;;  %v956_v37 = vld [vmem:[%s1075_s8] ss:$16 sps:$4 sm:$0xff]   ;;  %v958_v38 = vld [vmem:[%s1075_s8 + $0x4] ss:$16 sps:$4 sm:$0xff]   ;;  %v959_v39 = vld [vmem:[%s1075_s8 + $0x8] ss:$16 sps:$4 sm:$0xff]  }
  0x2f   : > { %867 = vmatprep.subr.bf16.mxu1 %v937_v18  ;;  %v961_v40 = vld [vmem:[%s1075_s8 + $0xc] ss:$16 sps:$4 sm:$0xff]   ;;  %600 = vmatprep.mubr.bf16.mxu0 %v958_v38  ;;  %v286_v48 = vld [vmem:[#allocation2] sm:$0xff] }
  0x30   : > { %641 = vmatprep.mubr.bf16.mxu1 %v961_v40  ;;  %v287_v56 = vld [vmem:[#allocation2 + $0x8] sm:$0xff] }
  0x31   : > { %846 = vmatpush3.bf16.msra.mxu0 %v938_v19 }
  0x32   : > { %868 = vmatpush3.bf16.msra.mxu1 %v939_v20  ;;  %847 = vmatprep.subr.bf16.mxu0 %v940_v21 }
  0x33   : > { %869 = vmatprep.subr.bf16.mxu1 %v941_v22 }
  0x35   : > { %848 = vmatpush3.bf16.msra.mxu0 %v942_v23 }
  0x36   : > { %870 = vmatpush3.bf16.msra.mxu1 %v943_v24  ;;  %849 = vmatprep.subr.bf16.mxu0 %v944_v25 }
  0x37   : > { %871 = vmatprep.subr.bf16.mxu1 %v945_v26 }
  0x39   : > { %850 = vmatpush3.bf16.msra.mxu0 %v946_v27 }
  0x3a   : > { %872 = vmatpush3.bf16.msra.mxu1 %v947_v28  ;;  %851 = vmatprep.subr.bf16.mxu0 %v948_v29 }
  0x3b   : > { %873 = vmatprep.subr.bf16.mxu1 %v949_v30 }
  0x3d   : > { %852 = vmatpush3.bf16.msra.mxu0 %v950_v31 }
  0x3e   : > { %874 = vmatpush3.bf16.msra.mxu1 %v951_v32  ;;  %853 = vmatprep.subr.bf16.mxu0 %v952_v33 }
  0x3f   : > { %875 = vmatprep.subr.bf16.mxu1 %v953_v34 }
  0x41   : > { %854 = vmatpush3.bf16.msra.mxu0 %v954_v35 }
  0x42   : > { %876 = vmatpush3.bf16.msra.mxu1 %v955_v36 }
  0x44   : > { %601 = vmatmul.mubr.bf16.vlgmr.msra.gmra.mxu0 %v956_v37 }
  0x45   : > { %642 = vmatmul.mubr.bf16.vlgmr.msra.gmra.mxu1 %v959_v39 }
 0x104   : > { %v855_v41 = vpop.f32.mrf.mxu0 }
 0x105   : > { %v877_v42 = vpop.f32.mrf.mxu1 }
 0x106   : > { %v856_v43 = vpop.f32.mrf.mxu0 }
 0x107   : > { %v857_v44 = vadd.f32 %v856_v43, %v855_v41  ;;  %v878_v45 = vpop.f32.mrf.mxu1 }
 0x108   : > { %v879_v46 = vadd.f32 %v878_v45, %v877_v42  ;;  %v858_v47 = vpop.f32.mrf.mxu0 }
 0x109   : > { %v880_v49 = vpop.f32.mrf.mxu1 }
 0x10a   : > { %v644_v50 = vadd.f32 %v879_v46, %v857_v44  ;;  %v859_v51 = vpop.f32.mrf.mxu0 }
 0x10b   : > { %v860_v52 = vadd.f32 %v859_v51, %v858_v47  ;;  %v881_v53 = vpop.f32.mrf.mxu1 }
 0x10c   : > { %v650_v54 = vadd.f32 %v644_v50, %v286_v48  ;;  %v882_v55 = vadd.f32 %v881_v53, %v880_v49 }
 0x10e   : > { %652 = vst [vmem:[#allocation2] sm:$0xff] %v650_v54  ;;  %v647_v57 = vadd.f32 %v882_v55, %v860_v52  ;;  %657 = sbr.rel (%p832_p11) target bundleno = 287 (0x11f), region = 63 }
 0x110   : > { %v651_v58 = vadd.f32 %v647_v57, %v287_v56 }
 0x112   : > { %653 = vst [vmem:[#allocation2 + $0x8] sm:$0xff] %v651_v58 }
 0x113   : > { %v833_v60 = vld [vmem:[%s1141_s2] ss:$0 sm:$0xff] }
 0x115   : > { %v658_v59 = vld [vmem:[#allocation2] sm:$0xff] }
 0x116   : > { %v667_v62 = vadd.f32 %v833_v60, %v658_v59 }
 0x118   : > { %v669_v0 = vmax.f32 %v667_v62, 0.0 }
 0x119   : > { %v659_v61 = vld [vmem:[#allocation2 + $0x8] sm:$0xff] }
 0x11a   : > { %v668_v63 = vadd.f32 %v833_v60, %v659_v61  ;;  %671 = vst [vmem:[%s1142_s3] sm:$0xff] %v669_v0 }
 0x11c   : > { %v670_v1 = vmax.f32 %v668_v63, 0.0 }
 0x11e   : > { %672 = vst [vmem:[%s1142_s3 + $0x8] sm:$0xff] %v670_v1 }
 0x11f PF: > { %s13_s16 = sadd.s32 1, %s1000_s16   ;;  %s1143_s12 = smov %s988_s13 }
 0x120   : > { %p10_p12 = scmp.ge.s32.totalorder %s13_s16, 19   ;;  %s1144_s13 = smov %s1058_s20 }
 0x121   : > { %s1145_s14 = smov %s996_s15  ;;  %s1146_s15 = smov %s1148_s17 }
 0x122   :  { %12 = sbr.rel (!%p10_p12) target bundleno = 3 (0x3), region = 104 }

// kernel: _lambda_.38
= control target key start
LH: loop header
LB: loop body
LE: loop exit
PB: predicated region body
PF: predicated region fallthrough
CT: control target
= control target key end

     0   :  { %v807_v1 = vmov 0   ;;  %v47_v60 = vlaneseq  ;;  %s1058_s1 = inlined_call_operand.vmem [shape: bf16[128,256], index: 1, kind: input, shape index: {}]   ;;  %s1059_s0 = inlined_call_operand.vmem [shape: bf16[16,128], index: 0, kind: input, shape index: {}]   ;;  %s1060_s3 = inlined_call_operand.vmem [shape: bf16[256,256], index: 3, kind: input, shape index: {}]   ;;  %s1061_s5 = inlined_call_operand.vmem [shape: bf16[256,128], index: 5, kind: input, shape index: {}]   ;;  %s1062_s2 = inlined_call_operand.vmem [shape: f32[1,256], index: 2, kind: input, shape index: {}]   ;;  %s1063_s4 = inlined_call_operand.vmem [shape: f32[1,256], index: 4, kind: input, shape index: {}]   ;;  %s1064_s6 = inlined_call_operand.vmem [shape: f32[1,128], index: 6, kind: input, shape index: {}]   ;;  %s1065_s7 = inlined_call_operand.vmem [shape: f32[16,128], index: 7, kind: output, shape index: {}]  }
   0x1   :  { %v718_v0 = vld [vmem:[%s1058_s1 + $0x74] ss:$8 sps:$4 sm:$0xff]   ;;  %175 = vmatprep.mubr.bf16.mxu0 %v807_v1  ;;  %v720_v2 = vld [vmem:[%s1058_s1 + $0x70] ss:$8 sps:$4 sm:$0xff]   ;;  %v721_v3 = vld [vmem:[%s1058_s1 + $0x64] ss:$8 sps:$4 sm:$0xff]  }
   0x2   :  { %143 = vmatprep.subr.bf16.mxu0 %v718_v0  ;;  %v723_v4 = vld [vmem:[%s1058_s1 + $0x60] ss:$8 sps:$4 sm:$0xff]   ;;  %v724_v5 = vld [vmem:[%s1058_s1 + $0x54] ss:$8 sps:$4 sm:$0xff]   ;;  %v726_v6 = vld [vmem:[%s1058_s1 + $0x50] ss:$8 sps:$4 sm:$0xff]  }
   0x3   :  { %144 = vmatpush1.bf16.msra.mxu0 %v720_v2  ;;  %v727_v7 = vld [vmem:[%s1058_s1 + $0x44] ss:$8 sps:$4 sm:$0xff]   ;;  %v729_v8 = vld [vmem:[%s1058_s1 + $0x40] ss:$8 sps:$4 sm:$0xff]   ;;  %v730_v9 = vld [vmem:[%s1058_s1 + $0x34] ss:$8 sps:$4 sm:$0xff]  }
   0x4   :  { %145 = vmatprep.subr.bf16.mxu0 %v721_v3  ;;  %v743_v10 = vld [vmem:[%s1060_s3 + $0x74] ss:$8 sps:$4 sm:$0xff]   ;;  %v745_v11 = vld [vmem:[%s1060_s3 + $0x70] ss:$8 sps:$4 sm:$0xff]   ;;  %v746_v12 = vld [vmem:[%s1060_s3 + $0x64] ss:$8 sps:$4 sm:$0xff]  }
   0x5   :  { %396 = vmatprep.subr.bf16.mxu1 %v743_v10  ;;  %v732_v13 = vld [vmem:[%s1058_s1 + $0x30] ss:$8 sps:$4 sm:$0xff]   ;;  %v748_v14 = vld [vmem:[%s1060_s3 + $0x60] ss:$8 sps:$4 sm:$0xff]   ;;  %v733_v15 = vld [vmem:[%s1058_s1 + $0x24] ss:$8 sps:$4 sm:$0xff]  }
   0x6   :  { %397 = vmatpush1.bf16.msra.mxu1 %v745_v11  ;;  %v749_v16 = vld [vmem:[%s1060_s3 + $0x54] ss:$8 sps:$4 sm:$0xff]   ;;  %v735_v17 = vld [vmem:[%s1058_s1 + $0x20] ss:$8 sps:$4 sm:$0xff]   ;;  %v751_v18 = vld [vmem:[%s1060_s3 + $0x50] ss:$8 sps:$4 sm:$0xff]  }
   0x7   :  { %146 = vmatpush1.bf16.msra.mxu0 %v723_v4  ;;  %398 = vmatprep.subr.bf16.mxu1 %v746_v12  ;;  %v736_v19 = vld [vmem:[%s1058_s1 + $0x14] ss:$8 sps:$4 sm:$0xff]   ;;  %v752_v20 = vld [vmem:[%s1060_s3 + $0x44] ss:$8 sps:$4 sm:$0xff]   ;;  %v738_v21 = vld [vmem:[%s1058_s1 + $0x10] ss:$8 sps:$4 sm:$0xff]  }
   0x8   :  { %147 = vmatprep.subr.bf16.mxu0 %v724_v5  ;;  %v754_v22 = vld [vmem:[%s1060_s3 + $0x40] ss:$8 sps:$4 sm:$0xff]   ;;  %v739_v23 = vld [vmem:[%s1058_s1 + $0x4] ss:$8 sps:$4 sm:$0xff]   ;;  %v755_v24 = vld [vmem:[%s1060_s3 + $0x34] ss:$8 sps:$4 sm:$0xff]  }
   0x9   :  { %v741_v25 = vld [vmem:[%s1058_s1] ss:$8 sps:$4 sm:$0xff]   ;;  %v757_v26 = vld [vmem:[%s1060_s3 + $0x30] ss:$8 sps:$4 sm:$0xff]   ;;  %v758_v27 = vld [vmem:[%s1060_s3 + $0x24] ss:$8 sps:$4 sm:$0xff]  }
   0xa   :  { %399 = vmatpush1.bf16.msra.mxu1 %v748_v14  ;;  %v742_v28 = vld [vmem:[%s1059_s0] sm:$0xff]   ;;  %v761_v30 = vld [vmem:[%s1060_s3 + $0x14] ss:$8 sps:$4 sm:$0xff]   ;;  %v763_v31 = vld [vmem:[%s1060_s3 + $0x10] ss:$8 sps:$4 sm:$0xff]   ;;  %v48_v61 = vshrl.u32 %v47_v60, 7 }
   0xb   :  { %148 = vmatpush1.bf16.msra.mxu0 %v726_v6  ;;  %400 = vmatprep.subr.bf16.mxu1 %v749_v16  ;;  %v760_v29 = vld [vmem:[%s1060_s3 + $0x20] ss:$8 sps:$4 sm:$0xff]   ;;  %v764_v32 = vld [vmem:[%s1060_s3 + $0x4] ss:$8 sps:$4 sm:$0xff]   ;;  %v767_v34 = vld [vmem:[%s1060_s3 + $0xf4] ss:$8 sps:$4 sm:$0xff]  }
   0xc   :  { %149 = vmatprep.subr.bf16.mxu0 %v727_v7  ;;  %v766_v33 = vld [vmem:[%s1060_s3] ss:$8 sps:$4 sm:$0xff]   ;;  %v769_v35 = vld [vmem:[%s1060_s3 + $0xf0] ss:$8 sps:$4 sm:$0xff]   ;;  %v770_v36 = vld [vmem:[%s1060_s3 + $0xe4] ss:$8 sps:$4 sm:$0xff]  }
   0xd   :  { %v772_v37 = vld [vmem:[%s1060_s3 + $0xe0] ss:$8 sps:$4 sm:$0xff]   ;;  %v773_v38 = vld [vmem:[%s1060_s3 + $0xd4] ss:$8 sps:$4 sm:$0xff]   ;;  %v775_v39 = vld [vmem:[%s1060_s3 + $0xd0] ss:$8 sps:$4 sm:$0xff]  }
   0xe   :  { %401 = vmatpush1.bf16.msra.mxu1 %v751_v18  ;;  %v776_v40 = vld [vmem:[%s1060_s3 + $0xc4] ss:$8 sps:$4 sm:$0xff]   ;;  %v778_v41 = vld [vmem:[%s1060_s3 + $0xc0] ss:$8 sps:$4 sm:$0xff]   ;;  %v779_v42 = vld [vmem:[%s1060_s3 + $0xb4] ss:$8 sps:$4 sm:$0xff]  }
   0xf   :  { %150 = vmatpush1.bf16.msra.mxu0 %v729_v8  ;;  %402 = vmatprep.subr.bf16.mxu1 %v752_v20  ;;  %v781_v43 = vld [vmem:[%s1060_s3 + $0xb0] ss:$8 sps:$4 sm:$0xff]   ;;  %v782_v44 = vld [vmem:[%s1060_s3 + $0xa4] ss:$8 sps:$4 sm:$0xff]   ;;  %v784_v45 = vld [vmem:[%s1060_s3 + $0xa0] ss:$8 sps:$4 sm:$0xff]  }
  0x10   :  { %151 = vmatprep.subr.bf16.mxu0 %v730_v9  ;;  %v785_v46 = vld [vmem:[%s1060_s3 + $0x94] ss:$8 sps:$4 sm:$0xff]   ;;  %v787_v47 = vld [vmem:[%s1060_s3 + $0x90] ss:$8 sps:$4 sm:$0xff]   ;;  %v788_v48 = vld [vmem:[%s1060_s3 + $0x84] ss:$8 sps:$4 sm:$0xff]  }
  0x11   :  { %v790_v49 = vld [vmem:[%s1060_s3 + $0x80] ss:$8 sps:$4 sm:$0xff]   ;;  %v791_v50 = vld [vmem:[%s1061_s5 + $0x78] sm:$0xff]   ;;  %v793_v52 = vld [vmem:[%s1061_s5 + $0x70] sm:$0xff]   ;;  %v53_v62 = vsub.s32 1, %v48_v61  ;;  %v49_v63 = vsub.s32 0, %v48_v61 }
  0x12   :  { %403 = vmatpush1.bf16.msra.mxu1 %v754_v22  ;;  %v792_v51 = vld [vmem:[%s1061_s5 + $0x38] sm:$0xff]   ;;  %v794_v53 = vld [vmem:[%s1061_s5 + $0x30] sm:$0xff]   ;;  %v795_v54 = vld [vmem:[%s1061_s5 + $0x68] sm:$0xff]  }
  0x13   :  { %152 = vmatpush1.bf16.msra.mxu0 %v732_v13  ;;  %404 = vmatprep.subr.bf16.mxu1 %v755_v24  ;;  %v796_v55 = vld [vmem:[%s1061_s5 + $0x28] sm:$0xff]   ;;  %v797_v56 = vld [vmem:[%s1061_s5 + $0x60] sm:$0xff]   ;;  %v799_v58 = vld [vmem:[%s1061_s5 + $0x58] sm:$0xff]  }
  0x14   :  { %153 = vmatprep.subr.bf16.mxu0 %v733_v15  ;;  %v798_v57 = vld [vmem:[%s1061_s5 + $0x20] sm:$0xff]   ;;  %v800_v59 = vld [vmem:[%s1061_s5 + $0x18] sm:$0xff]   ;;  %v802_v18 = vld [vmem:[%s1061_s5 + $0x10] sm:$0xff]  }
  0x15   :  { %v45_v0 = vld [vmem:[%s1062_s2] sm:$0x3]  ;;  %v804_v20 = vld [vmem:[%s1061_s5 + $0x8] sm:$0xff]  }
  0x16   :  { %405 = vmatpush1.bf16.msra.mxu1 %v757_v26  ;;  %v54_v2 = vrot.slane %v45_v0, %v53_v62  ;;  %v50_v3 = vrot.slane %v45_v0, %v49_v63  ;;  %v806_v22 = vld [vmem:[%s1061_s5] sm:$0xff]  }
  0x17   :  { %154 = vmatpush1.bf16.msra.mxu0 %v735_v17  ;;  %406 = vmatprep.subr.bf16.mxu1 %v758_v27  ;;  %v801_v17 = vld [vmem:[%s1061_s5 + $0x50] sm:$0xff]  }
  0x18   :  { %155 = vmatprep.subr.bf16.mxu0 %v736_v19  ;;  %v803_v19 = vld [vmem:[%s1061_s5 + $0x48] sm:$0xff]  }
  0x1a   :  { %407 = vmatpush1.bf16.msra.mxu1 %v760_v29 }
  0x1b   :  { %156 = vmatpush1.bf16.msra.mxu0 %v738_v21  ;;  %408 = vmatprep.subr.bf16.mxu1 %v761_v30  ;;  %v805_v21 = vld [vmem:[%s1061_s5 + $0x40] sm:$0xff]  }
  0x1c   :  { %157 = vmatprep.subr.bf16.mxu0 %v739_v23  ;;  %v224_v23 = vld [vmem:[%s1063_s4] sm:$0x3] }
  0x1d   :  { %v229_v26 = vrot.slane %v224_v23, %v49_v63 }
  0x1e   :  { %409 = vmatpush1.bf16.msra.mxu1 %v763_v31 }
  0x1f   :  { %158 = vmatpush1.bf16.msra.mxu0 %v741_v25  ;;  %410 = vmatprep.subr.bf16.mxu1 %v764_v32  ;;  %v233_v25 = vrot.slane %v224_v23, %v53_v62 }
  0x20   :  { %695 = vmatprep.subr.bf16.mxu0 %v791_v50 }
  0x22   :  { %176 = vmatmul.mubr.bf16.vlgmr.msra.gmra.mxu0 %v742_v28  ;;  %411 = vmatpush1.bf16.msra.mxu1 %v766_v33 }
  0x23   :  { %412 = vmatprep.subr.bf16.mxu1 %v767_v34  ;;  %696 = vmatpush3.bf16.msra.mxu0 %v792_v51 }
  0x24   :  { %697 = vmatprep.subr.bf16.mxu0 %v793_v52 }
  0x26   :  { %413 = vmatpush2.bf16.msra.mxu1 %v769_v35 }
  0x27   :  { %414 = vmatprep.subr.bf16.mxu1 %v770_v36  ;;  %698 = vmatpush3.bf16.msra.mxu0 %v794_v53 }
  0x28   :  { %699 = vmatprep.subr.bf16.mxu0 %v795_v54 }
  0x2a   :  { %415 = vmatpush2.bf16.msra.mxu1 %v772_v37 }
  0x2b   :  { %416 = vmatprep.subr.bf16.mxu1 %v773_v38  ;;  %700 = vmatpush3.bf16.msra.mxu0 %v796_v55 }
  0x2c   :  { %701 = vmatprep.subr.bf16.mxu0 %v797_v56 }
  0x2e   :  { %417 = vmatpush2.bf16.msra.mxu1 %v775_v39 }
  0x2f   :  { %418 = vmatprep.subr.bf16.mxu1 %v776_v40  ;;  %702 = vmatpush3.bf16.msra.mxu0 %v798_v57 }
  0x30   :  { %703 = vmatprep.subr.bf16.mxu0 %v799_v58 }
  0x32   :  { %419 = vmatpush2.bf16.msra.mxu1 %v778_v41  ;;  %v678_v41 = vld [vmem:[%s1064_s6] ss:$0 sm:$0xff] }
  0x33   :  { %420 = vmatprep.subr.bf16.mxu1 %v779_v42  ;;  %704 = vmatpush3.bf16.msra.mxu0 %v800_v59 }
  0x34   :  { %705 = vmatprep.subr.bf16.mxu0 %v801_v17 }
  0x36   :  { %421 = vmatpush2.bf16.msra.mxu1 %v781_v43 }
  0x37   :  { %422 = vmatprep.subr.bf16.mxu1 %v782_v44  ;;  %706 = vmatpush3.bf16.msra.mxu0 %v802_v18 }
  0x38   :  { %707 = vmatprep.subr.bf16.mxu0 %v803_v19 }
  0x3a   :  { %423 = vmatpush2.bf16.msra.mxu1 %v784_v45 }
  0x3b   :  { %424 = vmatprep.subr.bf16.mxu1 %v785_v46  ;;  %708 = vmatpush3.bf16.msra.mxu0 %v804_v20 }
  0x3c   :  { %709 = vmatprep.subr.bf16.mxu0 %v805_v21 }
  0x3e   :  { %425 = vmatpush2.bf16.msra.mxu1 %v787_v47 }
  0x3f   :  { %426 = vmatprep.subr.bf16.mxu1 %v788_v48  ;;  %710 = vmatpush3.bf16.msra.mxu0 %v806_v22 }
  0x42   :  { %427 = vmatpush2.bf16.msra.mxu1 %v790_v49 }
  0xe2   :  { %v177_v1 = vpop.f32.mrf.mxu0 }
  0xe3   :  { %v178_v8 = vadd.f32 %v177_v1, %v50_v3 }
  0xe4   :  { %v179_v4 = vpop.f32.mrf.mxu0 }
  0xe5   :  { %v180_v6 = vadd.f32 %v179_v4, %v54_v2  ;;  %v186_v14 = vmax.f32 %v178_v8, 0.0 }
  0xe6   :  { %v181_v5 = vpop.f32.mrf.mxu0 }
  0xe7   :  { %v182_v7 = vadd.f32 %v181_v5, %v50_v3  ;;  %v187_v12 = vmax.f32 %v180_v6, 0.0 }
  0xe8   :  { %v183_v9 = vpop.f32.mrf.mxu0 }
  0xe9   :  { %v184_v10 = vadd.f32 %v183_v9, %v54_v2  ;;  %v188_v11 = vmax.f32 %v182_v7, 0.0 }
  0xeb   :  { %v189_v13 = vmax.f32 %v184_v10, 0.0  ;;  %v190_v16 = vpack.c.bf16 %v188_v11, %v186_v14 }
  0xed   :  { %v191_v15 = vpack.c.bf16 %v189_v13, %v187_v12 }
  0xef   :  { %428 = vmatprep.mubr.bf16.mxu1 %v191_v15 }
  0xf0   :  { %429 = vmatmul.mubr.bf16.vlgmr.msra.gmra.mxu1 %v190_v16 }
 0x1b0   :  { %v430_v24 = vpop.f32.mrf.mxu1 }
 0x1b1   :  { %v431_v31 = vadd.f32 %v430_v24, %v229_v26 }
 0x1b2   :  { %v432_v27 = vpop.f32.mrf.mxu1 }
 0x1b3   :  { %v433_v29 = vadd.f32 %v432_v27, %v233_v25  ;;  %v439_v37 = vmax.f32 %v431_v31, 0.0 }
 0x1b4   :  { %v434_v28 = vpop.f32.mrf.mxu1 }
 0x1b5   :  { %v435_v30 = vadd.f32 %v434_v28, %v229_v26  ;;  %v440_v35 = vmax.f32 %v433_v29, 0.0 }
 0x1b6   :  { %v436_v32 = vpop.f32.mrf.mxu1 }
 0x1b7   :  { %v437_v33 = vadd.f32 %v436_v32, %v233_v25  ;;  %v441_v34 = vmax.f32 %v435_v30, 0.0 }
 0x1b9   :  { %v442_v36 = vmax.f32 %v437_v33, 0.0  ;;  %v443_v39 = vpack.c.bf16 %v441_v34, %v439_v37 }
 0x1bb   :  { %v444_v38 = vpack.c.bf16 %v442_v36, %v440_v35 }
 0x1bd   :  { %612 = vmatprep.mubr.bf16.mxu0 %v444_v38 }
 0x1be   :  { %613 = vmatmul.mubr.bf16.vlgmr.msra.gmra.mxu0 %v443_v39 }
 0x27e   :  { %v711_v40 = vpop.f32.mrf.mxu0 }
 0x280   :  { %v712_v42 = vpop.f32.mrf.mxu0 }
 0x281   :  { %v713_v43 = vadd.f32 %v712_v42, %v711_v40 }
 0x282   :  { %v714_v44 = vpop.f32.mrf.mxu0 }
 0x283   :  { %v615_v45 = vadd.f32 %v713_v43, %v678_v41 }
 0x284   :  { %v715_v46 = vpop.f32.mrf.mxu0 }
 0x285   :  { %v621_v47 = vmax.f32 %v615_v45, 0.0  ;;  %v716_v48 = vadd.f32 %v715_v46, %v714_v44 }
 0x287   :  { %623 = vst [vmem:[%s1065_s7] sm:$0xff] %v621_v47  ;;  %v618_v49 = vadd.f32 %v716_v48, %v678_v41 }
 0x289   :  { %v622_v50 = vmax.f32 %v618_v49, 0.0 }
 0x28b   :  { %624 = vst [vmem:[%s1065_s7 + $0x8] sm:$0xff] %v622_v50 }

// kernel: _lambda_.75
= control target key start
LH: loop header
LB: loop body
LE: loop exit
PB: predicated region body
PF: predicated region fallthrough
CT: control target
= control target key end

     0   :  { %v525_v0 = vmov 0.0   ;;  %vm526_vm0 = vmmov 0   ;;  %s687_s1 = inlined_call_operand.vmem [shape: bf16[128,128], index: 1, kind: input, shape index: {}]   ;;  %s688_s3 = inlined_call_operand.vmem [shape: bf16[128,128], index: 3, kind: input, shape index: {}]   ;;  %s689_s0 = inlined_call_operand.vmem [shape: bf16[16,128], index: 0, kind: input, shape index: {}]   ;;  %s690_s5 = inlined_call_operand.vmem [shape: bf16[128,128], index: 5, kind: input, shape index: {}]   ;;  %s691_s2 = inlined_call_operand.vmem [shape: f32[1,128], index: 2, kind: input, shape index: {}]   ;;  %s692_s4 = inlined_call_operand.vmem [shape: f32[1,128], index: 4, kind: input, shape index: {}]   ;;  %s693_s6 = inlined_call_operand.vmem [shape: f32[1,128], index: 6, kind: input, shape index: {}]   ;;  %s694_s7 = inlined_call_operand.vmem [shape: f32[16,128], index: 7, kind: output, shape index: {}]  }
   0x1   :  { %438 = vmatprep.subr.bf16.mxu0 %v525_v0  ;;  %v500_v1 = vld [vmem:[%s687_s1 + $0x38] sm:$0xff]   ;;  %454 = vmatprep.mubr.msk.bf16.mxu0 %vm526_vm0, %v525_v0  ;;  %v501_v2 = vld [vmem:[%s687_s1 + $0x30] sm:$0xff]   ;;  %v502_v3 = vld [vmem:[%s687_s1 + $0x28] sm:$0xff]  }
   0x2   :  { %458 = vmatprep.subr.bf16.mxu1 %v525_v0  ;;  %474 = vmatprep.mubr.msk.bf16.mxu1 %vm526_vm0, %v525_v0  ;;  %v509_v4 = vld [vmem:[%s688_s3 + $0x38] sm:$0xff]   ;;  %v503_v5 = vld [vmem:[%s687_s1 + $0x20] sm:$0xff]   ;;  %v510_v6 = vld [vmem:[%s688_s3 + $0x30] sm:$0xff]  }
   0x3   :  { %439 = vmatpush3.bf16.msra.mxu0 %v500_v1  ;;  %459 = vmatpush3.bf16.msra.mxu1 %v509_v4  ;;  %v504_v7 = vld [vmem:[%s687_s1 + $0x18] sm:$0xff]   ;;  %v511_v8 = vld [vmem:[%s688_s3 + $0x28] sm:$0xff]   ;;  %v505_v9 = vld [vmem:[%s687_s1 + $0x10] sm:$0xff]  }
   0x4   :  { %440 = vmatprep.subr.bf16.mxu0 %v525_v0  ;;  %460 = vmatprep.subr.bf16.mxu1 %v525_v0  ;;  %v512_v10 = vld [vmem:[%s688_s3 + $0x20] sm:$0xff]   ;;  %v506_v11 = vld [vmem:[%s687_s1 + $0x8] sm:$0xff]   ;;  %v513_v12 = vld [vmem:[%s688_s3 + $0x18] sm:$0xff]  }
   0x5   :  { %v507_v13 = vld [vmem:[%s687_s1] sm:$0xff]   ;;  %v514_v15 = vld [vmem:[%s688_s3 + $0x10] sm:$0xff]   ;;  %v515_v16 = vld [vmem:[%s688_s3 + $0x8] sm:$0xff]  }
   0x6   :  { %v508_v14 = vld [vmem:[%s689_s0] sm:$0xff]   ;;  %v517_v18 = vld [vmem:[%s690_s5 + $0x38] sm:$0xff]   ;;  %v518_v19 = vld [vmem:[%s690_s5 + $0x30] sm:$0xff]  }
   0x7   :  { %441 = vmatpush3.bf16.msra.mxu0 %v501_v2  ;;  %461 = vmatpush3.bf16.msra.mxu1 %v510_v6  ;;  %v516_v17 = vld [vmem:[%s688_s3] sm:$0xff]   ;;  %v519_v20 = vld [vmem:[%s690_s5 + $0x28] sm:$0xff]   ;;  %v521_v22 = vld [vmem:[%s690_s5 + $0x18] sm:$0xff]  }
   0x8   :  { %442 = vmatprep.subr.bf16.mxu0 %v525_v0  ;;  %462 = vmatprep.subr.bf16.mxu1 %v525_v0  ;;  %v520_v21 = vld [vmem:[%s690_s5 + $0x20] sm:$0xff]   ;;  %v522_v33 = vld [vmem:[%s690_s5 + $0x10] sm:$0xff]   ;;  %v523_v34 = vld [vmem:[%s690_s5 + $0x8] sm:$0xff]  }
   0x9   :  { %v383_v23 = vld [vmem:[%s691_s2] ss:$0 sm:$0xff] }
   0xa   :  { %v524_v35 = vld [vmem:[%s690_s5] sm:$0xff]  }
   0xb   :  { %443 = vmatpush3.bf16.msra.mxu0 %v502_v3  ;;  %463 = vmatpush3.bf16.msra.mxu1 %v511_v8  ;;  %v393_v36 = vld [vmem:[%s692_s4] ss:$0 sm:$0xff] }
   0xc   :  { %444 = vmatprep.subr.bf16.mxu0 %v525_v0  ;;  %464 = vmatprep.subr.bf16.mxu1 %v525_v0  ;;  %v402_v46 = vld [vmem:[%s693_s6] ss:$0 sm:$0xff] }
   0xf   :  { %445 = vmatpush3.bf16.msra.mxu0 %v503_v5  ;;  %465 = vmatpush3.bf16.msra.mxu1 %v512_v10 }
  0x10   :  { %446 = vmatprep.subr.bf16.mxu0 %v525_v0  ;;  %466 = vmatprep.subr.bf16.mxu1 %v525_v0 }
  0x13   :  { %447 = vmatpush3.bf16.msra.mxu0 %v504_v7  ;;  %467 = vmatpush3.bf16.msra.mxu1 %v513_v12 }
  0x14   :  { %448 = vmatprep.subr.bf16.mxu0 %v525_v0  ;;  %468 = vmatprep.subr.bf16.mxu1 %v525_v0 }
  0x17   :  { %449 = vmatpush3.bf16.msra.mxu0 %v505_v9  ;;  %469 = vmatpush3.bf16.msra.mxu1 %v514_v15 }
  0x18   :  { %450 = vmatprep.subr.bf16.mxu0 %v525_v0  ;;  %470 = vmatprep.subr.bf16.mxu1 %v525_v0 }
  0x1b   :  { %451 = vmatpush3.bf16.msra.mxu0 %v506_v11  ;;  %471 = vmatpush3.bf16.msra.mxu1 %v515_v16 }
  0x1c   :  { %452 = vmatprep.subr.bf16.mxu0 %v525_v0  ;;  %472 = vmatprep.subr.bf16.mxu1 %v525_v0 }
  0x1f   :  { %453 = vmatpush3.bf16.msra.mxu0 %v507_v13  ;;  %473 = vmatpush3.bf16.msra.mxu1 %v516_v17 }
  0x20   :  { %478 = vmatprep.subr.bf16.mxu0 %v525_v0 }
  0x22   :  { %455 = vmatmul.mubr.bf16.vlgmr.msra.gmra.mxu0 %v508_v14 }
  0x23   :  { %494 = vmatprep.mubr.msk.bf16.mxu0 %vm526_vm0, %v525_v0  ;;  %479 = vmatpush3.bf16.msra.mxu0 %v517_v18 }
  0x24   :  { %480 = vmatprep.subr.bf16.mxu0 %v525_v0 }
  0x27   :  { %481 = vmatpush3.bf16.msra.mxu0 %v518_v19 }
  0x28   :  { %482 = vmatprep.subr.bf16.mxu0 %v525_v0 }
  0x2b   :  { %483 = vmatpush3.bf16.msra.mxu0 %v519_v20 }
  0x2c   :  { %484 = vmatprep.subr.bf16.mxu0 %v525_v0 }
  0x2f   :  { %485 = vmatpush3.bf16.msra.mxu0 %v520_v21 }
  0x30   :  { %486 = vmatprep.subr.bf16.mxu0 %v525_v0 }
  0x33   :  { %487 = vmatpush3.bf16.msra.mxu0 %v521_v22 }
  0x34   :  { %488 = vmatprep.subr.bf16.mxu0 %v525_v0 }
  0x37   :  { %489 = vmatpush3.bf16.msra.mxu0 %v522_v33 }
  0x38   :  { %490 = vmatprep.subr.bf16.mxu0 %v525_v0 }
  0x3b   :  { %491 = vmatpush3.bf16.msra.mxu0 %v523_v34 }
  0x3c   :  { %492 = vmatprep.subr.bf16.mxu0 %v525_v0 }
  0x3f   :  { %493 = vmatpush3.bf16.msra.mxu0 %v524_v35 }
  0xe2   :  { %v140_v24 = vpop.f32.mrf.mxu0 }
  0xe3   :  { %v141_v26 = vadd.f32 %v383_v23, %v140_v24 }
  0xe4   :  { %v456_v25 = vpop.f32.mrf.mxu0 }
  0xe5   :  { %v147_v30 = vmax.f32 %v141_v26, 0.0 }
  0xe6   :  { %v143_v27 = vpop.f32.mrf.mxu0 }
  0xe7   :  { %v144_v28 = vadd.f32 %v383_v23, %v143_v27 }
  0xe8   :  { %v457_v29 = vpop.f32.mrf.mxu0 }
  0xe9   :  { %v148_v31 = vmax.f32 %v144_v28, 0.0 }
  0xeb   :  { %v149_v32 = vpack.c.bf16 %v148_v31, %v147_v30 }
  0xed   :  { %475 = vmatmul.mubr.bf16.vlgmr.msra.gmra.mxu1 %v149_v32 }
 0x1ad   :  { %v255_v37 = vpop.f32.mrf.mxu1 }
 0x1ae   :  { %v256_v39 = vadd.f32 %v393_v36, %v255_v37 }
 0x1af   :  { %v476_v38 = vpop.f32.mrf.mxu1 }
 0x1b0   :  { %v262_v43 = vmax.f32 %v256_v39, 0.0 }
 0x1b1   :  { %v258_v40 = vpop.f32.mrf.mxu1 }
 0x1b2   :  { %v259_v41 = vadd.f32 %v393_v36, %v258_v40 }
 0x1b3   :  { %v477_v42 = vpop.f32.mrf.mxu1 }
 0x1b4   :  { %v263_v44 = vmax.f32 %v259_v41, 0.0 }
 0x1b6   :  { %v264_v45 = vpack.c.bf16 %v263_v44, %v262_v43 }
 0x1b8   :  { %495 = vmatmul.mubr.bf16.vlgmr.msra.gmra.mxu0 %v264_v45 }
 0x278   :  { %v370_v47 = vpop.f32.mrf.mxu0 }
 0x279   :  { %v371_v48 = vadd.f32 %v402_v46, %v370_v47 }
 0x27a   :  { %v496_v49 = vpop.f32.mrf.mxu0 }
 0x27b   :  { %377 = vst [vmem:[%s694_s7] sm:$0xff] %v371_v48 }
 0x27c   :  { %v373_v50 = vpop.f32.mrf.mxu0 }
 0x27d   :  { %v374_v51 = vadd.f32 %v402_v46, %v373_v50 }
 0x27e   :  { %v497_v52 = vpop.f32.mrf.mxu0 }
 0x27f   :  { %378 = vst [vmem:[%s694_s7 + $0x8] sm:$0xff] %v374_v51 }

</bundles_post_ra>
